<compile_context>
chip_gen: v7x
topology: tpu7x:2x2x1
jax: 0.10.0
libtpu: 0.0.40
codegen_flags: <defaults>
</compile_context>

<pallas_src>
import jax
import jax.numpy as jnp
from jax.experimental import pallas as pl
from jax.experimental.pallas import tpu as pltpu

EPS_BN = 1e-5  # nn.BatchNorm2d default eps


# -----------------------------------------------------------------------------
# VMEM-aware knobs
# -----------------------------------------------------------------------------
def _vmem_limit_bytes():
    """Scoped-VMEM request: well below physical capacity (v7x only has 64 MiB/TC)."""
    try:
        cap = pltpu.get_tpu_info().vmem_capacity_bytes
    except Exception:
        cap = 64 * 1024 * 1024
    return int(min(0.75 * cap, 96 * 1024 * 1024))


def _pick_tile_h(H, W, vmem_limit):
    """Largest row-tile whose 64-ch working set (bf16 dbl-buffered in/out, f32 BN
    temp, bf16 K=192 patch, f32 accumulator) fits comfortably in the VMEM budget."""
    per_row = W * 64 * 24          # rough bytes per activation row of working set
    budget = 0.5 * vmem_limit
    for th in (128, 64, 32, 16, 8, 4, 2, 1):
        if H % th == 0 and th * per_row <= budget:
            return th
    return 1


# -----------------------------------------------------------------------------
# Pallas kernel: fused [BN+ReLU prologue] -> 3x3 conv (K-combined MXU dots) -> bias
#                [-> per-channel sum / sum_sq stats]
# -----------------------------------------------------------------------------
def _make_conv_kernel(tile_h, W, cin, cout, groups, apply_bn, emit_stats):
    P = tile_h * W

    def kernel(*refs):
        if apply_bn:
            prev_ref, cur_ref, next_ref, w_ref, b_ref, sc_ref, sh_ref = refs[:7]
            out_refs = refs[7:]
        else:
            prev_ref, cur_ref, next_ref, w_ref, b_ref = refs[:5]
            out_refs = refs[5:]
        o_ref = out_refs[0]
        st_ref = out_refs[1] if emit_stats else None

        t = pl.program_id(1)
        nt = pl.num_programs(1)

        if apply_bn:
            sc = sc_ref[...].reshape(1, 1, cin)
            sh = sh_ref[...].reshape(1, 1, cin)

        def activate(v):
            # Previous layer's BN(scale,shift)+ReLU fused into this conv's input read.
            v = v.astype(jnp.float32)
            if apply_bn:
                v = jnp.maximum(v * sc + sh, 0.0)
            return v.astype(jnp.bfloat16)       # single bf16 cast; taps slice bf16

        mid = activate(cur_ref[...])            # (tile_h, W, cin) bf16
        top = activate(prev_ref[...])           # (1, W, cin)
        bot = activate(next_ref[...])
        # Image top/bottom zero padding (conv pads with zeros *after* BN+ReLU).
        top = jnp.where(t > 0, top, jnp.zeros_like(top))
        bot = jnp.where(t < nt - 1, bot, jnp.zeros_like(bot))

        a = jnp.concatenate([top, mid, bot], axis=0)        # (tile_h+2, W, cin)
        zcol = jnp.zeros((tile_h + 2, 1, cin), jnp.bfloat16)
        a = jnp.concatenate([zcol, a, zcol], axis=1)        # (tile_h+2, W+2, cin)

        # 3x3 conv with taps combined along the contraction dim:
        #  cin=64 -> 3 dots of K=3*cin=192; cin small -> 1 dot of K=9*cin.
        # Single accumulator dependence chain (MRB-friendly on v7x).
        acc = jnp.zeros((P, cout), jnp.float32)
        for g, taps in enumerate(groups):
            parts = [a[dy:dy + tile_h, dx:dx + W, :] for (dy, dx) in taps]
            patch = jnp.concatenate(parts, axis=-1).reshape(P, len(taps) * cin)
            acc = acc + jnp.dot(patch, w_ref[g], preferred_element_type=jnp.float32)

        y = acc + b_ref[...]                                 # fused bias, (P, cout)
        o_ref[...] = y.reshape(tile_h, W, cout).astype(o_ref.dtype)

        if emit_stats:
            # per-tile partial BN statistics (reduced to mean/var by tiny JAX glue)
            st_ref[0:1, :] = jnp.sum(y, axis=0, keepdims=True)
            st_ref[1:2, :] = jnp.sum(y * y, axis=0, keepdims=True)

    return kernel


# -----------------------------------------------------------------------------
# Pallas-backed fused conv op (reads the activation directly from HBM with halo rows)
# -----------------------------------------------------------------------------
def conv3x3_fused(x, w_hwio, bias, *, tile_h, scale=None, shift=None,
                  emit_stats=False, out_dtype=jnp.bfloat16, vmem_limit=None):
    """x: (N, H, W, Cin) activation. If scale/shift given, ReLU(scale*x + shift)
    (i.e. BN+ReLU of the producing layer) is applied inside the kernel before the
    convolution. Returns (N, H, W, Cout) [, (N, T, 2, Cout) partial BN stats]."""
    N, H, W, cin = x.shape
    assert H % tile_h == 0
    T = H // tile_h
    cout = w_hwio.shape[-1]
    apply_bn = scale is not None

    if 9 * cin <= 256:
        # Tiny Cin (first conv): single K=9*Cin dot — avoids 9 underfilled MXU pushes.
        groups = [tuple((dy, dx) for dy in range(3) for dx in range(3))]
        w_g = w_hwio.reshape(1, 9 * cin, cout).astype(jnp.bfloat16)
    else:
        # One K=3*Cin dot per kernel row.
        groups = [tuple((dy, dx) for dx in range(3)) for dy in range(3)]
        w_g = w_hwio.reshape(3, 3 * cin, cout).astype(jnp.bfloat16)
    b_row = bias.reshape(1, cout).astype(jnp.float32)

    kernel = _make_conv_kernel(tile_h, W, cin, cout, groups, apply_bn, emit_stats)

    # Three views of the SAME activation array: 1-row halo above, the body tile,
    # 1-row halo below. Border rows are clamped in the index_map and zeroed in-kernel.
    prev_spec = pl.BlockSpec((None, 1, W, cin),
                             lambda n, t: (n, jnp.maximum(t * tile_h - 1, 0), 0, 0))
    cur_spec = pl.BlockSpec((None, tile_h, W, cin), lambda n, t: (n, t, 0, 0))
    next_spec = pl.BlockSpec((None, 1, W, cin),
                             lambda n, t: (n, jnp.minimum((t + 1) * tile_h, H - 1), 0, 0))
    w_spec = pl.BlockSpec(w_g.shape, lambda n, t: (0, 0, 0))
    b_spec = pl.BlockSpec((1, cout), lambda n, t: (0, 0))

    in_specs = [prev_spec, cur_spec, next_spec, w_spec, b_spec]
    args = [x, x, x, w_g, b_row]
    if apply_bn:
        in_specs += [pl.BlockSpec((1, cin), lambda n, t: (0, 0)),
                     pl.BlockSpec((1, cin), lambda n, t: (0, 0))]
        args += [scale.reshape(1, cin).astype(jnp.float32),
                 shift.reshape(1, cin).astype(jnp.float32)]

    y_shape = jax.ShapeDtypeStruct((N, H, W, cout), out_dtype)
    y_spec = pl.BlockSpec((None, tile_h, W, cout), lambda n, t: (n, t, 0, 0))

    if vmem_limit is None:
        vmem_limit = _vmem_limit_bytes()
    cp = pltpu.CompilerParams(dimension_semantics=("parallel", "parallel"),
                              vmem_limit_bytes=vmem_limit)

    if emit_stats:
        st_shape = jax.ShapeDtypeStruct((N, T, 2, cout), jnp.float32)
        st_spec = pl.BlockSpec((None, None, 2, cout), lambda n, t: (n, t, 0, 0))
        y, st = pl.pallas_call(
            kernel, out_shape=(y_shape, st_shape), grid=(N, T),
            in_specs=in_specs, out_specs=(y_spec, st_spec),
            compiler_params=cp)(*args)
        return y, st
    y = pl.pallas_call(
        kernel, out_shape=y_shape, grid=(N, T),
        in_specs=in_specs, out_specs=y_spec,
        compiler_params=cp)(*args)
    return y


# -----------------------------------------------------------------------------
# Glue: BN scale/shift from fused statistics
# -----------------------------------------------------------------------------
def _bn_scale_shift(stats, gamma, beta, count):
    """Training-mode BatchNorm2d params (biased var, eps=1e-5) from partial sums."""
    s = jnp.sum(stats[:, :, 0, :], axis=(0, 1))
    sq = jnp.sum(stats[:, :, 1, :], axis=(0, 1))
    mean = s / count
    var = jnp.maximum(sq / count - mean * mean, 0.0)
    inv = gamma / jnp.sqrt(var + EPS_BN)
    return inv, beta - mean * inv


# -----------------------------------------------------------------------------
# Model pieces (Cascade_Block, DC_layer, MICCAN) — all NHWC inside
# -----------------------------------------------------------------------------
def cascade_block(x_std, p, tile_h, vmem_limit):
    N, H, W, _ = x_std.shape
    count = float(N * H * W)

    y1, st1 = conv3x3_fused(x_std, p['w1'], p['b1'], tile_h=tile_h,
                            emit_stats=True, vmem_limit=vmem_limit)
    sc1, sh1 = _bn_scale_shift(st1, p['g1'], p['be1'], count)

    y2, st2 = conv3x3_fused(y1, p['w2'], p['b2'], tile_h=tile_h,
                            scale=sc1, shift=sh1, emit_stats=True,
                            vmem_limit=vmem_limit)
    sc2, sh2 = _bn_scale_shift(st2, p['g2'], p['be2'], count)

    y3, st3 = conv3x3_fused(y2, p['w3'], p['b3'], tile_h=tile_h,
                            scale=sc2, shift=sh2, emit_stats=True,
                            vmem_limit=vmem_limit)
    sc3, sh3 = _bn_scale_shift(st3, p['g3'], p['be3'], count)

    # Final conv: Cout=2; kept f32.
    y4 = conv3x3_fused(y3, p['w4'], p['b4'], tile_h=tile_h,
                       scale=sc3, shift=sh3, emit_stats=False,
                       out_dtype=jnp.float32, vmem_limit=vmem_limit)
    return y4


# TODO(synk): fft2c/ifft2c are not defined in the reference file; assumed to be the
# orthonormal 2-D FFT over (H, W) treating the last dim of size 2 as (real, imag),
# as in the original MICCAN repo. No Pallas FFT — uses XLA's FFT.
def fft2c(x_nhw2):
    c = x_nhw2[..., 0] + 1j * x_nhw2[..., 1]
    k = jnp.fft.fft2(c, axes=(1, 2), norm='ortho')
    return jnp.stack([jnp.real(k), jnp.imag(k)], axis=-1).astype(x_nhw2.dtype)


def ifft2c(x_nhw2):
    c = x_nhw2[..., 0] + 1j * x_nhw2[..., 1]
    im = jnp.fft.ifft2(c, axes=(1, 2), norm='ortho')
    return jnp.stack([jnp.real(im), jnp.imag(im)], axis=-1).astype(x_nhw2.dtype)


def dc_layer_nhwc(mask, x_rec, x_under):
    x_tran = fft2c(x_rec)
    output = (1.0 - mask) * x_tran + x_under
    return ifft2c(output)


def miccan_forward(params_list, image, kspace, mask, tile_h=None):
    """MICCAN(block='Cas').forward — image/kspace/mask: NCHW float32, C=2."""
    # Single NCHW->NHWC transpose at the edge; everything inside stays NHWC.
    image = jnp.transpose(image, (0, 2, 3, 1))
    kspace = jnp.transpose(kspace, (0, 2, 3, 1))
    mask = jnp.transpose(mask, (0, 2, 3, 1))
    N, H, W, C = image.shape
    vmem_limit = _vmem_limit_bytes()
    if tile_h is None:
        tile_h = _pick_tile_h(H, W, vmem_limit)
    assert H % tile_h == 0

    for p in params_list:
        mean = jnp.mean(image, axis=(1, 2, 3), keepdims=True)
        std = jnp.std(image, axis=(1, 2, 3), ddof=1, keepdims=True)  # torch.std unbiased
        image_n = (image - mean) / std
        y = cascade_block(image_n, p, tile_h, vmem_limit)
        x_cnn = (y + image_n) * std + mean          # fused residual + un-standardize
        image = dc_layer_nhwc(mask, x_cnn, kspace)
    return jnp.transpose(image, (0, 3, 1, 2))


# -----------------------------------------------------------------------------
# Deterministic parameter init (matches __init__: normal_(w, 0, 0.02), bias=0,
# BN weight=1, bias=0)
# -----------------------------------------------------------------------------
def init_params(key, n_layer, in_ch, out_ch):
    def w(k, cin, cout):
        return 0.02 * jax.random.normal(k, (3, 3, cin, cout), jnp.float32)

    params = []
    for i in range(n_layer):
        ks = jax.random.split(jax.random.fold_in(key, i), 4)
        params.append({
            'w1': w(ks[0], in_ch, 64), 'b1': jnp.zeros((64,), jnp.float32),
            'g1': jnp.ones((64,), jnp.float32), 'be1': jnp.zeros((64,), jnp.float32),
            'w2': w(ks[1], 64, 64), 'b2': jnp.zeros((64,), jnp.float32),
            'g2': jnp.ones((64,), jnp.float32), 'be2': jnp.zeros((64,), jnp.float32),
            'w3': w(ks[2], 64, 64), 'b3': jnp.zeros((64,), jnp.float32),
            'g3': jnp.ones((64,), jnp.float32), 'be3': jnp.zeros((64,), jnp.float32),
            'w4': w(ks[3], 64, out_ch), 'b4': jnp.zeros((out_ch,), jnp.float32),
        })
    return params


if __name__ == "__main__":
    key = jax.random.PRNGKey(0)
    k_img, k_ksp, k_msk, k_par = jax.random.split(key, 4)

    N, C, H, W = 2, 2, 16, 16            # C = 2 -> (real, imag) complex image
    image = jax.random.normal(k_img, (N, C, H, W), jnp.float32)
    kspace = jax.random.normal(k_ksp, (N, C, H, W), jnp.float32)
    mask2d = (jax.random.uniform(k_msk, (N, 1, H, W)) > 0.5).astype(jnp.float32)
    mask = jnp.broadcast_to(mask2d, (N, C, H, W))

    params = init_params(k_par, n_layer=2, in_ch=C, out_ch=C)

    # tile_h=8 -> 2 row tiles per image: exercises first/last-tile halo handling.
    fwd = jax.jit(lambda p, i, k, m: miccan_forward(p, i, k, m, tile_h=8))
    out = jax.block_until_ready(fwd(params, image, kspace, mask))
    assert out.shape == (N, C, H, W) and out.dtype == jnp.float32
    print("KERNEL_OK")
</pallas_src>

<mosaic_0001>
module attributes {stable_mosaic.version = 11 : i64} {
  func.func @kernel(%arg0: i32, %arg1: i32, %arg2: memref<1x1x16x64xbf16, #tpu.memory_space<vmem>>, %arg3: memref<1x8x16x64xbf16, #tpu.memory_space<vmem>>, %arg4: memref<1x1x16x64xbf16, #tpu.memory_space<vmem>>, %arg5: memref<3x192x64xbf16, #tpu.memory_space<vmem>>, %arg6: memref<1x64xf32, #tpu.memory_space<vmem>>, %arg7: memref<1x64xf32, #tpu.memory_space<vmem>>, %arg8: memref<1x64xf32, #tpu.memory_space<vmem>>, %arg9: memref<1x8x16x64xbf16, #tpu.memory_space<vmem>>, %arg10: memref<1x1x2x64xf32, #tpu.memory_space<vmem>>) attributes {dimension_semantics = [#tpu.dimension_semantics<parallel>, #tpu.dimension_semantics<parallel>], iteration_bounds = array<i64: 2, 2>, scalar_prefetch = 0 : i64, scratch_operands = 0 : i64, tpu.core_type = #tpu.core_type<tc>, window_params = [{transform_indices = @transform_0, window_bounds = array<i64: 1, 1, 16, 64>}, {transform_indices = @transform_1, window_bounds = array<i64: 1, 8, 16, 64>}, {transform_indices = @transform_2, window_bounds = array<i64: 1, 1, 16, 64>}, {pipeline_mode = #tpu.pipeline_mode<synchronous>, transform_indices = @transform_3, window_bounds = array<i64: 3, 192, 64>}, {pipeline_mode = #tpu.pipeline_mode<synchronous>, transform_indices = @transform_4, window_bounds = array<i64: 1, 64>}, {pipeline_mode = #tpu.pipeline_mode<synchronous>, transform_indices = @transform_5, window_bounds = array<i64: 1, 64>}, {pipeline_mode = #tpu.pipeline_mode<synchronous>, transform_indices = @transform_6, window_bounds = array<i64: 1, 64>}, {transform_indices = @transform_7, window_bounds = array<i64: 1, 8, 16, 64>}, {transform_indices = @transform_8, window_bounds = array<i64: 1, 1, 2, 64>}]} {
    %c0 = arith.constant 0 : index
    %c0_0 = arith.constant 0 : index
    %0 = vector.load %arg7[%c0, %c0_0] : memref<1x64xf32, #tpu.memory_space<vmem>>, vector<1x64xf32>
    %1 = vector.shape_cast %0 : vector<1x64xf32> to vector<1x1x64xf32>
    %c0_1 = arith.constant 0 : index
    %c0_2 = arith.constant 0 : index
    %2 = vector.load %arg8[%c0_1, %c0_2] : memref<1x64xf32, #tpu.memory_space<vmem>>, vector<1x64xf32>
    %3 = vector.shape_cast %2 : vector<1x64xf32> to vector<1x1x64xf32>
    %c0_3 = arith.constant 0 : index
    %c0_4 = arith.constant 0 : index
    %c0_5 = arith.constant 0 : index
    %c0_6 = arith.constant 0 : index
    %4 = vector.load %arg3[%c0_3, %c0_4, %c0_5, %c0_6] : memref<1x8x16x64xbf16, #tpu.memory_space<vmem>>, vector<1x8x16x64xbf16>
    %5 = vector.shape_cast %4 : vector<1x8x16x64xbf16> to vector<8x16x64xbf16>
    %6 = arith.extf %5 : vector<8x16x64xbf16> to vector<8x16x64xf32>
    %7 = vector.broadcast %1 : vector<1x1x64xf32> to vector<8x16x64xf32>
    %8 = arith.mulf %6, %7 : vector<8x16x64xf32>
    %9 = vector.broadcast %3 : vector<1x1x64xf32> to vector<8x16x64xf32>
    %10 = arith.addf %8, %9 : vector<8x16x64xf32>
    %cst = arith.constant 0.000000e+00 : f32
    %11 = vector.broadcast %cst : f32 to vector<8x16x64xf32>
    %12 = arith.maximumf %10, %11 : vector<8x16x64xf32>
    %13 = arith.truncf %12 : vector<8x16x64xf32> to vector<8x16x64xbf16>
    %c0_7 = arith.constant 0 : index
    %c0_8 = arith.constant 0 : index
    %c0_9 = arith.constant 0 : index
    %c0_10 = arith.constant 0 : index
    %14 = vector.load %arg2[%c0_7, %c0_8, %c0_9, %c0_10] : memref<1x1x16x64xbf16, #tpu.memory_space<vmem>>, vector<1x1x16x64xbf16>
    %15 = vector.shape_cast %14 : vector<1x1x16x64xbf16> to vector<1x16x64xbf16>
    %16 = arith.extf %15 : vector<1x16x64xbf16> to vector<1x16x64xf32>
    %17 = vector.broadcast %1 : vector<1x1x64xf32> to vector<1x16x64xf32>
    %18 = arith.mulf %16, %17 : vector<1x16x64xf32>
    %19 = vector.broadcast %3 : vector<1x1x64xf32> to vector<1x16x64xf32>
    %20 = arith.addf %18, %19 : vector<1x16x64xf32>
    %cst_11 = arith.constant 0.000000e+00 : f32
    %21 = vector.broadcast %cst_11 : f32 to vector<1x16x64xf32>
    %22 = arith.maximumf %20, %21 : vector<1x16x64xf32>
    %23 = arith.truncf %22 : vector<1x16x64xf32> to vector<1x16x64xbf16>
    %c0_12 = arith.constant 0 : index
    %c0_13 = arith.constant 0 : index
    %c0_14 = arith.constant 0 : index
    %c0_15 = arith.constant 0 : index
    %24 = vector.load %arg4[%c0_12, %c0_13, %c0_14, %c0_15] : memref<1x1x16x64xbf16, #tpu.memory_space<vmem>>, vector<1x1x16x64xbf16>
    %25 = vector.shape_cast %24 : vector<1x1x16x64xbf16> to vector<1x16x64xbf16>
    %26 = arith.extf %25 : vector<1x16x64xbf16> to vector<1x16x64xf32>
    %27 = vector.broadcast %1 : vector<1x1x64xf32> to vector<1x16x64xf32>
    %28 = arith.mulf %26, %27 : vector<1x16x64xf32>
    %29 = vector.broadcast %3 : vector<1x1x64xf32> to vector<1x16x64xf32>
    %30 = arith.addf %28, %29 : vector<1x16x64xf32>
    %cst_16 = arith.constant 0.000000e+00 : f32
    %31 = vector.broadcast %cst_16 : f32 to vector<1x16x64xf32>
    %32 = arith.maximumf %30, %31 : vector<1x16x64xf32>
    %33 = arith.truncf %32 : vector<1x16x64xf32> to vector<1x16x64xbf16>
    %c0_i32 = arith.constant 0 : i32
    %34 = arith.cmpi sgt, %arg1, %c0_i32 : i32
    %cst_17 = arith.constant 0.000000e+00 : bf16
    %35 = vector.broadcast %cst_17 : bf16 to vector<1x16x64xbf16>
    %36 = arith.select %34, %23, %35 : vector<1x16x64xbf16>
    %c1_i32 = arith.constant 1 : i32
    %37 = arith.cmpi slt, %arg1, %c1_i32 : i32
    %cst_18 = arith.constant 0.000000e+00 : bf16
    %38 = vector.broadcast %cst_18 : bf16 to vector<1x16x64xbf16>
    %39 = arith.select %37, %33, %38 : vector<1x16x64xbf16>
    %40 = tpu.concatenate %36, %13, %39 in 0 : vector<1x16x64xbf16>, vector<8x16x64xbf16>, vector<1x16x64xbf16> -> vector<10x16x64xbf16>
    %cst_19 = arith.constant 0.000000e+00 : bf16
    %41 = vector.broadcast %cst_19 : bf16 to vector<10x1x64xbf16>
    %42 = tpu.concatenate %41, %40, %41 in 1 : vector<10x1x64xbf16>, vector<10x16x64xbf16>, vector<10x1x64xbf16> -> vector<10x18x64xbf16>
    %cst_20 = arith.constant 0.000000e+00 : f32
    %43 = vector.broadcast %cst_20 : f32 to vector<128x64xf32>
    %44 = vector.extract_strided_slice %42 {offsets = [0, 0, 0], sizes = [8, 16, 64], strides = [1, 1, 1]} : vector<10x18x64xbf16> to vector<8x16x64xbf16>
    %45 = vector.extract_strided_slice %42 {offsets = [0, 1, 0], sizes = [8, 16, 64], strides = [1, 1, 1]} : vector<10x18x64xbf16> to vector<8x16x64xbf16>
    %46 = vector.extract_strided_slice %42 {offsets = [0, 2, 0], sizes = [8, 16, 64], strides = [1, 1, 1]} : vector<10x18x64xbf16> to vector<8x16x64xbf16>
    %47 = tpu.concatenate %44, %45, %46 in 2 : vector<8x16x64xbf16>, vector<8x16x64xbf16>, vector<8x16x64xbf16> -> vector<8x16x192xbf16>
    %48 = vector.shape_cast %47 : vector<8x16x192xbf16> to vector<128x192xbf16>
    %c0_21 = arith.constant 0 : index
    %c0_22 = arith.constant 0 : index
    %c0_23 = arith.constant 0 : index
    %49 = vector.load %arg5[%c0_21, %c0_22, %c0_23] : memref<3x192x64xbf16, #tpu.memory_space<vmem>>, vector<1x192x64xbf16>
    %50 = vector.shape_cast %49 : vector<1x192x64xbf16> to vector<192x64xbf16>
    %cst_24 = arith.constant dense<0.000000e+00> : vector<128x64xf32>
    %51 = tpu.matmul %48, %50, %cst_24 {dimension_numbers = #tpu.dot_dimension_numbers<[1], [0], [0], [1], [0, 0, 1, 1], [], []>} : vector<128x192xbf16>, vector<192x64xbf16>, vector<128x64xf32> -> vector<128x64xf32>
    %52 = arith.addf %43, %51 : vector<128x64xf32>
    %53 = vector.extract_strided_slice %42 {offsets = [1, 0, 0], sizes = [8, 16, 64], strides = [1, 1, 1]} : vector<10x18x64xbf16> to vector<8x16x64xbf16>
    %54 = vector.extract_strided_slice %42 {offsets = [1, 1, 0], sizes = [8, 16, 64], strides = [1, 1, 1]} : vector<10x18x64xbf16> to vector<8x16x64xbf16>
    %55 = vector.extract_strided_slice %42 {offsets = [1, 2, 0], sizes = [8, 16, 64], strides = [1, 1, 1]} : vector<10x18x64xbf16> to vector<8x16x64xbf16>
    %56 = tpu.concatenate %53, %54, %55 in 2 : vector<8x16x64xbf16>, vector<8x16x64xbf16>, vector<8x16x64xbf16> -> vector<8x16x192xbf16>
    %57 = vector.shape_cast %56 : vector<8x16x192xbf16> to vector<128x192xbf16>
    %c1 = arith.constant 1 : index
    %c0_25 = arith.constant 0 : index
    %c0_26 = arith.constant 0 : index
    %58 = vector.load %arg5[%c1, %c0_25, %c0_26] : memref<3x192x64xbf16, #tpu.memory_space<vmem>>, vector<1x192x64xbf16>
    %59 = vector.shape_cast %58 : vector<1x192x64xbf16> to vector<192x64xbf16>
    %cst_27 = arith.constant dense<0.000000e+00> : vector<128x64xf32>
    %60 = tpu.matmul %57, %59, %cst_27 {dimension_numbers = #tpu.dot_dimension_numbers<[1], [0], [0], [1], [0, 0, 1, 1], [], []>} : vector<128x192xbf16>, vector<192x64xbf16>, vector<128x64xf32> -> vector<128x64xf32>
    %61 = arith.addf %52, %60 : vector<128x64xf32>
    %62 = vector.extract_strided_slice %42 {offsets = [2, 0, 0], sizes = [8, 16, 64], strides = [1, 1, 1]} : vector<10x18x64xbf16> to vector<8x16x64xbf16>
    %63 = vector.extract_strided_slice %42 {offsets = [2, 1, 0], sizes = [8, 16, 64], strides = [1, 1, 1]} : vector<10x18x64xbf16> to vector<8x16x64xbf16>
    %64 = vector.extract_strided_slice %42 {offsets = [2, 2, 0], sizes = [8, 16, 64], strides = [1, 1, 1]} : vector<10x18x64xbf16> to vector<8x16x64xbf16>
    %65 = tpu.concatenate %62, %63, %64 in 2 : vector<8x16x64xbf16>, vector<8x16x64xbf16>, vector<8x16x64xbf16> -> vector<8x16x192xbf16>
    %66 = vector.shape_cast %65 : vector<8x16x192xbf16> to vector<128x192xbf16>
    %c2 = arith.constant 2 : index
    %c0_28 = arith.constant 0 : index
    %c0_29 = arith.constant 0 : index
    %67 = vector.load %arg5[%c2, %c0_28, %c0_29] : memref<3x192x64xbf16, #tpu.memory_space<vmem>>, vector<1x192x64xbf16>
    %68 = vector.shape_cast %67 : vector<1x192x64xbf16> to vector<192x64xbf16>
    %cst_30 = arith.constant dense<0.000000e+00> : vector<128x64xf32>
    %69 = tpu.matmul %66, %68, %cst_30 {dimension_numbers = #tpu.dot_dimension_numbers<[1], [0], [0], [1], [0, 0, 1, 1], [], []>} : vector<128x192xbf16>, vector<192x64xbf16>, vector<128x64xf32> -> vector<128x64xf32>
    %70 = arith.addf %61, %69 : vector<128x64xf32>
    %c0_31 = arith.constant 0 : index
    %c0_32 = arith.constant 0 : index
    %71 = vector.load %arg6[%c0_31, %c0_32] : memref<1x64xf32, #tpu.memory_space<vmem>>, vector<1x64xf32>
    %72 = vector.broadcast %71 : vector<1x64xf32> to vector<128x64xf32>
    %73 = arith.addf %70, %72 : vector<128x64xf32>
    %74 = vector.shape_cast %73 : vector<128x64xf32> to vector<8x16x64xf32>
    %75 = arith.truncf %74 : vector<8x16x64xf32> to vector<8x16x64xbf16>
    %c0_33 = arith.constant 0 : index
    %c0_34 = arith.constant 0 : index
    %c0_35 = arith.constant 0 : index
    %c0_36 = arith.constant 0 : index
    %76 = vector.load %arg9[%c0_33, %c0_34, %c0_35, %c0_36] : memref<1x8x16x64xbf16, #tpu.memory_space<vmem>>, vector<1x8x16x64xbf16>
    %77 = vector.shape_cast %76 : vector<1x8x16x64xbf16> to vector<8x16x64xbf16>
    %78 = vector.shape_cast %75 : vector<8x16x64xbf16> to vector<1x8x16x64xbf16>
    tpu.vector_store %arg9[%c0_33, %c0_34, %c0_35, %c0_36], %78 {strides = array<i32>} : memref<1x8x16x64xbf16, #tpu.memory_space<vmem>>, vector<1x8x16x64xbf16>,
    %cst_37 = arith.constant dense<0.000000e+00> : vector<64xf32>
    %79 = vector.multi_reduction <add>, %73, %cst_37 [0] : vector<128x64xf32> to vector<64xf32>
    %80 = vector.shape_cast %79 : vector<64xf32> to vector<1x64xf32>
    %c0_38 = arith.constant 0 : index
    %c0_39 = arith.constant 0 : index
    %c0_40 = arith.constant 0 : index
    %c0_41 = arith.constant 0 : index
    %81 = vector.load %arg10[%c0_38, %c0_39, %c0_40, %c0_41] : memref<1x1x2x64xf32, #tpu.memory_space<vmem>>, vector<1x1x1x64xf32>
    %82 = vector.shape_cast %81 : vector<1x1x1x64xf32> to vector<1x64xf32>
    %83 = vector.shape_cast %80 : vector<1x64xf32> to vector<1x1x1x64xf32>
    tpu.vector_store %arg10[%c0_38, %c0_39, %c0_40, %c0_41], %83 {strides = array<i32>} : memref<1x1x2x64xf32, #tpu.memory_space<vmem>>, vector<1x1x1x64xf32>,
    %84 = arith.mulf %73, %73 : vector<128x64xf32>
    %cst_42 = arith.constant dense<0.000000e+00> : vector<64xf32>
    %85 = vector.multi_reduction <add>, %84, %cst_42 [0] : vector<128x64xf32> to vector<64xf32>
    %86 = vector.shape_cast %85 : vector<64xf32> to vector<1x64xf32>
    %c0_43 = arith.constant 0 : index
    %c0_44 = arith.constant 0 : index
    %c1_45 = arith.constant 1 : index
    %c0_46 = arith.constant 0 : index
    %87 = vector.load %arg10[%c0_43, %c0_44, %c1_45, %c0_46] : memref<1x1x2x64xf32, #tpu.memory_space<vmem>>, vector<1x1x1x64xf32>
    %88 = vector.shape_cast %87 : vector<1x1x1x64xf32> to vector<1x64xf32>
    %89 = vector.shape_cast %86 : vector<1x64xf32> to vector<1x1x1x64xf32>
    tpu.vector_store %arg10[%c0_43, %c0_44, %c1_45, %c0_46], %89 {strides = array<i32>} : memref<1x1x2x64xf32, #tpu.memory_space<vmem>>, vector<1x1x1x64xf32>,
    return
  }
  func.func @transform_0(%arg0: i32, %arg1: i32) -> (i32, i32, i32, i32) {
    %c8_i32 = arith.constant 8 : i32
    %0 = arith.muli %arg1, %c8_i32 : i32
    %c1_i32 = arith.constant 1 : i32
    %1 = arith.subi %0, %c1_i32 : i32
    %c0_i32 = arith.constant 0 : i32
    %2 = arith.maxsi %1, %c0_i32 : i32
    %c0_i32_0 = arith.constant 0 : i32
    %c0_i32_1 = arith.constant 0 : i32
    %c0_i32_2 = arith.constant 0 : i32
    return %arg0, %2, %c0_i32_0, %c0_i32_1 : i32, i32, i32, i32
  }
  func.func @transform_1(%arg0: i32, %arg1: i32) -> (i32, i32, i32, i32) {
    %c0_i32 = arith.constant 0 : i32
    %c0_i32_0 = arith.constant 0 : i32
    %c0_i32_1 = arith.constant 0 : i32
    return %arg0, %arg1, %c0_i32, %c0_i32_0 : i32, i32, i32, i32
  }
  func.func @transform_2(%arg0: i32, %arg1: i32) -> (i32, i32, i32, i32) {
    %c1_i32 = arith.constant 1 : i32
    %0 = arith.addi %arg1, %c1_i32 : i32
    %c8_i32 = arith.constant 8 : i32
    %1 = arith.muli %0, %c8_i32 : i32
    %c15_i32 = arith.constant 15 : i32
    %2 = arith.minsi %1, %c15_i32 : i32
    %c0_i32 = arith.constant 0 : i32
    %c0_i32_0 = arith.constant 0 : i32
    %c0_i32_1 = arith.constant 0 : i32
    return %arg0, %2, %c0_i32, %c0_i32_0 : i32, i32, i32, i32
  }
  func.func @transform_3(%arg0: i32, %arg1: i32) -> (i32, i32, i32) {
    %c0_i32 = arith.constant 0 : i32
    %c0_i32_0 = arith.constant 0 : i32
    %c0_i32_1 = arith.constant 0 : i32
    %c0_i32_2 = arith.constant 0 : i32
    return %c0_i32, %c0_i32_0, %c0_i32_1 : i32, i32, i32
  }
  func.func @transform_4(%arg0: i32, %arg1: i32) -> (i32, i32) {
    %c0_i32 = arith.constant 0 : i32
    %c0_i32_0 = arith.constant 0 : i32
    %c0_i32_1 = arith.constant 0 : i32
    return %c0_i32, %c0_i32_0 : i32, i32
  }
  func.func @transform_5(%arg0: i32, %arg1: i32) -> (i32, i32) {
    %c0_i32 = arith.constant 0 : i32
    %c0_i32_0 = arith.constant 0 : i32
    %c0_i32_1 = arith.constant 0 : i32
    return %c0_i32, %c0_i32_0 : i32, i32
  }
  func.func @transform_6(%arg0: i32, %arg1: i32) -> (i32, i32) {
    %c0_i32 = arith.constant 0 : i32
    %c0_i32_0 = arith.constant 0 : i32
    %c0_i32_1 = arith.constant 0 : i32
    return %c0_i32, %c0_i32_0 : i32, i32
  }
  func.func @transform_7(%arg0: i32, %arg1: i32) -> (i32, i32, i32, i32) {
    %c0_i32 = arith.constant 0 : i32
    %c0_i32_0 = arith.constant 0 : i32
    %c0_i32_1 = arith.constant 0 : i32
    return %arg0, %arg1, %c0_i32, %c0_i32_0 : i32, i32, i32, i32
  }
  func.func @transform_8(%arg0: i32, %arg1: i32) -> (i32, i32, i32, i32) {
    %c0_i32 = arith.constant 0 : i32
    %c0_i32_0 = arith.constant 0 : i32
    %c0_i32_1 = arith.constant 0 : i32
    return %arg0, %arg1, %c0_i32, %c0_i32_0 : i32, i32, i32, i32
  }
}

module attributes {stable_mosaic.version = 11 : i64} {
  func.func @kernel(%arg0: i32, %arg1: i32, %arg2: memref<1x1x16x2xf32, #tpu.memory_space<vmem>>, %arg3: memref<1x8x16x2xf32, #tpu.memory_space<vmem>>, %arg4: memref<1x1x16x2xf32, #tpu.memory_space<vmem>>, %arg5: memref<1x18x64xbf16, #tpu.memory_space<vmem>>, %arg6: memref<1x64xf32, #tpu.memory_space<vmem>>, %arg7: memref<1x8x16x64xbf16, #tpu.memory_space<vmem>>, %arg8: memref<1x1x2x64xf32, #tpu.memory_space<vmem>>) attributes {dimension_semantics = [#tpu.dimension_semantics<parallel>, #tpu.dimension_semantics<parallel>], iteration_bounds = array<i64: 2, 2>, scalar_prefetch = 0 : i64, scratch_operands = 0 : i64, tpu.core_type = #tpu.core_type<tc>, window_params = [{transform_indices = @transform_0, window_bounds = array<i64: 1, 1, 16, 2>}, {transform_indices = @transform_1, window_bounds = array<i64: 1, 8, 16, 2>}, {transform_indices = @transform_2, window_bounds = array<i64: 1, 1, 16, 2>}, {pipeline_mode = #tpu.pipeline_mode<synchronous>, transform_indices = @transform_3, window_bounds = array<i64: 1, 18, 64>}, {pipeline_mode = #tpu.pipeline_mode<synchronous>, transform_indices = @transform_4, window_bounds = array<i64: 1, 64>}, {transform_indices = @transform_5, window_bounds = array<i64: 1, 8, 16, 64>}, {transform_indices = @transform_6, window_bounds = array<i64: 1, 1, 2, 64>}]} {
    %c0 = arith.constant 0 : index
    %c0_0 = arith.constant 0 : index
    %c0_1 = arith.constant 0 : index
    %c0_2 = arith.constant 0 : index
    %0 = vector.load %arg3[%c0, %c0_0, %c0_1, %c0_2] : memref<1x8x16x2xf32, #tpu.memory_space<vmem>>, vector<1x8x16x2xf32>
    %1 = vector.shape_cast %0 : vector<1x8x16x2xf32> to vector<8x16x2xf32>
    %2 = arith.truncf %1 : vector<8x16x2xf32> to vector<8x16x2xbf16>
    %c0_3 = arith.constant 0 : index
    %c0_4 = arith.constant 0 : index
    %c0_5 = arith.constant 0 : index
    %c0_6 = arith.constant 0 : index
    %3 = vector.load %arg2[%c0_3, %c0_4, %c0_5, %c0_6] : memref<1x1x16x2xf32, #tpu.memory_space<vmem>>, vector<1x1x16x2xf32>
    %4 = vector.shape_cast %3 : vector<1x1x16x2xf32> to vector<1x16x2xf32>
    %5 = arith.truncf %4 : vector<1x16x2xf32> to vector<1x16x2xbf16>
    %c0_7 = arith.constant 0 : index
    %c0_8 = arith.constant 0 : index
    %c0_9 = arith.constant 0 : index
    %c0_10 = arith.constant 0 : index
    %6 = vector.load %arg4[%c0_7, %c0_8, %c0_9, %c0_10] : memref<1x1x16x2xf32, #tpu.memory_space<vmem>>, vector<1x1x16x2xf32>
    %7 = vector.shape_cast %6 : vector<1x1x16x2xf32> to vector<1x16x2xf32>
    %8 = arith.truncf %7 : vector<1x16x2xf32> to vector<1x16x2xbf16>
    %c0_i32 = arith.constant 0 : i32
    %9 = arith.cmpi sgt, %arg1, %c0_i32 : i32
    %cst = arith.constant 0.000000e+00 : bf16
    %10 = vector.broadcast %cst : bf16 to vector<1x16x2xbf16>
    %11 = arith.select %9, %5, %10 : vector<1x16x2xbf16>
    %c1_i32 = arith.constant 1 : i32
    %12 = arith.cmpi slt, %arg1, %c1_i32 : i32
    %cst_11 = arith.constant 0.000000e+00 : bf16
    %13 = vector.broadcast %cst_11 : bf16 to vector<1x16x2xbf16>
    %14 = arith.select %12, %8, %13 : vector<1x16x2xbf16>
    %15 = tpu.concatenate %11, %2, %14 in 0 : vector<1x16x2xbf16>, vector<8x16x2xbf16>, vector<1x16x2xbf16> -> vector<10x16x2xbf16>
    %cst_12 = arith.constant 0.000000e+00 : bf16
    %16 = vector.broadcast %cst_12 : bf16 to vector<10x1x2xbf16>
    %17 = tpu.concatenate %16, %15, %16 in 1 : vector<10x1x2xbf16>, vector<10x16x2xbf16>, vector<10x1x2xbf16> -> vector<10x18x2xbf16>
    %cst_13 = arith.constant 0.000000e+00 : f32
    %18 = vector.broadcast %cst_13 : f32 to vector<128x64xf32>
    %19 = vector.extract_strided_slice %17 {offsets = [0, 0, 0], sizes = [8, 16, 2], strides = [1, 1, 1]} : vector<10x18x2xbf16> to vector<8x16x2xbf16>
    %20 = vector.extract_strided_slice %17 {offsets = [0, 1, 0], sizes = [8, 16, 2], strides = [1, 1, 1]} : vector<10x18x2xbf16> to vector<8x16x2xbf16>
    %21 = vector.extract_strided_slice %17 {offsets = [0, 2, 0], sizes = [8, 16, 2], strides = [1, 1, 1]} : vector<10x18x2xbf16> to vector<8x16x2xbf16>
    %22 = vector.extract_strided_slice %17 {offsets = [1, 0, 0], sizes = [8, 16, 2], strides = [1, 1, 1]} : vector<10x18x2xbf16> to vector<8x16x2xbf16>
    %23 = vector.extract_strided_slice %17 {offsets = [1, 1, 0], sizes = [8, 16, 2], strides = [1, 1, 1]} : vector<10x18x2xbf16> to vector<8x16x2xbf16>
    %24 = vector.extract_strided_slice %17 {offsets = [1, 2, 0], sizes = [8, 16, 2], strides = [1, 1, 1]} : vector<10x18x2xbf16> to vector<8x16x2xbf16>
    %25 = vector.extract_strided_slice %17 {offsets = [2, 0, 0], sizes = [8, 16, 2], strides = [1, 1, 1]} : vector<10x18x2xbf16> to vector<8x16x2xbf16>
    %26 = vector.extract_strided_slice %17 {offsets = [2, 1, 0], sizes = [8, 16, 2], strides = [1, 1, 1]} : vector<10x18x2xbf16> to vector<8x16x2xbf16>
    %27 = vector.extract_strided_slice %17 {offsets = [2, 2, 0], sizes = [8, 16, 2], strides = [1, 1, 1]} : vector<10x18x2xbf16> to vector<8x16x2xbf16>
    %28 = tpu.concatenate %19, %20, %21, %22, %23, %24, %25, %26, %27 in 2 : vector<8x16x2xbf16>, vector<8x16x2xbf16>, vector<8x16x2xbf16>, vector<8x16x2xbf16>, vector<8x16x2xbf16>, vector<8x16x2xbf16>, vector<8x16x2xbf16>, vector<8x16x2xbf16>, vector<8x16x2xbf16> -> vector<8x16x18xbf16>
    %29 = vector.shape_cast %28 : vector<8x16x18xbf16> to vector<128x18xbf16>
    %c0_14 = arith.constant 0 : index
    %c0_15 = arith.constant 0 : index
    %c0_16 = arith.constant 0 : index
    %30 = vector.load %arg5[%c0_14, %c0_15, %c0_16] : memref<1x18x64xbf16, #tpu.memory_space<vmem>>, vector<1x18x64xbf16>
    %31 = vector.shape_cast %30 : vector<1x18x64xbf16> to vector<18x64xbf16>
    %cst_17 = arith.constant dense<0.000000e+00> : vector<128x64xf32>
    %32 = tpu.matmul %29, %31, %cst_17 {dimension_numbers = #tpu.dot_dimension_numbers<[1], [0], [0], [1], [0, 0, 1, 1], [], []>} : vector<128x18xbf16>, vector<18x64xbf16>, vector<128x64xf32> -> vector<128x64xf32>
    %33 = arith.addf %18, %32 : vector<128x64xf32>
    %c0_18 = arith.constant 0 : index
    %c0_19 = arith.constant 0 : index
    %34 = vector.load %arg6[%c0_18, %c0_19] : memref<1x64xf32, #tpu.memory_space<vmem>>, vector<1x64xf32>
    %35 = vector.broadcast %34 : vector<1x64xf32> to vector<128x64xf32>
    %36 = arith.addf %33, %35 : vector<128x64xf32>
    %37 = vector.shape_cast %36 : vector<128x64xf32> to vector<8x16x64xf32>
    %38 = arith.truncf %37 : vector<8x16x64xf32> to vector<8x16x64xbf16>
    %c0_20 = arith.constant 0 : index
    %c0_21 = arith.constant 0 : index
    %c0_22 = arith.constant 0 : index
    %c0_23 = arith.constant 0 : index
    %39 = vector.load %arg7[%c0_20, %c0_21, %c0_22, %c0_23] : memref<1x8x16x64xbf16, #tpu.memory_space<vmem>>, vector<1x8x16x64xbf16>
    %40 = vector.shape_cast %39 : vector<1x8x16x64xbf16> to vector<8x16x64xbf16>
    %41 = vector.shape_cast %38 : vector<8x16x64xbf16> to vector<1x8x16x64xbf16>
    tpu.vector_store %arg7[%c0_20, %c0_21, %c0_22, %c0_23], %41 {strides = array<i32>} : memref<1x8x16x64xbf16, #tpu.memory_space<vmem>>, vector<1x8x16x64xbf16>,
    %cst_24 = arith.constant dense<0.000000e+00> : vector<64xf32>
    %42 = vector.multi_reduction <add>, %36, %cst_24 [0] : vector<128x64xf32> to vector<64xf32>
    %43 = vector.shape_cast %42 : vector<64xf32> to vector<1x64xf32>
    %c0_25 = arith.constant 0 : index
    %c0_26 = arith.constant 0 : index
    %c0_27 = arith.constant 0 : index
    %c0_28 = arith.constant 0 : index
    %44 = vector.load %arg8[%c0_25, %c0_26, %c0_27, %c0_28] : memref<1x1x2x64xf32, #tpu.memory_space<vmem>>, vector<1x1x1x64xf32>
    %45 = vector.shape_cast %44 : vector<1x1x1x64xf32> to vector<1x64xf32>
    %46 = vector.shape_cast %43 : vector<1x64xf32> to vector<1x1x1x64xf32>
    tpu.vector_store %arg8[%c0_25, %c0_26, %c0_27, %c0_28], %46 {strides = array<i32>} : memref<1x1x2x64xf32, #tpu.memory_space<vmem>>, vector<1x1x1x64xf32>,
    %47 = arith.mulf %36, %36 : vector<128x64xf32>
    %cst_29 = arith.constant dense<0.000000e+00> : vector<64xf32>
    %48 = vector.multi_reduction <add>, %47, %cst_29 [0] : vector<128x64xf32> to vector<64xf32>
    %49 = vector.shape_cast %48 : vector<64xf32> to vector<1x64xf32>
    %c0_30 = arith.constant 0 : index
    %c0_31 = arith.constant 0 : index
    %c1 = arith.constant 1 : index
    %c0_32 = arith.constant 0 : index
    %50 = vector.load %arg8[%c0_30, %c0_31, %c1, %c0_32] : memref<1x1x2x64xf32, #tpu.memory_space<vmem>>, vector<1x1x1x64xf32>
    %51 = vector.shape_cast %50 : vector<1x1x1x64xf32> to vector<1x64xf32>
    %52 = vector.shape_cast %49 : vector<1x64xf32> to vector<1x1x1x64xf32>
    tpu.vector_store %arg8[%c0_30, %c0_31, %c1, %c0_32], %52 {strides = array<i32>} : memref<1x1x2x64xf32, #tpu.memory_space<vmem>>, vector<1x1x1x64xf32>,
    return
  }
  func.func @transform_0(%arg0: i32, %arg1: i32) -> (i32, i32, i32, i32) {
    %c8_i32 = arith.constant 8 : i32
    %0 = arith.muli %arg1, %c8_i32 : i32
    %c1_i32 = arith.constant 1 : i32
    %1 = arith.subi %0, %c1_i32 : i32
    %c0_i32 = arith.constant 0 : i32
    %2 = arith.maxsi %1, %c0_i32 : i32
    %c0_i32_0 = arith.constant 0 : i32
    %c0_i32_1 = arith.constant 0 : i32
    %c0_i32_2 = arith.constant 0 : i32
    return %arg0, %2, %c0_i32_0, %c0_i32_1 : i32, i32, i32, i32
  }
  func.func @transform_1(%arg0: i32, %arg1: i32) -> (i32, i32, i32, i32) {
    %c0_i32 = arith.constant 0 : i32
    %c0_i32_0 = arith.constant 0 : i32
    %c0_i32_1 = arith.constant 0 : i32
    return %arg0, %arg1, %c0_i32, %c0_i32_0 : i32, i32, i32, i32
  }
  func.func @transform_2(%arg0: i32, %arg1: i32) -> (i32, i32, i32, i32) {
    %c1_i32 = arith.constant 1 : i32
    %0 = arith.addi %arg1, %c1_i32 : i32
    %c8_i32 = arith.constant 8 : i32
    %1 = arith.muli %0, %c8_i32 : i32
    %c15_i32 = arith.constant 15 : i32
    %2 = arith.minsi %1, %c15_i32 : i32
    %c0_i32 = arith.constant 0 : i32
    %c0_i32_0 = arith.constant 0 : i32
    %c0_i32_1 = arith.constant 0 : i32
    return %arg0, %2, %c0_i32, %c0_i32_0 : i32, i32, i32, i32
  }
  func.func @transform_3(%arg0: i32, %arg1: i32) -> (i32, i32, i32) {
    %c0_i32 = arith.constant 0 : i32
    %c0_i32_0 = arith.constant 0 : i32
    %c0_i32_1 = arith.constant 0 : i32
    %c0_i32_2 = arith.constant 0 : i32
    return %c0_i32, %c0_i32_0, %c0_i32_1 : i32, i32, i32
  }
  func.func @transform_4(%arg0: i32, %arg1: i32) -> (i32, i32) {
    %c0_i32 = arith.constant 0 : i32
    %c0_i32_0 = arith.constant 0 : i32
    %c0_i32_1 = arith.constant 0 : i32
    return %c0_i32, %c0_i32_0 : i32, i32
  }
  func.func @transform_5(%arg0: i32, %arg1: i32) -> (i32, i32, i32, i32) {
    %c0_i32 = arith.constant 0 : i32
    %c0_i32_0 = arith.constant 0 : i32
    %c0_i32_1 = arith.constant 0 : i32
    return %arg0, %arg1, %c0_i32, %c0_i32_0 : i32, i32, i32, i32
  }
  func.func @transform_6(%arg0: i32, %arg1: i32) -> (i32, i32, i32, i32) {
    %c0_i32 = arith.constant 0 : i32
    %c0_i32_0 = arith.constant 0 : i32
    %c0_i32_1 = arith.constant 0 : i32
    return %arg0, %arg1, %c0_i32, %c0_i32_0 : i32, i32, i32, i32
  }
}

module attributes {stable_mosaic.version = 11 : i64} {
  func.func @kernel(%arg0: i32, %arg1: i32, %arg2: memref<1x1x16x64xbf16, #tpu.memory_space<vmem>>, %arg3: memref<1x8x16x64xbf16, #tpu.memory_space<vmem>>, %arg4: memref<1x1x16x64xbf16, #tpu.memory_space<vmem>>, %arg5: memref<3x192x2xbf16, #tpu.memory_space<vmem>>, %arg6: memref<1x2xf32, #tpu.memory_space<vmem>>, %arg7: memref<1x64xf32, #tpu.memory_space<vmem>>, %arg8: memref<1x64xf32, #tpu.memory_space<vmem>>, %arg9: memref<1x8x16x2xf32, #tpu.memory_space<vmem>>) attributes {dimension_semantics = [#tpu.dimension_semantics<parallel>, #tpu.dimension_semantics<parallel>], iteration_bounds = array<i64: 2, 2>, scalar_prefetch = 0 : i64, scratch_operands = 0 : i64, tpu.core_type = #tpu.core_type<tc>, window_params = [{transform_indices = @transform_0, window_bounds = array<i64: 1, 1, 16, 64>}, {transform_indices = @transform_1, window_bounds = array<i64: 1, 8, 16, 64>}, {transform_indices = @transform_2, window_bounds = array<i64: 1, 1, 16, 64>}, {pipeline_mode = #tpu.pipeline_mode<synchronous>, transform_indices = @transform_3, window_bounds = array<i64: 3, 192, 2>}, {pipeline_mode = #tpu.pipeline_mode<synchronous>, transform_indices = @transform_4, window_bounds = array<i64: 1, 2>}, {pipeline_mode = #tpu.pipeline_mode<synchronous>, transform_indices = @transform_5, window_bounds = array<i64: 1, 64>}, {pipeline_mode = #tpu.pipeline_mode<synchronous>, transform_indices = @transform_6, window_bounds = array<i64: 1, 64>}, {transform_indices = @transform_7, window_bounds = array<i64: 1, 8, 16, 2>}]} {
    %c0 = arith.constant 0 : index
    %c0_0 = arith.constant 0 : index
    %0 = vector.load %arg7[%c0, %c0_0] : memref<1x64xf32, #tpu.memory_space<vmem>>, vector<1x64xf32>
    %1 = vector.shape_cast %0 : vector<1x64xf32> to vector<1x1x64xf32>
    %c0_1 = arith.constant 0 : index
    %c0_2 = arith.constant 0 : index
    %2 = vector.load %arg8[%c0_1, %c0_2] : memref<1x64xf32, #tpu.memory_space<vmem>>, vector<1x64xf32>
    %3 = vector.shape_cast %2 : vector<1x64xf32> to vector<1x1x64xf32>
    %c0_3 = arith.constant 0 : index
    %c0_4 = arith.constant 0 : index
    %c0_5 = arith.constant 0 : index
    %c0_6 = arith.constant 0 : index
    %4 = vector.load %arg3[%c0_3, %c0_4, %c0_5, %c0_6] : memref<1x8x16x64xbf16, #tpu.memory_space<vmem>>, vector<1x8x16x64xbf16>
    %5 = vector.shape_cast %4 : vector<1x8x16x64xbf16> to vector<8x16x64xbf16>
    %6 = arith.extf %5 : vector<8x16x64xbf16> to vector<8x16x64xf32>
    %7 = vector.broadcast %1 : vector<1x1x64xf32> to vector<8x16x64xf32>
    %8 = arith.mulf %6, %7 : vector<8x16x64xf32>
    %9 = vector.broadcast %3 : vector<1x1x64xf32> to vector<8x16x64xf32>
    %10 = arith.addf %8, %9 : vector<8x16x64xf32>
    %cst = arith.constant 0.000000e+00 : f32
    %11 = vector.broadcast %cst : f32 to vector<8x16x64xf32>
    %12 = arith.maximumf %10, %11 : vector<8x16x64xf32>
    %13 = arith.truncf %12 : vector<8x16x64xf32> to vector<8x16x64xbf16>
    %c0_7 = arith.constant 0 : index
    %c0_8 = arith.constant 0 : index
    %c0_9 = arith.constant 0 : index
    %c0_10 = arith.constant 0 : index
    %14 = vector.load %arg2[%c0_7, %c0_8, %c0_9, %c0_10] : memref<1x1x16x64xbf16, #tpu.memory_space<vmem>>, vector<1x1x16x64xbf16>
    %15 = vector.shape_cast %14 : vector<1x1x16x64xbf16> to vector<1x16x64xbf16>
    %16 = arith.extf %15 : vector<1x16x64xbf16> to vector<1x16x64xf32>
    %17 = vector.broadcast %1 : vector<1x1x64xf32> to vector<1x16x64xf32>
    %18 = arith.mulf %16, %17 : vector<1x16x64xf32>
    %19 = vector.broadcast %3 : vector<1x1x64xf32> to vector<1x16x64xf32>
    %20 = arith.addf %18, %19 : vector<1x16x64xf32>
    %cst_11 = arith.constant 0.000000e+00 : f32
    %21 = vector.broadcast %cst_11 : f32 to vector<1x16x64xf32>
    %22 = arith.maximumf %20, %21 : vector<1x16x64xf32>
    %23 = arith.truncf %22 : vector<1x16x64xf32> to vector<1x16x64xbf16>
    %c0_12 = arith.constant 0 : index
    %c0_13 = arith.constant 0 : index
    %c0_14 = arith.constant 0 : index
    %c0_15 = arith.constant 0 : index
    %24 = vector.load %arg4[%c0_12, %c0_13, %c0_14, %c0_15] : memref<1x1x16x64xbf16, #tpu.memory_space<vmem>>, vector<1x1x16x64xbf16>
    %25 = vector.shape_cast %24 : vector<1x1x16x64xbf16> to vector<1x16x64xbf16>
    %26 = arith.extf %25 : vector<1x16x64xbf16> to vector<1x16x64xf32>
    %27 = vector.broadcast %1 : vector<1x1x64xf32> to vector<1x16x64xf32>
    %28 = arith.mulf %26, %27 : vector<1x16x64xf32>
    %29 = vector.broadcast %3 : vector<1x1x64xf32> to vector<1x16x64xf32>
    %30 = arith.addf %28, %29 : vector<1x16x64xf32>
    %cst_16 = arith.constant 0.000000e+00 : f32
    %31 = vector.broadcast %cst_16 : f32 to vector<1x16x64xf32>
    %32 = arith.maximumf %30, %31 : vector<1x16x64xf32>
    %33 = arith.truncf %32 : vector<1x16x64xf32> to vector<1x16x64xbf16>
    %c0_i32 = arith.constant 0 : i32
    %34 = arith.cmpi sgt, %arg1, %c0_i32 : i32
    %cst_17 = arith.constant 0.000000e+00 : bf16
    %35 = vector.broadcast %cst_17 : bf16 to vector<1x16x64xbf16>
    %36 = arith.select %34, %23, %35 : vector<1x16x64xbf16>
    %c1_i32 = arith.constant 1 : i32
    %37 = arith.cmpi slt, %arg1, %c1_i32 : i32
    %cst_18 = arith.constant 0.000000e+00 : bf16
    %38 = vector.broadcast %cst_18 : bf16 to vector<1x16x64xbf16>
    %39 = arith.select %37, %33, %38 : vector<1x16x64xbf16>
    %40 = tpu.concatenate %36, %13, %39 in 0 : vector<1x16x64xbf16>, vector<8x16x64xbf16>, vector<1x16x64xbf16> -> vector<10x16x64xbf16>
    %cst_19 = arith.constant 0.000000e+00 : bf16
    %41 = vector.broadcast %cst_19 : bf16 to vector<10x1x64xbf16>
    %42 = tpu.concatenate %41, %40, %41 in 1 : vector<10x1x64xbf16>, vector<10x16x64xbf16>, vector<10x1x64xbf16> -> vector<10x18x64xbf16>
    %cst_20 = arith.constant 0.000000e+00 : f32
    %43 = vector.broadcast %cst_20 : f32 to vector<128x2xf32>
    %44 = vector.extract_strided_slice %42 {offsets = [0, 0, 0], sizes = [8, 16, 64], strides = [1, 1, 1]} : vector<10x18x64xbf16> to vector<8x16x64xbf16>
    %45 = vector.extract_strided_slice %42 {offsets = [0, 1, 0], sizes = [8, 16, 64], strides = [1, 1, 1]} : vector<10x18x64xbf16> to vector<8x16x64xbf16>
    %46 = vector.extract_strided_slice %42 {offsets = [0, 2, 0], sizes = [8, 16, 64], strides = [1, 1, 1]} : vector<10x18x64xbf16> to vector<8x16x64xbf16>
    %47 = tpu.concatenate %44, %45, %46 in 2 : vector<8x16x64xbf16>, vector<8x16x64xbf16>, vector<8x16x64xbf16> -> vector<8x16x192xbf16>
    %48 = vector.shape_cast %47 : vector<8x16x192xbf16> to vector<128x192xbf16>
    %c0_21 = arith.constant 0 : index
    %c0_22 = arith.constant 0 : index
    %c0_23 = arith.constant 0 : index
    %49 = vector.load %arg5[%c0_21, %c0_22, %c0_23] : memref<3x192x2xbf16, #tpu.memory_space<vmem>>, vector<1x192x2xbf16>
    %50 = vector.shape_cast %49 : vector<1x192x2xbf16> to vector<192x2xbf16>
    %cst_24 = arith.constant dense<0.000000e+00> : vector<128x2xf32>
    %51 = tpu.matmul %48, %50, %cst_24 {dimension_numbers = #tpu.dot_dimension_numbers<[1], [0], [0], [1], [0, 0, 1, 1], [], []>} : vector<128x192xbf16>, vector<192x2xbf16>, vector<128x2xf32> -> vector<128x2xf32>
    %52 = arith.addf %43, %51 : vector<128x2xf32>
    %53 = vector.extract_strided_slice %42 {offsets = [1, 0, 0], sizes = [8, 16, 64], strides = [1, 1, 1]} : vector<10x18x64xbf16> to vector<8x16x64xbf16>
    %54 = vector.extract_strided_slice %42 {offsets = [1, 1, 0], sizes = [8, 16, 64], strides = [1, 1, 1]} : vector<10x18x64xbf16> to vector<8x16x64xbf16>
    %55 = vector.extract_strided_slice %42 {offsets = [1, 2, 0], sizes = [8, 16, 64], strides = [1, 1, 1]} : vector<10x18x64xbf16> to vector<8x16x64xbf16>
    %56 = tpu.concatenate %53, %54, %55 in 2 : vector<8x16x64xbf16>, vector<8x16x64xbf16>, vector<8x16x64xbf16> -> vector<8x16x192xbf16>
    %57 = vector.shape_cast %56 : vector<8x16x192xbf16> to vector<128x192xbf16>
    %c1 = arith.constant 1 : index
    %c0_25 = arith.constant 0 : index
    %c0_26 = arith.constant 0 : index
    %58 = vector.load %arg5[%c1, %c0_25, %c0_26] : memref<3x192x2xbf16, #tpu.memory_space<vmem>>, vector<1x192x2xbf16>
    %59 = vector.shape_cast %58 : vector<1x192x2xbf16> to vector<192x2xbf16>
    %cst_27 = arith.constant dense<0.000000e+00> : vector<128x2xf32>
    %60 = tpu.matmul %57, %59, %cst_27 {dimension_numbers = #tpu.dot_dimension_numbers<[1], [0], [0], [1], [0, 0, 1, 1], [], []>} : vector<128x192xbf16>, vector<192x2xbf16>, vector<128x2xf32> -> vector<128x2xf32>
    %61 = arith.addf %52, %60 : vector<128x2xf32>
    %62 = vector.extract_strided_slice %42 {offsets = [2, 0, 0], sizes = [8, 16, 64], strides = [1, 1, 1]} : vector<10x18x64xbf16> to vector<8x16x64xbf16>
    %63 = vector.extract_strided_slice %42 {offsets = [2, 1, 0], sizes = [8, 16, 64], strides = [1, 1, 1]} : vector<10x18x64xbf16> to vector<8x16x64xbf16>
    %64 = vector.extract_strided_slice %42 {offsets = [2, 2, 0], sizes = [8, 16, 64], strides = [1, 1, 1]} : vector<10x18x64xbf16> to vector<8x16x64xbf16>
    %65 = tpu.concatenate %62, %63, %64 in 2 : vector<8x16x64xbf16>, vector<8x16x64xbf16>, vector<8x16x64xbf16> -> vector<8x16x192xbf16>
    %66 = vector.shape_cast %65 : vector<8x16x192xbf16> to vector<128x192xbf16>
    %c2 = arith.constant 2 : index
    %c0_28 = arith.constant 0 : index
    %c0_29 = arith.constant 0 : index
    %67 = vector.load %arg5[%c2, %c0_28, %c0_29] : memref<3x192x2xbf16, #tpu.memory_space<vmem>>, vector<1x192x2xbf16>
    %68 = vector.shape_cast %67 : vector<1x192x2xbf16> to vector<192x2xbf16>
    %cst_30 = arith.constant dense<0.000000e+00> : vector<128x2xf32>
    %69 = tpu.matmul %66, %68, %cst_30 {dimension_numbers = #tpu.dot_dimension_numbers<[1], [0], [0], [1], [0, 0, 1, 1], [], []>} : vector<128x192xbf16>, vector<192x2xbf16>, vector<128x2xf32> -> vector<128x2xf32>
    %70 = arith.addf %61, %69 : vector<128x2xf32>
    %c0_31 = arith.constant 0 : index
    %c0_32 = arith.constant 0 : index
    %71 = vector.load %arg6[%c0_31, %c0_32] : memref<1x2xf32, #tpu.memory_space<vmem>>, vector<1x2xf32>
    %72 = vector.broadcast %71 : vector<1x2xf32> to vector<128x2xf32>
    %73 = arith.addf %70, %72 : vector<128x2xf32>
    %74 = vector.shape_cast %73 : vector<128x2xf32> to vector<8x16x2xf32>
    %c0_33 = arith.constant 0 : index
    %c0_34 = arith.constant 0 : index
    %c0_35 = arith.constant 0 : index
    %c0_36 = arith.constant 0 : index
    %75 = vector.load %arg9[%c0_33, %c0_34, %c0_35, %c0_36] : memref<1x8x16x2xf32, #tpu.memory_space<vmem>>, vector<1x8x16x2xf32>
    %76 = vector.shape_cast %75 : vector<1x8x16x2xf32> to vector<8x16x2xf32>
    %77 = vector.shape_cast %74 : vector<8x16x2xf32> to vector<1x8x16x2xf32>
    tpu.vector_store %arg9[%c0_33, %c0_34, %c0_35, %c0_36], %77 {strides = array<i32>} : memref<1x8x16x2xf32, #tpu.memory_space<vmem>>, vector<1x8x16x2xf32>,
    return
  }
  func.func @transform_0(%arg0: i32, %arg1: i32) -> (i32, i32, i32, i32) {
    %c8_i32 = arith.constant 8 : i32
    %0 = arith.muli %arg1, %c8_i32 : i32
    %c1_i32 = arith.constant 1 : i32
    %1 = arith.subi %0, %c1_i32 : i32
    %c0_i32 = arith.constant 0 : i32
    %2 = arith.maxsi %1, %c0_i32 : i32
    %c0_i32_0 = arith.constant 0 : i32
    %c0_i32_1 = arith.constant 0 : i32
    %c0_i32_2 = arith.constant 0 : i32
    return %arg0, %2, %c0_i32_0, %c0_i32_1 : i32, i32, i32, i32
  }
  func.func @transform_1(%arg0: i32, %arg1: i32) -> (i32, i32, i32, i32) {
    %c0_i32 = arith.constant 0 : i32
    %c0_i32_0 = arith.constant 0 : i32
    %c0_i32_1 = arith.constant 0 : i32
    return %arg0, %arg1, %c0_i32, %c0_i32_0 : i32, i32, i32, i32
  }
  func.func @transform_2(%arg0: i32, %arg1: i32) -> (i32, i32, i32, i32) {
    %c1_i32 = arith.constant 1 : i32
    %0 = arith.addi %arg1, %c1_i32 : i32
    %c8_i32 = arith.constant 8 : i32
    %1 = arith.muli %0, %c8_i32 : i32
    %c15_i32 = arith.constant 15 : i32
    %2 = arith.minsi %1, %c15_i32 : i32
    %c0_i32 = arith.constant 0 : i32
    %c0_i32_0 = arith.constant 0 : i32
    %c0_i32_1 = arith.constant 0 : i32
    return %arg0, %2, %c0_i32, %c0_i32_0 : i32, i32, i32, i32
  }
  func.func @transform_3(%arg0: i32, %arg1: i32) -> (i32, i32, i32) {
    %c0_i32 = arith.constant 0 : i32
    %c0_i32_0 = arith.constant 0 : i32
    %c0_i32_1 = arith.constant 0 : i32
    %c0_i32_2 = arith.constant 0 : i32
    return %c0_i32, %c0_i32_0, %c0_i32_1 : i32, i32, i32
  }
  func.func @transform_4(%arg0: i32, %arg1: i32) -> (i32, i32) {
    %c0_i32 = arith.constant 0 : i32
    %c0_i32_0 = arith.constant 0 : i32
    %c0_i32_1 = arith.constant 0 : i32
    return %c0_i32, %c0_i32_0 : i32, i32
  }
  func.func @transform_5(%arg0: i32, %arg1: i32) -> (i32, i32) {
    %c0_i32 = arith.constant 0 : i32
    %c0_i32_0 = arith.constant 0 : i32
    %c0_i32_1 = arith.constant 0 : i32
    return %c0_i32, %c0_i32_0 : i32, i32
  }
  func.func @transform_6(%arg0: i32, %arg1: i32) -> (i32, i32) {
    %c0_i32 = arith.constant 0 : i32
    %c0_i32_0 = arith.constant 0 : i32
    %c0_i32_1 = arith.constant 0 : i32
    return %c0_i32, %c0_i32_0 : i32, i32
  }
  func.func @transform_7(%arg0: i32, %arg1: i32) -> (i32, i32, i32, i32) {
    %c0_i32 = arith.constant 0 : i32
    %c0_i32_0 = arith.constant 0 : i32
    %c0_i32_1 = arith.constant 0 : i32
    return %arg0, %arg1, %c0_i32, %c0_i32_0 : i32, i32, i32, i32
  }
}

</mosaic_0001>

<bundles_post_ra>
// kernel: _lambda_.8
= control target key start
LH: loop header
LB: loop body
LE: loop exit
PB: predicated region body
PF: predicated region fallthrough
CT: control target
= control target key end

     0   :  { %s1791_s21 = smov 0   ;;  %s1793_s22 = smov 0   ;;  %s2368_s0 = inlined_call_operand.vmem [shape: f32[2,16,16,2], index: 0, kind: input, shape index: {}, may-alias: {0,1,2}]   ;;  %s2369_s1 = inlined_call_operand.vmem [shape: f32[2,16,16,2], index: 1, kind: input, shape index: {}, may-alias: {0,1,2}]   ;;  %s2370_s2 = inlined_call_operand.vmem [shape: f32[2,16,16,2], index: 2, kind: input, shape index: {}, may-alias: {0,1,2}]   ;;  %s2371_s3 = inlined_call_operand.vmem [shape: bf16[1,18,64], index: 3, kind: input, shape index: {}]   ;;  %s2372_s4 = inlined_call_operand.vmem [shape: f32[1,64], index: 4, kind: input, shape index: {}]   ;;  %s2373_s5 = inlined_call_operand.vmem [shape: bf16[2,16,16,64], index: 5, kind: output, shape index: {0}]   ;;  %s2374_s6 = inlined_call_operand.vmem [shape: f32[2,2,2,64], index: 6, kind: output, shape index: {1}]  }
   0x1   :  { %s1795_s23 = smov 0   ;;  %s1797_s24 = smov 0  }
   0x2   :  { %s1799_s25 = smov 0  }
   0x3 LB: > { %s26_s26 = sadd.s32 1, %s1738_s23  ;;  %s29_s27 = sadd.s32 1, %s1742_s24  ;;  %s1746_s25 = sphi %s1799_s25, %s17_s25   ;;  %s1742_s24 = sphi %s1797_s24, %s2383_s24   ;;  %s1738_s23 = sphi %s1795_s23, %s2382_s23   ;;  %s1734_s22 = sphi %s1793_s22, %s2381_s22   ;;  %s1730_s21 = sphi %s1791_s21, %s2380_s21  }
   0x4   : > { %p27_p0 = scmp.ge.s32.totalorder %s26_s26, 2  ;;  %p1541_p1 = scmp.ge.s32.totalorder %s1746_s25, 1 }
   0x5   : > { %p303_p2 = scmp.lt.s32.totalorder %s1746_s25, 5 }
   0x6   : > { %s2385_s26 = smov (%p27_p0, %s26_s26), 0  ;;  %s2387_s27 = smov (!%p27_p0, %s29_s27), %s1742_s24 }
   0x7   : > { %p304_p3 = pnand %p1541_p1, %p303_p2  ;;  %p31_p4 = scmp.ge.s32.totalorder %s2387_s27, 2 }
   0x8   : > { %s1824_s28 = sshll.u32 (!%p304_p3), %s1730_s21, 3  ;;  %p381_p5 = scmp.lt.s32.totalorder (!%p304_p3), %s1734_s22, 1  ;;  %vm572_vm0 = vcmask (!%p304_p3), 1040384   ;;  %vm573_vm1 = vsmask.f32 (!%p304_p3), 256  ;;  %vm724_vm4 = vcmask (!%p304_p3), 1046528  }
   0x9   : > { %s2389_s27 = smov (%p31_p4, %s2387_s27), 0  ;;  %307 = sbr.rel (%p304_p3) target bundleno = 514 (0x202), region = 40 }
   0xa   : > { %p397_p6 = scmp.lt.s32.totalorder (!%p304_p3), %s1824_s28, 15  ;;  %s1543_s13 = sadd.s32 (!%p304_p3), 4294967295, %s1824_s28  ;;  %vm1854_vm2 = vmand (!%p304_p3), %vm572_vm0, %vm573_vm1  ;;  %vm595_vm5 = vsmask.f32 (!%p304_p3), 7424  ;;  %vm895_vm7 = vcmask (!%p304_p3), 15360   ;;  %vm912_vm8 = vcmask (!%p304_p3), 31744  }
   0xb   : > { %p472_p7 = scmp.gt.s32.totalorder (!%p304_p3), %s1730_s21, 0  ;;  %p379_p8 = scmp.gt.s32.totalorder (!%p304_p3), %s1543_s13, 0  ;;  %vm929_vm9 = vcmask (!%p304_p3), 48128   ;;  %vm946_vm10 = vcmask (!%p304_p3), 64512   ;;  %vm963_vm11 = vcmask (!%p304_p3), 80896   ;;  %vm980_vm12 = vcmask (!%p304_p3), 97280  }
   0xc   : > { %p1544_p9 = scmp.lt.s32.totalorder (!%p304_p3), %s1543_s13, 15  ;;  %s1605_s16 = sadd.s32 (!%p304_p3), 8, %s1824_s28  ;;  %vm997_vm13 = vcmask (!%p304_p3), 113664   ;;  %vm1014_vm14 = vcmask (!%p304_p3), 130048   ;;  %vm1050_vm15 = vcmask (!%p304_p3), 146432   ;;  %vm1249_vm1 = vcmask (!%p304_p3), 523264  }
   0xd   : > { %p1868_p10 = scmp.lt.s32.totalorder (!%p304_p3), %s1605_s16, 15  ;;  %p435_p11 = scmp.lt.s32.totalorder (!%p304_p3), %s1730_s21, 1 }
  0x10   : > { %s2391_s22 = smov (!%p381_p5, %s1734_s22), 1  ;;  %s2395_s16 = smov (!%p1868_p10, %s1605_s16), 15 }
  0x11   : > { %s398_s29 = scalar_select %p397_p6, %s1824_s28, 15 }
  0x12   : > { %s1831_s30 = sshll.u32 %s2391_s22, 5  ;;  %s1567_s11 = sshll.u32 %s2391_s22, 1 }
  0x13   : > { %s1553_s7 = sshll.u32 %s398_s29, 1  ;;  %s1748_s29 = smov 6  }
  0x14   : > { %s1834_s8 = sadd.s32 %s1553_s7, %s1831_s30  ;;  %s2397_s16 = smov (!%p1868_p10, %s2395_s16), 15 }
  0x15   : > { %s1555_s9 = sshll.u32 %s1834_s8, 3  ;;  %s1924_s28 = sshll.u32 %s2397_s16, 1 }
  0x16   : > { %s1840_s12 = scalar_lea.vmem %s2369_s1, %s1555_s9  ;;  %s1752_s16 = smov 2  }
  0x17   : > { %v444_v0 = vld [vmem:[%s1840_s12 + $0x10] sm:$0xff]  ;;  %v445_v1 = vld [vmem:[%s1840_s12 + $0x18] sm:$0xff]  ;;  %v442_v2 = vld [vmem:[%s1840_s12] sm:$0xff]  ;;  %s1850_s14 = scalar_select %p472_p7, 1, 0 }
  0x18   : > { %v459_v3 = vpack.c.bf16 %v445_v1, %v444_v0  ;;  %v443_v4 = vld [vmem:[%s1840_s12 + $0x8] sm:$0xff]  ;;  %v446_v5 = vld [vmem:[%s1840_s12 + $0x20] sm:$0xff]  ;;  %s380_s15 = scalar_select %p379_p8, %s1543_s13, 0  ;;  %v448_v45 = vld [vmem:[%s1840_s12 + $0x30] sm:$0xff] }
  0x19   : > { %v447_v6 = vld [vmem:[%s1840_s12 + $0x28] sm:$0xff]  ;;  %v458_v7 = vpack.c.bf16 %v443_v4, %v442_v2  ;;  %v474_v20 = vstv %s1850_s14  ;;  %s436_s13 = scalar_select %p435_p11, %s1730_s21, 1  ;;  %v449_v46 = vld [vmem:[%s1840_s12 + $0x38] sm:$0xff]  ;;  %v452_v50 = vld [vmem:[%s1840_s12 + $0x50] sm:$0xff] }
  0x1a   : > { %v460_v8 = vpack.c.bf16 %v447_v6, %v446_v5  ;;  %v497_v9 = vshrl.u32 %v459_v3, 16  ;;  %v500_v10 = vshll.u32 %v459_v3, 16  ;;  %s2393_s15 = smov (!%p1544_p9, %s380_s15), 15  ;;  %vm1887_vm3 = vcmp.eq.s32.totalorder %v474_v20, 1  ;;  %s1749_s14 = smov 12   ;;  %v453_v51 = vld [vmem:[%s1840_s12 + $0x58] sm:$0xff] }
  0x1b   : > { %v490_v11 = vshrl.u32 %v458_v7, 16  ;;  %v493_v12 = vshll.u32 %v458_v7, 16  ;;  %s1549_s17 = sshll.u32 %s2393_s15, 1  ;;  %s1922_s22 = sadd.s32 %s1567_s11, %s436_s13  ;;  %v461_v55 = vpack.c.bf16 %v449_v46, %v448_v45  ;;  %v463_v63 = vpack.c.bf16 %v453_v51, %v452_v50  ;;  %v454_v4 = vld [vmem:[%s1840_s12 + $0x60] sm:$0xff]  ;;  %v455_v5 = vld [vmem:[%s1840_s12 + $0x68] sm:$0xff] }
  0x1c   : > { %v504_v13 = vshrl.u32 %v460_v8, 16  ;;  %v507_v14 = vshll.u32 %v460_v8, 16  ;;  %v499_v15 = vrot.slane %v497_v9, 7  ;;  %s387_s18 = sadd.s32 %s1831_s30, %s1549_s17  ;;  %s415_s15 = sadd.s32 %s1924_s28, %s1831_s30  ;;  %v451_v20 = vld [vmem:[%s1840_s12 + $0x48] sm:$0xff] }
  0x1d   : > { %v492_v17 = vrot.slane %v490_v11, 7  ;;  %s1551_s20 = sshll.u32 %s387_s18, 3  ;;  %s1750_s17 = smov 4   ;;  %v511_v3 = vshrl.u32 %v461_v55, 16 }
  0x1e   : > { %v1858_v18 = vrot.slane %v504_v13, 7  ;;  %v502_v19 = vor.u32 %v500_v10, %v499_v15  ;;  %v587_v27 = vsel %vm1854_vm2, %v499_v15, 0  ;;  %s389_s10 = scalar_lea.vmem %s2368_s0, %s1551_s20  ;;  %s1751_s18 = smov 10   ;;  %v528_v13 = vshll.u32 %v463_v63, 16  ;;  %v1706_v15 = vld [vmem:[%s2371_s3] sm:$0xff]  }
  0x1f   : > { %v495_v21 = vor.u32 %v493_v12, %v492_v17  ;;  %v586_v23 = vsel %vm1854_vm2, %v492_v17, 0  ;;  %v466_v32 = vld [vmem:[%s389_s10] sm:$0xff]  ;;  %v467_v33 = vld [vmem:[%s389_s10 + $0x8] sm:$0xff]  ;;  %v732_v39 = vrot.slane %v587_v27, 1  ;;  %v628_v54 = vshll.u32 %v587_v27, 16  ;;  %s1562_s19 = sshll.u32 %s415_s15, 3  ;;  %1632 = vmatprep.subr.bf16.mxu0 %v1706_v15  ;;  %1652 = vmatprep.subr.bf16.mxu1 %v1706_v15 }
  0x20   : > { %v509_v22 = vor.u32 %v507_v14, %v1858_v18  ;;  %v1874_v24 = vsel %vm1854_vm2, 0, %v502_v19  ;;  %v729_v26 = vrot.slane %v586_v23, 1  ;;  %v616_v35 = vshll.u32 %v586_v23, 16  ;;  %v450_v19 = vld [vmem:[%s1840_s12 + $0x40] sm:$0xff]  ;;  %s1753_s9 = smov 8   ;;  %s417_s11 = scalar_lea.vmem %s2370_s2, %s1562_s19  ;;  %1633 = vmatpush3.bf16.msra.mxu0 %v1706_v15  ;;  %1654 = vmatpush3.bf16.msra.mxu1 %v1706_v15 }
  0x21   : > { %768 = vrot.lane.b32.xlu1 %v1874_v24, %s1748_s29  ;;  %v1880_v25 = vsel %vm1854_vm2, 0, %v495_v21  ;;  %v468_v36 = vpack.c.bf16 %v467_v33, %v466_v32  ;;  %v731_v38 = vrot.slane %v1874_v24, 1  ;;  %v623_v44 = vshll.u32 %v1874_v24, 16  ;;  %s1991_s13 = scalar_select %p435_p11, 1, 0 }
  0x22   : > { %766 = vrot.lane.b32.xlu0 %v1880_v25, %s1748_s29  ;;  %v1896_v29 = vsel %vm1854_vm2, 0, %v509_v22  ;;  %v728_v30 = vrot.slane %v1880_v25, 1  ;;  %v611_v31 = vshll.u32 %v1880_v25, 16  ;;  %v609_v34 = vshrl.u32 %v1880_v25, 16  ;;  %s1754_s28 = smov 14   ;;  %s1755_s21 = smov 16  }
  0x23   : > { %v476_v40 = vsel %vm1887_vm3, %v468_v36, 0  ;;  %v618_v48 = vrot.slane %v616_v35, 1  ;;  %v1932_v52 = vsel %vm724_vm4, %v731_v38, %v732_v39  ;;  %v621_v53 = vshrl.u32 %v1874_v24, 16  ;;  %v457_v38 = vld [vmem:[%s1840_s12 + $0x78] sm:$0xff] }
  0x24   : > { %v613_v37 = vrot.slane %v611_v31, 1  ;;  %v730_v41 = vsel %vm724_vm4, %v728_v30, %v729_v26  ;;  %v483_v42 = vshrl.u32 %v476_v40, 16  ;;  %v486_v43 = vshll.u32 %v476_v40, 16 }
  0x25   : > { %833 = vrot.lane.b32.xlu1 %v1896_v29, %s1749_s14  ;;  %v625_v58 = vrot.slane %v623_v44, 1  ;;  %v635_v59 = vshll.u32 %v1896_v29, 16  ;;  %v1946_v62 = vsel %vm1854_vm2, %v1858_v18, 0  ;;  %v630_v2 = vrot.slane %v628_v54, 1 }
  0x26   : > { %831 = vrot.lane.b32.xlu0 %v1874_v24, %s1749_s14  ;;  %v614_v47 = vor.u32 %v613_v37, %v609_v34  ;;  %v485_v49 = vrot.slane %v483_v42, 7  ;;  %v633_v7 = vshrl.u32 %v1896_v29, 16  ;;  %v640_v9 = vshll.u32 %v1946_v62, 16  ;;  %v456_v37 = vld [vmem:[%s1840_s12 + $0x70] sm:$0xff]  ;;  %v469_v42 = vld [vmem:[%s417_s11] sm:$0xff] }
  0x27   : > { %v626_v6 = vor.u32 %v625_v58, %v621_v53  ;;  %v637_v8 = vrot.slane %v635_v59, 1  ;;  %v525_v12 = vshrl.u32 %v463_v63, 16  ;;  %v464_v14 = vpack.c.bf16 %v455_v5, %v454_v4 }
  0x28   : > { %v488_v56 = vor.u32 %v486_v43, %v485_v49  ;;  %v1938_v57 = vsel %vm1854_vm2, %v485_v49, 0  ;;  %v619_v60 = vsel %vm595_vm5, %v614_v47, %v618_v48  ;;  %v513_v17 = vrot.slane %v511_v3, 7  ;;  %v470_v47 = vld [vmem:[%s417_s11 + $0x8] sm:$0xff] }
  0x29   : > { %751 = vrot.lane.b32.xlu1 %v730_v41, %s1750_s17  ;;  %v726_v61 = vrot.slane %v1938_v57, 1  ;;  %v514_v18 = vshll.u32 %v461_v55, 16  ;;  %v527_v21 = vrot.slane %v525_v12, 7  ;;  %v631_v22 = vsel %vm595_vm5, %v626_v6, %v630_v2  ;;  %v1707_v48 = vld [vmem:[%s2371_s3 + $0x8] ss:$0 sps:$4 sm:$0x11]  }
  0x2a   : > { %814 = vrot.lane.b32.xlu0 %v730_v41, %s1751_s18  ;;  %v1950_v0 = vsel %vm1854_vm2, 0, %v488_v56  ;;  %v638_v23 = vor.u32 %v637_v8, %v633_v7  ;;  %v642_v26 = vrot.slane %v640_v9, 1  ;;  %v532_v27 = vshrl.u32 %v464_v14, 16  ;;  %1656 = vmatprep.subr.msk.bf16.mxu0 %vm572_vm0, %v1707_v48 }
  0x2b   : > { %v725_v1 = vrot.slane %v1950_v0, 1  ;;  %v599_v11 = vshll.u32 %v1950_v0, 16  ;;  %v597_v28 = vshrl.u32 %v1950_v0, 16  ;;  %v604_v31 = vshll.u32 %v1938_v57, 16  ;;  %1657 = vmatprep.subr.msk.bf16.mxu1 %vm572_vm0, %v1707_v48 }
  0x2c   : > { %v530_v32 = vor.u32 %v528_v13, %v527_v21  ;;  %v1978_v33 = vpack.c.bf16 %v451_v20, %v450_v19  ;;  %v1982_v34 = vsel %vm1854_vm2, %v527_v21, 0  ;;  %v534_v35 = vrot.slane %v532_v27, 7 }
  0x2d   : > { %816 = vrot.lane.b32.xlu1 %v1932_v52, %s1751_s18  ;;  %v727_v10 = vsel %vm724_vm4, %v725_v1, %v726_v61  ;;  %v601_v30 = vrot.slane %v599_v11, 1  ;;  %v535_v36 = vshll.u32 %v464_v14, 16  ;;  %v734_v39 = vrot.slane %v1896_v29, 1 }
  0x2e   : > { %694 = vrot.lane.b32.xlu0 %v619_v60, %s1752_s16  ;;  %v735_v40 = vrot.slane %v1946_v62, 1  ;;  %v516_v41 = vor.u32 %v514_v18, %v513_v17  ;;  %v1995_v43 = vsel %vm595_vm5, %v638_v23, %v642_v26  ;;  %v1999_v44 = vsel %vm1854_vm2, 0, %v530_v32 }
  0x2f   : > { %v744_v45 = vrot.slane %v1982_v34, 1  ;;  %v537_v46 = vor.u32 %v535_v36, %v534_v35  ;;  %v602_v49 = vor.u32 %v601_v30, %v597_v28  ;;  %v606_v50 = vrot.slane %v604_v31, 1 }
  0x30   : > { %v2007_v51 = vsel %vm1854_vm2, %v513_v17, 0  ;;  %v465_v53 = vpack.c.bf16 %v457_v38, %v456_v37  ;;  %v518_v54 = vshrl.u32 %v1978_v33, 16  ;;  %v743_v55 = vrot.slane %v1999_v44, 1 }
  0x31   : > { %749 = vrot.lane.b32.xlu1 %v727_v10, %s1750_s17  ;;  %v2013_v56 = vsel %vm1854_vm2, 0, %v537_v46  ;;  %v592_v57 = vsel %vm1854_vm2, %v534_v35, 0  ;;  %v479_v61 = vstv %s1991_s13  ;;  %v607_v3 = vsel %vm595_vm5, %v602_v49, %v606_v50 }
  0x32   : > { %794 = vrot.lane.b32.xlu0 %v619_v60, %s1753_s9  ;;  %v681_v58 = vshrl.u32 %v2013_v56, 16  ;;  %v683_v59 = vshll.u32 %v2013_v56, 16  ;;  %v471_v60 = vpack.c.bf16 %v470_v47, %v469_v42  ;;  %v2027_v62 = vsel %vm724_vm4, %v743_v55, %v744_v45 }
  0x33   : > { %v688_v63 = vshll.u32 %v592_v57, 16  ;;  %v746_v1 = vrot.slane %v2013_v56, 1  ;;  %v747_v2 = vrot.slane %v592_v57, 1  ;;  %v2033_v4 = vsel %vm1854_vm2, 0, %v516_v41 }
  0x34   : > { %v685_v5 = vrot.slane %v683_v59, 1  ;;  %v539_v6 = vshrl.u32 %v465_v53, 16  ;;  %v542_v9 = vshll.u32 %v465_v53, 16  ;;  %vm480_vm6 = vcmp.eq.s32.totalorder %v479_v61, 1 }
  0x35   : > { %796 = vrot.lane.b32.xlu1 %v631_v22, %s1753_s9  ;;  %v690_v7 = vrot.slane %v688_v63, 1  ;;  %v2036_v8 = vsel %vm724_vm4, %v746_v1, %v747_v2  ;;  %v2040_v10 = vsel %vm724_vm4, %v734_v39, %v735_v40  ;;  %v481_v13 = vsel %vm480_vm6, %v471_v60, 0 }
  0x36   : > { %859 = vrot.lane.b32.xlu0 %v631_v22, %s1754_s28  ;;  %v686_v11 = vor.u32 %v685_v5, %v681_v58  ;;  %v541_v12 = vrot.slane %v539_v6, 7  ;;  %v647_v14 = vshll.u32 %v2033_v4, 16  ;;  %v520_v15 = vrot.slane %v518_v54, 7 }
  0x37   : > { %v521_v17 = vshll.u32 %v1978_v33, 16  ;;  %v546_v18 = vshrl.u32 %v481_v13, 16  ;;  %v645_v28 = vshrl.u32 %v2033_v4, 16  ;;  %v652_v30 = vshll.u32 %v2007_v51, 16 }
  0x38   : > { %v2046_v19 = vsel %vm595_vm5, %v686_v11, %v690_v7  ;;  %v544_v20 = vor.u32 %v542_v9, %v541_v12  ;;  %v593_v21 = vsel %vm1854_vm2, %v541_v12, 0  ;;  %v649_v32 = vrot.slane %v647_v14, 1 }
  0x39   : > { %861 = vrot.lane.b32.xlu1 %v1995_v43, %s1754_s28  ;;  %v790_v23 = vshll.u32 %v593_v21, 16  ;;  %v812_v26 = vrot.slane %v593_v21, 1  ;;  %v548_v27 = vrot.slane %v546_v18, 7  ;;  %v523_v37 = vor.u32 %v521_v17, %v520_v15 }
  0x3a   : > { %879 = vrot.lane.b32.xlu0 %v1932_v52, %s1755_s21  ;;  %v2056_v31 = vsel %vm1854_vm2, 0, %v544_v20  ;;  %v1069_v40 = vsel %vm572_vm0, %v1707_v48, 0  ;;  %v654_v47 = vrot.slane %v652_v30, 1  ;;  %v650_v48 = vor.u32 %v649_v32, %v645_v28 }
  0x3b   : > { %v783_v33 = vshrl.u32 %v2056_v31, 16  ;;  %v785_v35 = vshll.u32 %v2056_v31, 16  ;;  %v811_v36 = vrot.slane %v2056_v31, 1  ;;  %v594_v39 = vsel %vm1854_vm2, %v548_v27, 0  ;;  %1635 = vmatpush3.bf16.msra.mxu0 %v1069_v40  ;;  %1655 = vmatpush3.bf16.msra.mxu1 %v1069_v40 }
  0x3c   : > { %v792_v42 = vrot.slane %v790_v23, 1  ;;  %v855_v46 = vshll.u32 %v594_v39, 16  ;;  %v877_v50 = vrot.slane %v594_v39, 1  ;;  %v2081_v57 = vsel %vm1854_vm2, 0, %v523_v37 }
  0x3d   : > { %696 = vrot.lane.b32.xlu1 %v631_v22, %s1752_s16  ;;  %v549_v22 = vshll.u32 %v481_v13, 16  ;;  %v787_v41 = vrot.slane %v785_v35, 1  ;;  %v2067_v45 = vsel %vm724_vm4, %v811_v36, %v812_v26  ;;  %v655_v1 = vsel %vm595_vm5, %v650_v48, %v654_v47 }
  0x3e   : > { %692 = vrot.lane.b32.xlu0 %v607_v3, %s1752_s16  ;;  %v857_v61 = vrot.slane %v855_v46, 1  ;;  %v737_v2 = vrot.slane %v2033_v4, 1  ;;  %v659_v3 = vshll.u32 %v2081_v57, 16  ;;  %v590_v6 = vsel %vm1854_vm2, %v520_v15, 0 }
  0x3f   : > { %v551_v38 = vor.u32 %v549_v22, %v548_v27  ;;  %v788_v53 = vor.u32 %v787_v41, %v783_v33  ;;  %v657_v9 = vshrl.u32 %v2081_v57, 16  ;;  %v664_v12 = vshll.u32 %v590_v6, 16 }
  0x40   : > { %v661_v11 = vrot.slane %v659_v3, 1  ;;  %v740_v14 = vrot.slane %v2081_v57, 1  ;;  %v741_v15 = vrot.slane %v590_v6, 1  ;;  %v669_v18 = vshrl.u32 %v1999_v44, 16 }
  0x41   : > { %698 = vrot.lane.b32.xlu1 %v1995_v43, %s1752_s16  ;;  %v2073_v49 = vsel %vm1854_vm2, 0, %v551_v38  ;;  %v2085_v59 = vsel %vm595_vm5, %v788_v53, %v792_v42  ;;  %v666_v13 = vrot.slane %v664_v12, 1  ;;  %v676_v21 = vshll.u32 %v1982_v34, 16 }
  0x42   : > { %881 = vrot.lane.b32.xlu0 %v2040_v10, %s1755_s21  ;;  %v848_v54 = vshrl.u32 %v2073_v49, 16  ;;  %v850_v55 = vshll.u32 %v2073_v49, 16  ;;  %v876_v58 = vrot.slane %v2073_v49, 1  ;;  %v662_v16 = vor.u32 %v661_v11, %v657_v9 }
  0x43   : > { %v742_v17 = vsel %vm724_vm4, %v740_v14, %v741_v15  ;;  %v678_v23 = vrot.slane %v676_v21, 1  ;;  %vm1232_vm0 = vcmask 519168   ;;  %vm1287_vm2 = vcmask 516096  }
  0x44   : > { %v852_v60 = vrot.slane %v850_v55, 1  ;;  %v2091_v63 = vsel %vm724_vm4, %v876_v58, %v877_v50 }
  0x45   : > { %755 = vrot.lane.b32.xlu1 %v2040_v10, %s1750_s17 }
  0x46   : > { %753 = vrot.lane.b32.xlu0 %v1932_v52, %s1750_s17  ;;  %v738_v52 = vrot.slane %v2007_v51, 1  ;;  %v853_v5 = vor.u32 %v852_v60, %v848_v54 }
  0x48   : > { %v858_v7 = vsel %vm595_vm5, %v853_v5, %v857_v61  ;;  %v739_v51 = vsel %vm724_vm4, %v737_v2, %v738_v52 }
  0x49   : > { %772 = vrot.lane.b32.xlu1 %v2033_v4, %s1748_s29 }
  0x4a   : > { %770 = vrot.lane.b32.xlu0 %v1896_v29, %s1748_s29 }
  0x4d   : > { %800 = vrot.lane.b32.xlu1 %v655_v1, %s1753_s9 }
  0x4e   : > { %798 = vrot.lane.b32.xlu0 %v1995_v43, %s1753_s9  ;;  %v667_v43 = vsel %vm595_vm5, %v662_v16, %v666_v13 }
  0x51   : > { %820 = vrot.lane.b32.xlu1 %v739_v51, %s1751_s18 }
  0x52   : > { %818 = vrot.lane.b32.xlu0 %v2040_v10, %s1751_s18  ;;  %v671_v10 = vshll.u32 %v1999_v44, 16 }
  0x54   : > { %v673_v20 = vrot.slane %v671_v10, 1 }
  0x55   : > { %837 = vrot.lane.b32.xlu1 %v2081_v57, %s1749_s14 }
  0x56   : > { %835 = vrot.lane.b32.xlu0 %v2033_v4, %s1749_s14  ;;  %v674_v22 = vor.u32 %v673_v20, %v669_v18 }
  0x58   : > { %v679_v26 = vsel %vm595_vm5, %v674_v22, %v678_v23 }
  0x59   : > { %865 = vrot.lane.b32.xlu1 %v667_v43, %s1754_s28 }
  0x5a   : > { %863 = vrot.lane.b32.xlu0 %v655_v1, %s1754_s28 }
  0x5d   : > { %700 = vrot.lane.b32.xlu1 %v655_v1, %s1752_s16 }
  0x5e   : > { %883 = vrot.lane.b32.xlu0 %v739_v51, %s1755_s21 }
  0x61   : > { %702 = vrot.lane.b32.xlu1 %v667_v43, %s1752_s16 }
  0x62   : > { %885 = vrot.lane.b32.xlu0 %v742_v17, %s1755_s21 }
  0x65   : > { %759 = vrot.lane.b32.xlu1 %v742_v17, %s1750_s17 }
  0x66   : > { %757 = vrot.lane.b32.xlu0 %v739_v51, %s1750_s17 }
  0x69   : > { %776 = vrot.lane.b32.xlu1 %v1999_v44, %s1748_s29 }
  0x6a   : > { %774 = vrot.lane.b32.xlu0 %v2081_v57, %s1748_s29 }
  0x6d   : > { %804 = vrot.lane.b32.xlu1 %v679_v26, %s1753_s9 }
  0x6e   : > { %802 = vrot.lane.b32.xlu0 %v667_v43, %s1753_s9 }
  0x71   : > { %824 = vrot.lane.b32.xlu1 %v2027_v62, %s1751_s18 }
  0x72   : > { %822 = vrot.lane.b32.xlu0 %v742_v17, %s1751_s18 }
  0x75   : > { %841 = vrot.lane.b32.xlu1 %v2013_v56, %s1749_s14 }
  0x76   : > { %839 = vrot.lane.b32.xlu0 %v1999_v44, %s1749_s14 }
  0x79   : > { %869 = vrot.lane.b32.xlu1 %v2046_v19, %s1754_s28 }
  0x7a   : > { %867 = vrot.lane.b32.xlu0 %v679_v26, %s1754_s28 }
  0x7d   : > { %704 = vrot.lane.b32.xlu1 %v679_v26, %s1752_s16 }
  0x7e   : > { %887 = vrot.lane.b32.xlu0 %v2027_v62, %s1755_s21 }
  0x81   : > { %706 = vrot.lane.b32.xlu1 %v2046_v19, %s1752_s16 }
  0x82   : > { %889 = vrot.lane.b32.xlu0 %v2036_v8, %s1755_s21 }
  0x85   : > { %763 = vrot.lane.b32.xlu1 %v2036_v8, %s1750_s17 }
  0x86   : > { %761 = vrot.lane.b32.xlu0 %v2027_v62, %s1750_s17  ;;  %s1566_s17 = sshll.u32 %s1834_s8, 2  ;;  %s1568_s8 = sshll.u32 %s1922_s22, 1 }
  0x87   : > { %s2268_s19 = scalar_lea.vmem %s2373_s5, %s1566_s17 }
  0x89   : > { %780 = vrot.lane.b32.xlu1 %v2056_v31, %s1748_s29 }
  0x8a   : > { %778 = vrot.lane.b32.xlu0 %v2013_v56, %s1748_s29 }
  0x8d   : > { %808 = vrot.lane.b32.xlu1 %v2085_v59, %s1753_s9 }
  0x8e   : > { %806 = vrot.lane.b32.xlu0 %v2046_v19, %s1753_s9  ;;  %s440_s9 = scalar_lea.vmem %s2374_s6, %s1568_s8 }
  0x91   : > { %828 = vrot.lane.b32.xlu1 %v2067_v45, %s1751_s18 }
  0x92   : > { %826 = vrot.lane.b32.xlu0 %v2036_v8, %s1751_s18 }
  0x93   : > { %v769_v34 = vpop.permute.xlu1 %768 }
  0x94   : > { %v767_v62 = vpop.permute.xlu0 %766 }
  0x95   : > { %845 = vrot.lane.b32.xlu1 %v2073_v49, %s1749_s14 }
  0x96   : > { %843 = vrot.lane.b32.xlu0 %v2056_v31, %s1749_s14 }
  0x97   : > { %v834_v27 = vpop.permute.xlu1 %833 }
  0x98   : > { %v832_v28 = vpop.permute.xlu0 %831 }
  0x99   : > { %873 = vrot.lane.b32.xlu1 %v858_v7, %s1754_s28 }
  0x9a   : > { %871 = vrot.lane.b32.xlu0 %v2085_v59, %s1754_s28 }
  0x9b   : > { %v752_v19 = vpop.permute.xlu1 %751 }
  0x9c   : > { %v815_v30 = vpop.permute.xlu0 %814 }
  0x9d   : > { %893 = vrot.lane.b32.xlu1 %v2091_v63, %s1755_s21 }
  0x9e   : > { %891 = vrot.lane.b32.xlu0 %v2067_v45, %s1755_s21 }
  0x9f   : > { %v817_v8 = vpop.permute.xlu1 %816 }
  0xa0   : > { %v695_v32 = vpop.permute.xlu0 %694 }
  0xa1   : > { %v899_v36 = vsel %vm895_vm7, %v1880_v25, %v695_v32 }
  0xa2   : > { %v916_v38 = vsel %vm912_vm8, %v899_v36, %v752_v19 }
  0xa3   : > { %v750_v33 = vpop.permute.xlu1 %749  ;;  %v933_v41 = vsel %vm929_vm9, %v916_v38, %v769_v34 }
  0xa4   : > { %v795_v35 = vpop.permute.xlu0 %794 }
  0xa7   : > { %v797_v31 = vpop.permute.xlu1 %796 }
  0xa8   : > { %v860_v37 = vpop.permute.xlu0 %859  ;;  %v950_v42 = vsel %vm946_vm10, %v933_v41, %v797_v31 }
  0xa9   : > { %v967_v49 = vsel %vm963_vm11, %v950_v42, %v817_v8 }
  0xaa   : > { %v984_v55 = vsel %vm980_vm12, %v967_v49, %v834_v27 }
  0xab   : > { %v862_v39 = vpop.permute.xlu1 %861 }
  0xac   : > { %v880_v40 = vpop.permute.xlu0 %879  ;;  %v1001_v61 = vsel %vm997_vm13, %v984_v55, %v862_v39 }
  0xaf   : > { %v697_v45 = vpop.permute.xlu1 %696 }
  0xb0   : > { %v693_v46 = vpop.permute.xlu0 %692  ;;  %v901_v12 = vsel %vm895_vm7, %v1874_v24, %v697_v45 }
  0xb1   : > { %v897_v47 = vsel %vm895_vm7, %v1950_v0, %v693_v46 }
  0xb2   : > { %v914_v25 = vsel %vm912_vm8, %v897_v47, %v750_v33 }
  0xb3   : > { %v931_v50 = vsel %vm929_vm9, %v914_v25, %v767_v62  ;;  %v699_v48 = vpop.permute.xlu1 %698 }
  0xb4   : > { %v948_v53 = vsel %vm946_vm10, %v931_v50, %v795_v35  ;;  %v882_v54 = vpop.permute.xlu0 %881  ;;  %v903_v10 = vsel %vm895_vm7, %v1896_v29, %v699_v48 }
  0xb5   : > { %v965_v58 = vsel %vm963_vm11, %v948_v53, %v815_v30  ;;  %v1018_v1 = vsel %vm1014_vm14, %v1001_v61, %v882_v54 }
  0xb6   : > { %v982_v59 = vsel %vm980_vm12, %v965_v58, %v832_v28 }
  0xb7   : > { %v756_v0 = vpop.permute.xlu1 %755  ;;  %v999_v60 = vsel %vm997_vm13, %v982_v59, %v860_v37 }
  0xb8   : > { %v754_v52 = vpop.permute.xlu0 %753  ;;  %v1016_v63 = vsel %vm1014_vm14, %v999_v60, %v880_v40  ;;  %v920_v18 = vsel %vm912_vm8, %v903_v10, %v756_v0 }
  0xb9   : > { %1636 = vmatprep.mubr.msk.bf16.mxu0 %vm1050_vm15, %v1016_v63  ;;  %v918_v16 = vsel %vm912_vm8, %v901_v12, %v754_v52 }
  0xba   : > { %1637 = vmatmul.mubr.msk.bf16.vlgmr.msra.gmra.mrb[0].mxu0 %vm1050_vm15, %v1018_v1 }
  0xbb   : > { %v773_v2 = vpop.permute.xlu1 %772 }
  0xbc   : > { %v771_v3 = vpop.permute.xlu0 %770  ;;  %v937_v24 = vsel %vm929_vm9, %v920_v18, %v773_v2 }
  0xbd   : > { %v935_v43 = vsel %vm929_vm9, %v918_v16, %v771_v3 }
  0xbf   : > { %v801_v5 = vpop.permute.xlu1 %800 }
  0xc0   : > { %v799_v6 = vpop.permute.xlu0 %798  ;;  %v954_v26 = vsel %vm946_vm10, %v937_v24, %v801_v5 }
  0xc1   : > { %v952_v15 = vsel %vm946_vm10, %v935_v43, %v799_v6 }
  0xc3   : > { %v821_v7 = vpop.permute.xlu1 %820 }
  0xc4   : > { %v819_v51 = vpop.permute.xlu0 %818  ;;  %v971_v62 = vsel %vm963_vm11, %v954_v26, %v821_v7 }
  0xc5   : > { %v969_v17 = vsel %vm963_vm11, %v952_v15, %v819_v51 }
  0xc7   : > { %v838_v9 = vpop.permute.xlu1 %837 }
  0xc8   : > { %v836_v11 = vpop.permute.xlu0 %835  ;;  %v988_v29 = vsel %vm980_vm12, %v971_v62, %v838_v9 }
  0xc9   : > { %v986_v20 = vsel %vm980_vm12, %v969_v17, %v836_v11 }
  0xcb   : > { %v866_v13 = vpop.permute.xlu1 %865 }
  0xcc   : > { %v864_v14 = vpop.permute.xlu0 %863  ;;  %v1005_v28 = vsel %vm997_vm13, %v988_v29, %v866_v13 }
  0xcd   : > { %v1003_v22 = vsel %vm997_vm13, %v986_v20, %v864_v14 }
  0xcf   : > { %v701_v21 = vpop.permute.xlu1 %700 }
  0xd0   : > { %v884_v23 = vpop.permute.xlu0 %883  ;;  %v905_v41 = vsel %vm895_vm7, %v2033_v4, %v701_v21 }
  0xd1   : > { %v1020_v34 = vsel %vm1014_vm14, %v1003_v22, %v884_v23 }
  0xd2   : > { %1640 = vmatprep.mubr.msk.bf16.mxu0 %vm1050_vm15, %v1020_v34 }
  0xd3   : > { %v703_v27 = vpop.permute.xlu1 %702 }
  0xd4   : > { %v886_v19 = vpop.permute.xlu0 %885  ;;  %v907_v25 = vsel %vm895_vm7, %v2081_v57, %v703_v27 }
  0xd5   : > { %v1022_v30 = vsel %vm1014_vm14, %v1005_v28, %v886_v19  ;;  %v2261_v19 = vld [vmem:[%s2372_s4] ss:$0 sm:$0xff] }
  0xd6   : > { %1641 = vmatmul.mubr.msk.bf16.gmra.mrb[4].mxu0 %vm1050_vm15, %v1022_v30 }
  0xd7   : > { %v760_v8 = vpop.permute.xlu1 %759 }
  0xd8   : > { %v758_v32 = vpop.permute.xlu0 %757  ;;  %v924_v48 = vsel %vm912_vm8, %v907_v25, %v760_v8 }
  0xd9   : > { %v922_v42 = vsel %vm912_vm8, %v905_v41, %v758_v32 }
  0xdb   : > { %v777_v33 = vpop.permute.xlu1 %776 }
  0xdc   : > { %v775_v35 = vpop.permute.xlu0 %774  ;;  %v941_v4 = vsel %vm929_vm9, %v924_v48, %v777_v33 }
  0xdd   : > { %v939_v46 = vsel %vm929_vm9, %v922_v42, %v775_v35 }
  0xdf   : > { %v805_v31 = vpop.permute.xlu1 %804 }
  0xe0   : > { %v803_v36 = vpop.permute.xlu0 %802  ;;  %v958_v59 = vsel %vm946_vm10, %v941_v4, %v805_v31 }
  0xe1   : > { %v956_v49 = vsel %vm946_vm10, %v939_v46, %v803_v36 }
  0xe3   : > { %v825_v37 = vpop.permute.xlu1 %824 }
  0xe4   : > { %v823_v38 = vpop.permute.xlu0 %822  ;;  %v975_v60 = vsel %vm963_vm11, %v958_v59, %v825_v37 }
  0xe5   : > { %v973_v50 = vsel %vm963_vm11, %v956_v49, %v823_v38 }
  0xe7   : > { %v842_v39 = vpop.permute.xlu1 %841 }
  0xe8   : > { %v840_v40 = vpop.permute.xlu0 %839  ;;  %v992_v57 = vsel %vm980_vm12, %v975_v60, %v842_v39 }
  0xe9   : > { %v990_v53 = vsel %vm980_vm12, %v973_v50, %v840_v40 }
  0xeb   : > { %v870_v45 = vpop.permute.xlu1 %869 }
  0xec   : > { %v868_v47 = vpop.permute.xlu0 %867  ;;  %v1009_v52 = vsel %vm997_vm13, %v992_v57, %v870_v45 }
  0xed   : > { %v1007_v55 = vsel %vm997_vm13, %v990_v53, %v868_v47 }
  0xef   : > { %v705_v54 = vpop.permute.xlu1 %704 }
  0xf0   : > { %v888_v58 = vpop.permute.xlu0 %887  ;;  %v909_v43 = vsel %vm895_vm7, %v1999_v44, %v705_v54 }
  0xf1   : > { %v1024_v0 = vsel %vm1014_vm14, %v1007_v55, %v888_v58 }
  0xf2   : > { %1644 = vmatprep.mubr.msk.bf16.mxu1 %vm1050_vm15, %v1024_v0 }
  0xf3   : > { %v707_v61 = vpop.permute.xlu1 %706 }
  0xf4   : > { %v890_v63 = vpop.permute.xlu0 %889  ;;  %v911_v13 = vsel %vm895_vm7, %v2013_v56, %v707_v61 }
  0xf5   : > { %v1026_v1 = vsel %vm1014_vm14, %v1009_v52, %v890_v63 }
  0xf6   : > { %1645 = vmatmul.mubr.msk.bf16.vlgmr.msra.gmra.mrb[0].mxu1 %vm1050_vm15, %v1026_v1 }
  0xf7   : > { %v764_v2 = vpop.permute.xlu1 %763 }
  0xf8   : > { %v762_v3 = vpop.permute.xlu0 %761  ;;  %v928_v14 = vsel %vm912_vm8, %v911_v13, %v764_v2 }
  0xf9   : > { %v926_v15 = vsel %vm912_vm8, %v909_v43, %v762_v3 }
  0xfb   : > { %v781_v5 = vpop.permute.xlu1 %780 }
  0xfc   : > { %v779_v6 = vpop.permute.xlu0 %778  ;;  %v945_v10 = vsel %vm929_vm9, %v928_v14, %v781_v5 }
  0xfd   : > { %v943_v18 = vsel %vm929_vm9, %v926_v15, %v779_v6 }
  0xff   : > { %v809_v7 = vpop.permute.xlu1 %808 }
 0x100   : > { %v807_v51 = vpop.permute.xlu0 %806  ;;  %v962_v20 = vsel %vm946_vm10, %v945_v10, %v809_v7 }
 0x101   : > { %v960_v24 = vsel %vm946_vm10, %v943_v18, %v807_v51 }
 0x103   : > { %v829_v9 = vpop.permute.xlu1 %828 }
 0x104   : > { %v827_v11 = vpop.permute.xlu0 %826  ;;  %v979_v56 = vsel %vm963_vm11, %v962_v20, %v829_v9 }
 0x105   : > { %v977_v22 = vsel %vm963_vm11, %v960_v24, %v827_v11 }
 0x107   : > { %v846_v12 = vpop.permute.xlu1 %845 }
 0x108   : > { %v844_v16 = vpop.permute.xlu0 %843  ;;  %v996_v44 = vsel %vm980_vm12, %v979_v56, %v846_v12 }
 0x109   : > { %v994_v23 = vsel %vm980_vm12, %v977_v22, %v844_v16 }
 0x10b   : > { %v874_v17 = vpop.permute.xlu1 %873 }
 0x10c   : > { %v872_v21 = vpop.permute.xlu0 %871  ;;  %v1013_v26 = vsel %vm997_vm13, %v996_v44, %v874_v17 }
 0x10d   : > { %v1011_v62 = vsel %vm997_vm13, %v994_v23, %v872_v21 }
 0x10f   : > { %v894_v34 = vpop.permute.xlu1 %893 }
 0x110   : > { %v1030_v29 = vsel %vm1014_vm14, %v1013_v26, %v894_v34  ;;  %v892_v27 = vpop.permute.xlu0 %891 }
 0x111   : > { %v1028_v28 = vsel %vm1014_vm14, %v1011_v62, %v892_v27 }
 0x112   : > { %1648 = vmatprep.mubr.msk.bf16.mxu1 %vm1050_vm15, %v1028_v28 }
 0x113   : > { %1649 = vmatmul.mubr.msk.bf16.gmra.mrb[4].mxu1 %vm1050_vm15, %v1030_v29 }
 0x18d   : > { %v1638_v30 = vpop.f32.mrb[0].mxu0 }
 0x18e   : > { %v1114_v8 = vadd.f32 %v1638_v30, %v2261_v19  ;;  %v1105_v32 = vpop.f32.mrb[1].mxu0 }
 0x18f   : > { %v1106_v33 = vadd.f32 %v2261_v19, %v1105_v32  ;;  %v1639_v35 = vpop.f32.mrb[2].mxu0 }
 0x190   : > { %v1608_v31 = vpack.c.bf16 %v1114_v8, %v1114_v8  ;;  %v1117_v36 = vadd.f32 %v1639_v35, %v2261_v19  ;;  %v1108_v37 = vpop.f32.mrb[3].mxu0  ;;  %v1291_v41 = vmul.f32 %v1114_v8, %v1114_v8  ;;  %v1253_v50 = vsel %vm1249_vm1, %v1114_v8, 0.0 }
 0x191   : > { %v1606_v38 = vpack.c.bf16 %v1106_v33, %v1106_v33  ;;  %v1289_v39 = vmul.f32 %v1106_v33, %v1106_v33  ;;  %v1109_v40 = vadd.f32 %v2261_v19, %v1108_v37  ;;  %v1250_v45 = vsel %vm1249_vm1, %v1106_v33, 0.0 }
 0x192   : > { %1235 = vst.msk [vmem:[%s2268_s19 + $0x8] sm:$0xf] %vm1232_vm0, %v1608_v31  ;;  %v1609_v42 = vpack.c.bf16 %v1117_v36, %v1117_v36  ;;  %v1292_v53 = vmul.f32 %v1117_v36, %v1117_v36  ;;  %v1308_v58 = vsel %vm1249_vm1, %v1291_v41, 0.0  ;;  %v1255_v59 = vsel %vm1249_vm1, %v1117_v36, 0.0 }
 0x193   : > { %1233 = vst.msk [vmem:[%s2268_s19] sm:$0xf] %vm1232_vm0, %v1606_v38  ;;  %v1607_v46 = vpack.c.bf16 %v1109_v40, %v1109_v40  ;;  %v1251_v47 = vsel %vm1249_vm1, %v1109_v40, 0.0  ;;  %v1290_v49 = vmul.f32 %v1109_v40, %v1109_v40  ;;  %v1305_v48 = vsel %vm1249_vm1, %v1289_v39, 0.0 }
 0x194   : > { %1236 = vst.msk [vmem:[%s2268_s19 + $0xc] sm:$0xf] %vm1232_vm0, %v1609_v42  ;;  %v1252_v25 = vadd.f32 %v1251_v47, %v1250_v45  ;;  %v1310_v57 = vsel %vm1249_vm1, %v1292_v53, 0.0 }
 0x195   : > { %1234 = vst.msk [vmem:[%s2268_s19 + $0x4] sm:$0xf] %vm1232_vm0, %v1607_v46  ;;  %v1306_v54 = vsel %vm1249_vm1, %v1290_v49, 0.0 }
 0x196   : > { %v1254_v4 = vadd.f32 %v1253_v50, %v1252_v25  ;;  %v1307_v55 = vadd.f32 %v1306_v54, %v1305_v48 }
 0x198   : > { %v1309_v0 = vadd.f32 %v1308_v58, %v1307_v55  ;;  %v1256_v60 = vadd.f32 %v1255_v59, %v1254_v4 }
 0x19a   : > { %v1311_v61 = vadd.f32 %v1310_v57, %v1309_v0 }
 0x1a9   : > { %v1642_v52 = vpop.f32.mrb[4].mxu0 }
 0x1aa   : > { %v1130_v63 = vadd.f32 %v1642_v52, %v2261_v19  ;;  %v1121_v1 = vpop.f32.mrb[5].mxu0 }
 0x1ab   : > { %v1122_v2 = vadd.f32 %v2261_v19, %v1121_v1  ;;  %v1643_v3 = vpop.f32.mrb[6].mxu0 }
 0x1ac   : > { %v1612_v5 = vpack.c.bf16 %v1130_v63, %v1130_v63  ;;  %v1133_v6 = vadd.f32 %v1643_v3, %v2261_v19  ;;  %v1124_v7 = vpop.f32.mrb[7].mxu0  ;;  %v1295_v10 = vmul.f32 %v1130_v63, %v1130_v63  ;;  %v1261_v21 = vsel %vm1249_vm1, %v1130_v63, 0.0 }
 0x1ad   : > { %v1610_v51 = vpack.c.bf16 %v1122_v2, %v1122_v2  ;;  %v1257_v9 = vsel %vm1249_vm1, %v1122_v2, 0.0  ;;  %v1293_v11 = vmul.f32 %v1122_v2, %v1122_v2  ;;  %v1125_v12 = vadd.f32 %v2261_v19, %v1124_v7 }
 0x1ae   : > { %1239 = vst.msk [vmem:[%s2268_s19 + $0x18] sm:$0xf] %vm1232_vm0, %v1612_v5  ;;  %v1258_v16 = vadd.f32 %v1257_v9, %v1256_v60  ;;  %v1613_v13 = vpack.c.bf16 %v1133_v6, %v1133_v6  ;;  %v1296_v24 = vmul.f32 %v1133_v6, %v1133_v6  ;;  %v1263_v44 = vsel %vm1249_vm1, %v1133_v6, 0.0 }
 0x1af   : > { %1237 = vst.msk [vmem:[%s2268_s19 + $0x10] sm:$0xf] %vm1232_vm0, %v1610_v51  ;;  %v1312_v43 = vsel %vm1249_vm1, %v1293_v11, 0.0  ;;  %v1611_v14 = vpack.c.bf16 %v1125_v12, %v1125_v12  ;;  %v1259_v15 = vsel %vm1249_vm1, %v1125_v12, 0.0  ;;  %v1294_v20 = vmul.f32 %v1125_v12, %v1125_v12 }
 0x1b0   : > { %v1313_v17 = vadd.f32 %v1312_v43, %v1311_v61  ;;  %1240 = vst.msk [vmem:[%s2268_s19 + $0x1c] sm:$0xf] %vm1232_vm0, %v1613_v13  ;;  %v1260_v18 = vadd.f32 %v1259_v15, %v1258_v16  ;;  %v1316_v26 = vsel %vm1249_vm1, %v1295_v10, 0.0  ;;  %v1318_v29 = vsel %vm1249_vm1, %v1296_v24, 0.0 }
 0x1b1   : > { %1238 = vst.msk [vmem:[%s2268_s19 + $0x14] sm:$0xf] %vm1232_vm0, %v1611_v14  ;;  %v1314_v22 = vsel %vm1249_vm1, %v1294_v20, 0.0 }
 0x1b2   : > { %v1262_v56 = vadd.f32 %v1261_v21, %v1260_v18  ;;  %v1315_v23 = vadd.f32 %v1314_v22, %v1313_v17 }
 0x1b4   : > { %v1264_v34 = vadd.f32 %v1263_v44, %v1262_v56  ;;  %v1317_v62 = vadd.f32 %v1316_v26, %v1315_v23 }
 0x1b6   : > { %v1319_v27 = vadd.f32 %v1318_v29, %v1317_v62 }
 0x1c9   : > { %v1646_v28 = vpop.f32.mrb[0].mxu1 }
 0x1ca   : > { %v1146_v30 = vadd.f32 %v1646_v28, %v2261_v19  ;;  %v1137_v8 = vpop.f32.mrb[1].mxu1 }
 0x1cb   : > { %v1138_v32 = vadd.f32 %v2261_v19, %v1137_v8  ;;  %v1647_v33 = vpop.f32.mrb[2].mxu1 }
 0x1cc   : > { %v1616_v35 = vpack.c.bf16 %v1146_v30, %v1146_v30  ;;  %v1149_v31 = vadd.f32 %v1647_v33, %v2261_v19  ;;  %v1140_v36 = vpop.f32.mrb[3].mxu1  ;;  %v1299_v49 = vmul.f32 %v1146_v30, %v1146_v30  ;;  %v1269_v53 = vsel %vm1249_vm1, %v1146_v30, 0.0 }
 0x1cd   : > { %v1614_v37 = vpack.c.bf16 %v1138_v32, %v1138_v32  ;;  %v1265_v38 = vsel %vm1249_vm1, %v1138_v32, 0.0  ;;  %v1297_v39 = vmul.f32 %v1138_v32, %v1138_v32  ;;  %v1141_v40 = vadd.f32 %v2261_v19, %v1140_v36 }
 0x1ce   : > { %1243 = vst.msk [vmem:[%s2268_s19 + $0x28] sm:$0xf] %vm1232_vm0, %v1616_v35  ;;  %v1266_v41 = vadd.f32 %v1265_v38, %v1264_v34  ;;  %v1617_v42 = vpack.c.bf16 %v1149_v31, %v1149_v31  ;;  %v1300_v54 = vmul.f32 %v1149_v31, %v1149_v31  ;;  %v1271_v58 = vsel %vm1249_vm1, %v1149_v31, 0.0 }
 0x1cf   : > { %1241 = vst.msk [vmem:[%s2268_s19 + $0x20] sm:$0xf] %vm1232_vm0, %v1614_v37  ;;  %v1320_v45 = vsel %vm1249_vm1, %v1297_v39, 0.0  ;;  %v1615_v46 = vpack.c.bf16 %v1141_v40, %v1141_v40  ;;  %v1267_v47 = vsel %vm1249_vm1, %v1141_v40, 0.0  ;;  %v1298_v48 = vmul.f32 %v1141_v40, %v1141_v40 }
 0x1d0   : > { %v1321_v25 = vadd.f32 %v1320_v45, %v1319_v27  ;;  %1244 = vst.msk [vmem:[%s2268_s19 + $0x2c] sm:$0xf] %vm1232_vm0, %v1617_v42  ;;  %v1268_v50 = vadd.f32 %v1267_v47, %v1266_v41  ;;  %v1324_v0 = vsel %vm1249_vm1, %v1299_v49, 0.0  ;;  %v1326_v61 = vsel %vm1249_vm1, %v1300_v54, 0.0 }
 0x1d1   : > { %1242 = vst.msk [vmem:[%s2268_s19 + $0x24] sm:$0xf] %vm1232_vm0, %v1615_v46  ;;  %v1322_v55 = vsel %vm1249_vm1, %v1298_v48, 0.0 }
 0x1d2   : > { %v1270_v4 = vadd.f32 %v1269_v53, %v1268_v50  ;;  %v1323_v59 = vadd.f32 %v1322_v55, %v1321_v25 }
 0x1d4   : > { %v1272_v60 = vadd.f32 %v1271_v58, %v1270_v4  ;;  %v1325_v57 = vadd.f32 %v1324_v0, %v1323_v59 }
 0x1d6   : > { %v1327_v52 = vadd.f32 %v1326_v61, %v1325_v57 }
 0x1e6   : > { %v1650_v63 = vpop.f32.mrb[4].mxu1 }
 0x1e7   : > { %v1162_v1 = vadd.f32 %v1650_v63, %v2261_v19  ;;  %v1153_v2 = vpop.f32.mrb[5].mxu1 }
 0x1e8   : > { %v1154_v3 = vadd.f32 %v2261_v19, %v1153_v2  ;;  %v1651_v5 = vpop.f32.mrb[6].mxu1 }
 0x1e9   : > { %v1620_v6 = vpack.c.bf16 %v1162_v1, %v1162_v1  ;;  %v1165_v7 = vadd.f32 %v1651_v5, %v2261_v19  ;;  %v1156_v51 = vpop.f32.mrb[7].mxu1  ;;  %v1303_v17 = vmul.f32 %v1162_v1, %v1162_v1  ;;  %v1277_v24 = vsel %vm1249_vm1, %v1162_v1, 0.0 }
 0x1ea   : > { %v1618_v9 = vpack.c.bf16 %v1154_v3, %v1154_v3  ;;  %v1273_v11 = vsel %vm1249_vm1, %v1154_v3, 0.0  ;;  %v1301_v12 = vmul.f32 %v1154_v3, %v1154_v3  ;;  %v1157_v16 = vadd.f32 %v2261_v19, %v1156_v51 }
 0x1eb   : > { %1247 = vst.msk [vmem:[%s2268_s19 + $0x38] sm:$0xf] %vm1232_vm0, %v1620_v6  ;;  %v1274_v13 = vadd.f32 %v1273_v11, %v1272_v60  ;;  %v1621_v43 = vpack.c.bf16 %v1165_v7, %v1165_v7  ;;  %v1304_v19 = vmul.f32 %v1165_v7, %v1165_v7  ;;  %v1279_v44 = vsel %vm1249_vm1, %v1165_v7, 0.0 }
 0x1ec   : > { %1245 = vst.msk [vmem:[%s2268_s19 + $0x30] sm:$0xf] %vm1232_vm0, %v1618_v9  ;;  %v1328_v14 = vsel %vm1249_vm1, %v1301_v12, 0.0  ;;  %v1619_v15 = vpack.c.bf16 %v1157_v16, %v1157_v16  ;;  %v1275_v10 = vsel %vm1249_vm1, %v1157_v16, 0.0  ;;  %v1302_v21 = vmul.f32 %v1157_v16, %v1157_v16 }
 0x1ed   : > { %v1329_v18 = vadd.f32 %v1328_v14, %v1327_v52  ;;  %1248 = vst.msk [vmem:[%s2268_s19 + $0x3c] sm:$0xf] %vm1232_vm0, %v1621_v43  ;;  %v1276_v20 = vadd.f32 %v1275_v10, %v1274_v13  ;;  %v1332_v26 = vsel %vm1249_vm1, %v1303_v17, 0.0  ;;  %v1334_v29 = vsel %vm1249_vm1, %v1304_v19, 0.0 }
 0x1ee   : > { %1246 = vst.msk [vmem:[%s2268_s19 + $0x34] sm:$0xf] %vm1232_vm0, %v1619_v15  ;;  %v1330_v22 = vsel %vm1249_vm1, %v1302_v21, 0.0 }
 0x1ef   : > { %v1278_v56 = vadd.f32 %v1277_v24, %v1276_v20  ;;  %v1331_v23 = vadd.f32 %v1330_v22, %v1329_v18 }
 0x1f1   : > { %v1280_v34 = vadd.f32 %v1279_v44, %v1278_v56  ;;  %v1333_v62 = vadd.f32 %v1332_v26, %v1331_v23 }
 0x1f3   : > { %v1281_v27 = vrot.slane %v1280_v34, 4  ;;  %v1335_v28 = vadd.f32 %v1334_v29, %v1333_v62 }
 0x1f5   : > { %v1282_v30 = vadd.f32 %v1281_v27, %v1280_v34  ;;  %v1336_v8 = vrot.slane %v1335_v28, 4 }
 0x1f7   : > { %v1283_v32 = vrot.slane %v1282_v30, 2  ;;  %v1337_v33 = vadd.f32 %v1336_v8, %v1335_v28 }
 0x1f9   : > { %v1284_v35 = vadd.f32 %v1283_v32, %v1282_v30  ;;  %v1338_v31 = vrot.slane %v1337_v33, 2 }
 0x1fb   : > { %v1285_v36 = vrot.slane %v1284_v35, 1  ;;  %v1339_v37 = vadd.f32 %v1338_v31, %v1337_v33 }
 0x1fd   : > { %v1286_v38 = vadd.f32 %v1285_v36, %v1284_v35  ;;  %v1340_v39 = vrot.slane %v1339_v37, 1 }
 0x1ff   : > { %1288 = vst.msk [vmem:[%s440_s9] sm:$0x1] %vm1287_vm2, %v1286_v38  ;;  %v1341_v40 = vadd.f32 %v1340_v39, %v1339_v37 }
 0x201   : > { %1342 = vst.msk [vmem:[%s440_s9 + $0x1] sm:$0x1] %vm1287_vm2, %v1341_v40 }
 0x202 PF: > { %s17_s25 = sadd.s32 1, %s1746_s25   ;;  %s2380_s21 = smov %s1738_s23 }
 0x203   : > { %p14_p12 = scmp.ge.s32.totalorder %s17_s25, 6   ;;  %s2381_s22 = smov %s1742_s24 }
 0x204   : > { %s2382_s23 = smov %s2385_s26  ;;  %s2383_s24 = smov %s2389_s27 }
 0x205   :  { %16 = sbr.rel (!%p14_p12) target bundleno = 3 (0x3), region = 88 }

// kernel: _lambda_.9
= control target key start
LH: loop header
LB: loop body
LE: loop exit
PB: predicated region body
PF: predicated region fallthrough
CT: control target
= control target key end

     0   :  { %s2405_s27 = smov 0   ;;  %s2407_s28 = smov 0   ;;  %s3194_s0 = inlined_call_operand.vmem [shape: bf16[2,16,16,64], index: 0, kind: input, shape index: {}, may-alias: {0,1,2}]   ;;  %s3195_s1 = inlined_call_operand.vmem [shape: bf16[2,16,16,64], index: 1, kind: input, shape index: {}, may-alias: {0,1,2}]   ;;  %s3196_s2 = inlined_call_operand.vmem [shape: bf16[2,16,16,64], index: 2, kind: input, shape index: {}, may-alias: {0,1,2}]   ;;  %s3197_s3 = inlined_call_operand.vmem [shape: bf16[3,192,64], index: 3, kind: input, shape index: {}]   ;;  %s3198_s4 = inlined_call_operand.vmem [shape: f32[1,64], index: 4, kind: input, shape index: {}]   ;;  %s3199_s5 = inlined_call_operand.vmem [shape: f32[1,64], index: 5, kind: input, shape index: {}]   ;;  %s3200_s6 = inlined_call_operand.vmem [shape: f32[1,64], index: 6, kind: input, shape index: {}]   ;;  %s3201_s7 = inlined_call_operand.vmem [shape: bf16[2,16,16,64], index: 7, kind: output, shape index: {0}]   ;;  %s3202_s8 = inlined_call_operand.vmem [shape: f32[2,2,2,64], index: 8, kind: output, shape index: {1}]  }
   0x1   :  { %s2409_s29 = smov 0   ;;  %s2411_s30 = smov 0  }
   0x2   :  { %s2413_s9 = smov 0  }
   0x3 LB: > { %s28_s10 = sadd.s32 1, %s2348_s29  ;;  %s31_s11 = sadd.s32 1, %s2352_s30  ;;  %s2356_s9 = sphi %s2413_s9, %s19_s9   ;;  %s2352_s30 = sphi %s2411_s30, %s3213_s30   ;;  %s2348_s29 = sphi %s2409_s29, %s3212_s29   ;;  %s2344_s28 = sphi %s2407_s28, %s3211_s28   ;;  %s2340_s27 = sphi %s2405_s27, %s3210_s27  }
   0x4   : > { %p29_p0 = scmp.ge.s32.totalorder %s28_s10, 2  ;;  %p1988_p1 = scmp.ge.s32.totalorder %s2356_s9, 1 }
   0x5   : > { %p353_p2 = scmp.lt.s32.totalorder %s2356_s9, 5 }
   0x6   : > { %s3215_s10 = smov (%p29_p0, %s28_s10), 0  ;;  %s3217_s11 = smov (!%p29_p0, %s31_s11), %s2352_s30 }
   0x7   : > { %p354_p3 = pnand %p1988_p1, %p353_p2  ;;  %p33_p4 = scmp.ge.s32.totalorder %s3217_s11, 2 }
   0x8   : > { %s2438_s12 = sshll.u32 (!%p354_p3), %s2340_s27, 3  ;;  %p435_p5 = scmp.lt.s32.totalorder (!%p354_p3), %s2344_s28, 1  ;;  %v2358_v0 = vmov (!%p354_p3), 0   ;;  %v2282_v1 = vld [vmem:[%s3197_s3 + $0x60] sm:$0xff] (!%p354_p3)   ;;  %v2283_v2 = vld [vmem:[%s3197_s3 + $0x68] sm:$0xff] (!%p354_p3)   ;;  %v2285_v5 = vld [vmem:[%s3197_s3 + $0x70] sm:$0xff] (!%p354_p3)  }
   0x9   : > { %s3219_s11 = smov (%p33_p4, %s3217_s11), 0  ;;  %357 = sbr.rel (%p354_p3) target bundleno = 504 (0x1f8), region = 48 }
   0xa   : > { %p451_p6 = scmp.lt.s32.totalorder (!%p354_p3), %s2438_s12, 15  ;;  %1089 = vmatprep.subr.bf16.mxu0 (!%p354_p3), %v2358_v0  ;;  %1261 = vmatprep.subr.bf16.mxu1 (!%p354_p3), %v2358_v0  ;;  %v2284_v3 = vld [vmem:[%s3197_s3] sm:$0xff] (!%p354_p3)   ;;  %s1990_s22 = sadd.s32 (!%p354_p3), 4294967295, %s2438_s12  ;;  %v2286_v6 = vld [vmem:[%s3197_s3 + $0x8] sm:$0xff] (!%p354_p3)   ;;  %vm721_vm0 = vsmask.f32 (!%p354_p3), 256 }
   0xb   : > { %1090 = vmatpush1.bf16.msra.mxu0 (!%p354_p3), %v2282_v1  ;;  %p433_p7 = scmp.gt.s32.totalorder (!%p354_p3), %s1990_s22, 0  ;;  %1262 = vmatpush1.bf16.msra.mxu1 (!%p354_p3), %v2284_v3  ;;  %v2467_v4 = vld [vmem:[%s3199_s5] ss:$0 sm:$0xff] (!%p354_p3)  ;;  %p1991_p8 = scmp.lt.s32.totalorder (!%p354_p3), %s1990_s22, 15  ;;  %v2287_v24 = vld [vmem:[%s3197_s3 + $0x78] sm:$0xff] (!%p354_p3)   ;;  %v2288_v25 = vld [vmem:[%s3197_s3 + $0x10] sm:$0xff] (!%p354_p3)  }
   0xc   : > { %1091 = vmatprep.subr.bf16.mxu0 (!%p354_p3), %v2358_v0  ;;  %1263 = vmatprep.subr.bf16.mxu1 (!%p354_p3), %v2358_v0  ;;  %p620_p9 = scmp.gt.s32.totalorder (!%p354_p3), %s2340_s27, 0  ;;  %v2492_v15 = vld [vmem:[%s3200_s6] ss:$0 sm:$0xff] (!%p354_p3)  ;;  %v2290_v30 = vld [vmem:[%s3197_s3 + $0x18] sm:$0xff] (!%p354_p3)   ;;  %vm720_vm1 = vcmask (!%p354_p3), 1040384   ;;  %p489_p11 = scmp.lt.s32.totalorder (!%p354_p3), %s2340_s27, 1 }
   0xd   : > { %v2289_v43 = vld [vmem:[%s3197_s3 + $0x80] sm:$0xff] (!%p354_p3)   ;;  %vm743_vm3 = vsmask.f32 (!%p354_p3), 7424  ;;  %vm2581_vm4 = vmand (!%p354_p3), %vm720_vm1, %vm721_vm0  ;;  %vm872_vm6 = vcmask (!%p354_p3), 1046528   ;;  %vm897_vm7 = vcmask (!%p354_p3), 523264   ;;  %vm1680_vm8 = vcmask (!%p354_p3), 519168  }
   0xe   : > { %v2292_v54 = vld [vmem:[%s3197_s3 + $0x20] sm:$0xff] (!%p354_p3)   ;;  %vm1734_vm9 = vcmask (!%p354_p3), 516096  }
   0xf   : > { %1092 = vmatpush1.bf16.msra.mxu0 (!%p354_p3), %v2283_v2  ;;  %1264 = vmatpush1.bf16.msra.mxu1 (!%p354_p3), %v2286_v6 }
  0x10   : > { %s3221_s28 = smov (!%p435_p5, %s2344_s28), 1  ;;  %1093 = vmatprep.subr.bf16.mxu0 %v2358_v0  ;;  %1265 = vmatprep.subr.bf16.mxu1 %v2358_v0 }
  0x11   : > { %s452_s13 = scalar_select %p451_p6, %s2438_s12, 15 }
  0x12   : > { %s2450_s16 = sshll.u32 %s3221_s28, 5 }
  0x13   : > { %s2000_s21 = sshll.u32 %s452_s13, 1  ;;  %1094 = vmatpush1.bf16.msra.mxu0 %v2285_v5  ;;  %1266 = vmatpush1.bf16.msra.mxu1 %v2288_v25  ;;  %v2291_v5 = vld [vmem:[%s3197_s3 + $0x88] sm:$0xff]  }
  0x14   : > { %s2460_s23 = sadd.s32 %s2000_s21, %s2450_s16  ;;  %1095 = vmatprep.subr.bf16.mxu0 %v2358_v0  ;;  %1267 = vmatprep.subr.bf16.mxu1 %v2358_v0 }
  0x15   : > { %s2002_s24 = sshll.u32 %s2460_s23, 2 }
  0x16   : > { %s2481_s20 = scalar_lea.vmem %s3195_s1, %s2002_s24 }
  0x17   : > { %v2170_v7 = vld [vmem:[%s2481_s20] sm:$0xff]   ;;  %s434_s21 = scalar_select %p433_p7, %s1990_s22, 0  ;;  %v2209_v8 = vld [vmem:[%s2481_s20 + $0x8] sm:$0xff]   ;;  %v2210_v9 = vld [vmem:[%s2481_s20 + $0x10] sm:$0xff]   ;;  %1096 = vmatpush1.bf16.msra.mxu0 %v2287_v24  ;;  %1268 = vmatpush1.bf16.msra.mxu1 %v2290_v30 }
  0x18   : > { %v2171_v10 = vunpack.c.l.bf16 %v2170_v7  ;;  %v2172_v11 = vunpack.c.h.bf16 %v2170_v7  ;;  %v2175_v12 = vunpack.c.l.bf16 %v2209_v8  ;;  %v2176_v13 = vunpack.c.h.bf16 %v2209_v8  ;;  %v2211_v14 = vld [vmem:[%s2481_s20 + $0x18] sm:$0xff]   ;;  %s2500_s14 = scalar_select %p620_p9, 1, 0  ;;  %v2527_v38 = vld [vmem:[%s2481_s20 + $0x20] sm:$0xff]   ;;  %1097 = vmatprep.subr.bf16.mxu0 %v2358_v0  ;;  %1269 = vmatprep.subr.bf16.mxu1 %v2358_v0  ;;  %v2296_v30 = vld [vmem:[%s3197_s3 + $0x30] sm:$0xff]  }
  0x19   : > { %s3223_s21 = smov (!%p1991_p8, %s434_s21), 15  ;;  %v2179_v16 = vunpack.c.l.bf16 %v2210_v9  ;;  %v2180_v17 = vunpack.c.h.bf16 %v2210_v9  ;;  %v2183_v18 = vunpack.c.l.bf16 %v2211_v14  ;;  %v2184_v19 = vunpack.c.h.bf16 %v2211_v14  ;;  %s2152_s22 = sadd.s32 8, %s2438_s12 }
  0x1a   : > { %v536_v20 = vmul.f32 %v2171_v10, %v2467_v4  ;;  %v537_v21 = vmul.f32 %v2172_v11, %v2467_v4  ;;  %v538_v22 = vmul.f32 %v2175_v12, %v2467_v4  ;;  %v539_v23 = vmul.f32 %v2176_v13, %v2467_v4  ;;  %s1996_s18 = sshll.u32 %s3223_s21, 1  ;;  %p2549_p10 = scmp.lt.s32.totalorder %s2152_s22, 15  ;;  %v2294_v10 = vld [vmem:[%s3197_s3 + $0x28] sm:$0xff]  }
  0x1b   : > { %v540_v26 = vmul.f32 %v2179_v16, %v2467_v4  ;;  %v541_v27 = vmul.f32 %v2180_v17, %v2467_v4  ;;  %v542_v28 = vmul.f32 %v2183_v18, %v2467_v4  ;;  %v543_v29 = vmul.f32 %v2184_v19, %v2467_v4  ;;  %s441_s21 = sadd.s32 %s2450_s16, %s1996_s18  ;;  %1098 = vmatpush1.bf16.msra.mxu0 %v2289_v43  ;;  %s2359_s18 = smov 64  }
  0x1c   : > { %v558_v31 = vadd.f32 %v2492_v15, %v536_v20  ;;  %v559_v32 = vadd.f32 %v2492_v15, %v537_v21  ;;  %v622_v33 = vstv %s2500_s14  ;;  %v560_v34 = vadd.f32 %v2492_v15, %v538_v22  ;;  %s1998_s26 = sshll.u32 %s441_s21, 2  ;;  %s3225_s22 = smov (!%p2549_p10, %s2152_s22), 15  ;;  %1099 = vmatprep.subr.bf16.mxu0 %v2358_v0  ;;  %1270 = vmatpush1.bf16.msra.mxu1 %v2292_v54  ;;  %v2293_v21 = vld [vmem:[%s3197_s3 + $0x90] sm:$0xff]  }
  0x1d   : > { %v561_v35 = vadd.f32 %v2492_v15, %v539_v23  ;;  %v562_v36 = vadd.f32 %v2492_v15, %v540_v26  ;;  %v563_v37 = vadd.f32 %v2492_v15, %v541_v27  ;;  %s443_s15 = scalar_lea.vmem %s3194_s0, %s1998_s26  ;;  %v564_v42 = vadd.f32 %v2492_v15, %v542_v28  ;;  %s2014_s26 = sshll.u32 %s3221_s28, 1  ;;  %1271 = vmatprep.subr.bf16.mxu1 %v2358_v0 }
  0x1e   : > { %v574_v39 = vmax.f32 %v558_v31, 0.0  ;;  %v575_v40 = vmax.f32 %v559_v32, 0.0  ;;  %v576_v41 = vmax.f32 %v560_v34, 0.0  ;;  %v2202_v44 = vld [vmem:[%s443_s15] sm:$0xff]   ;;  %vm2538_vm2 = vcmp.eq.s32.totalorder %v622_v33, 1  ;;  %s490_s28 = scalar_select %p489_p11, %s2340_s27, 1 }
  0x1f   : > { %v577_v46 = vmax.f32 %v561_v35, 0.0  ;;  %v578_v47 = vmax.f32 %v562_v36, 0.0  ;;  %v579_v48 = vmax.f32 %v563_v37, 0.0  ;;  %v565_v49 = vadd.f32 %v2492_v15, %v543_v29  ;;  %s3227_s22 = smov (!%p2549_p10, %s3225_s22), 15  ;;  %1100 = vmatpush1.bf16.msra.mxu0 %v2291_v5  ;;  %v2214_v5 = vld [vmem:[%s2481_s20 + $0x30] sm:$0xff]  }
  0x20   : > { %v590_v50 = vpack.c.bf16 %v575_v40, %v574_v39  ;;  %v2203_v51 = vunpack.c.l.bf16 %v2202_v44  ;;  %v2204_v52 = vunpack.c.h.bf16 %v2202_v44  ;;  %v580_v53 = vmax.f32 %v564_v42, 0.0  ;;  %s2590_s17 = sadd.s32 %s2014_s26, %s490_s28  ;;  %1101 = vmatprep.subr.bf16.mxu0 %v2358_v0  ;;  %1272 = vmatpush1.bf16.msra.mxu1 %v2294_v10  ;;  %s2631_s26 = sshll.u32 %s3227_s22, 1  ;;  %v2295_v39 = vld [vmem:[%s3197_s3 + $0x98] sm:$0xff]  }
  0x21   : > { %v591_v55 = vpack.c.bf16 %v577_v46, %v576_v41  ;;  %v592_v56 = vpack.c.bf16 %v579_v48, %v578_v47  ;;  %v581_v57 = vmax.f32 %v565_v49, 0.0  ;;  %v2187_v58 = vunpack.c.l.bf16 %v2527_v38  ;;  %1273 = vmatprep.subr.bf16.mxu1 %v2358_v0  ;;  %s2642_s28 = scalar_select %p489_p11, 1, 0 }
  0x22   : > { %v638_v59 = vshrl.u32 %v590_v50, 16  ;;  %v641_v60 = vshll.u32 %v590_v50, 16  ;;  %v602_v61 = vmul.f32 %v2203_v51, %v2467_v4  ;;  %v603_v62 = vmul.f32 %v2204_v52, %v2467_v4  ;;  %v2297_v52 = vld [vmem:[%s3197_s3 + $0xa0] sm:$0xff]   ;;  %s469_s21 = sadd.s32 %s2631_s26, %s2450_s16  ;;  %s2015_s23 = sshll.u32 %s2590_s17, 1 }
  0x23   : > { %v645_v63 = vshrl.u32 %v591_v55, 16  ;;  %v648_v1 = vshll.u32 %v591_v55, 16  ;;  %v652_v2 = vshrl.u32 %v592_v56, 16  ;;  %v655_v3 = vshll.u32 %v592_v56, 16  ;;  %1102 = vmatpush1.bf16.msra.mxu0 %v2293_v21  ;;  %s2702_s16 = sshll.u32 %s469_s21, 2 }
  0x24   : > { %v640_v6 = vrot.slane %v638_v59, 7  ;;  %v604_v7 = vadd.f32 %v2492_v15, %v602_v61  ;;  %v605_v8 = vadd.f32 %v2492_v15, %v603_v62  ;;  %v2573_v9 = vpack.c.bf16 %v581_v57, %v580_v53  ;;  %1103 = vmatprep.subr.bf16.mxu0 %v2358_v0  ;;  %1274 = vmatpush1.bf16.msra.mxu1 %v2296_v30  ;;  %v2298_v53 = vld [vmem:[%s3197_s3 + $0x38] sm:$0xff]   ;;  %v2213_v62 = vld [vmem:[%s2481_s20 + $0x28] sm:$0xff]   ;;  %s471_s15 = scalar_lea.vmem %s3196_s2, %s2702_s16 }
  0x25   : > { %v647_v12 = vrot.slane %v645_v63, 7  ;;  %v654_v13 = vrot.slane %v652_v2, 7  ;;  %v2188_v14 = vunpack.c.h.bf16 %v2527_v38  ;;  %v2587_v16 = vmul.f32 %v2187_v58, %v2467_v4  ;;  %1275 = vmatprep.subr.bf16.mxu1 %v2358_v0 }
  0x26   : > { %v643_v17 = vor.u32 %v641_v60, %v640_v6  ;;  %v2594_v18 = vsel %vm2581_vm4, %v640_v6, 0  ;;  %v606_v19 = vmax.f32 %v604_v7, 0.0  ;;  %v607_v20 = vmax.f32 %v605_v8, 0.0  ;;  %v2300_v6 = vld [vmem:[%s3197_s3 + $0x40] sm:$0xff]  }
  0x27   : > { %v764_v22 = vshll.u32 %v2594_v18, 16  ;;  %v650_v23 = vor.u32 %v648_v1, %v647_v12  ;;  %v2605_v24 = vsel %vm2581_vm4, %v647_v12, 0  ;;  %v657_v25 = vor.u32 %v655_v3, %v654_v13  ;;  %1104 = vmatpush1.bf16.msra.mxu0 %v2295_v39 }
  0x28   : > { %v2609_v26 = vsel %vm2581_vm4, 0, %v643_v17  ;;  %v608_v27 = vpack.c.bf16 %v607_v20, %v606_v19  ;;  %v776_v28 = vshll.u32 %v2605_v24, 16  ;;  %v2614_v29 = vsel %vm2581_vm4, %v654_v13, 0  ;;  %1105 = vmatprep.subr.bf16.mxu0 %v2358_v0  ;;  %1276 = vmatpush1.bf16.msra.mxu1 %v2298_v53  ;;  %v2299_v17 = vld [vmem:[%s3197_s3 + $0xa8] sm:$0xff]  }
  0x29   : > { %v757_v31 = vshrl.u32 %v2609_v26, 16  ;;  %v759_v32 = vshll.u32 %v2609_v26, 16  ;;  %v766_v33 = vrot.slane %v764_v22, 1  ;;  %v2624_v34 = vsel %vm2581_vm4, 0, %v650_v23  ;;  %1277 = vmatprep.subr.bf16.mxu1 %v2358_v0 }
  0x2a   : > { %v624_v35 = vsel %vm2538_vm2, %v608_v27, 0  ;;  %v769_v36 = vshrl.u32 %v2624_v34, 16  ;;  %v771_v37 = vshll.u32 %v2624_v34, 16  ;;  %v778_v38 = vrot.slane %v776_v28, 1 }
  0x2b   : > { %v761_v40 = vrot.slane %v759_v32, 1  ;;  %v631_v41 = vshrl.u32 %v624_v35, 16  ;;  %v634_v42 = vshll.u32 %v624_v35, 16  ;;  %v2638_v43 = vsel %vm2581_vm4, 0, %v657_v25  ;;  %1106 = vmatpush1.bf16.msra.mxu0 %v2297_v52  ;;  %v2302_v35 = vld [vmem:[%s3197_s3 + $0x48] sm:$0xff]  }
  0x2c   : > { %v773_v44 = vrot.slane %v771_v37, 1  ;;  %v781_v45 = vshrl.u32 %v2638_v43, 16  ;;  %v783_v46 = vshll.u32 %v2638_v43, 16  ;;  %v788_v47 = vshll.u32 %v2614_v29, 16  ;;  %1107 = vmatprep.subr.bf16.mxu0 %v2358_v0  ;;  %1278 = vmatpush1.bf16.msra.mxu1 %v2300_v6 }
  0x2d   : > { %v762_v48 = vor.u32 %v761_v40, %v757_v31  ;;  %v633_v49 = vrot.slane %v631_v41, 7  ;;  %v659_v50 = vshrl.u32 %v2573_v9, 16  ;;  %v662_v51 = vshll.u32 %v2573_v9, 16  ;;  %v2215_v40 = vld [vmem:[%s2481_s20 + $0x38] sm:$0xff]   ;;  %1279 = vmatprep.subr.bf16.mxu1 %v2358_v0 }
  0x2e   : > { %v774_v54 = vor.u32 %v773_v44, %v769_v36  ;;  %v785_v55 = vrot.slane %v783_v46, 1  ;;  %v790_v56 = vrot.slane %v788_v47, 1  ;;  %v545_v57 = vmul.f32 %v2188_v14, %v2467_v4  ;;  %v2301_v46 = vld [vmem:[%s3197_s3 + $0xb0] sm:$0xff]  }
  0x2f   : > { %v767_v58 = vsel %vm743_vm3, %v762_v48, %v766_v33  ;;  %v636_v59 = vor.u32 %v634_v42, %v633_v49  ;;  %v2661_v60 = vsel %vm2581_vm4, %v633_v49, 0  ;;  %v661_v61 = vrot.slane %v659_v50, 7  ;;  %1108 = vmatpush1.bf16.msra.mxu0 %v2299_v17 }
  0x30   : > { %842 = vrot.lane.b32.xlu0 %v767_v58, %s2359_s18  ;;  %v752_v63 = vshll.u32 %v2661_v60, 16  ;;  %v779_v1 = vsel %vm743_vm3, %v774_v54, %v778_v38  ;;  %v786_v2 = vor.u32 %v785_v55, %v781_v45  ;;  %v566_v3 = vadd.f32 %v2492_v15, %v2587_v16  ;;  %1109 = vmatprep.subr.bf16.mxu0 %v2358_v0  ;;  %v2304_v55 = vld [vmem:[%s3197_s3 + $0x50] sm:$0xff]  }
  0x31   : > { %v2676_v7 = vsel %vm2581_vm4, 0, %v636_v59  ;;  %v664_v8 = vor.u32 %v662_v51, %v661_v61  ;;  %v2680_v9 = vsel %vm2581_vm4, %v661_v61, 0  ;;  %v567_v10 = vadd.f32 %v2492_v15, %v545_v57  ;;  %1280 = vmatpush1.bf16.msra.mxu1 %v2302_v35  ;;  %v2206_v61 = vld [vmem:[%s471_s15] sm:$0xff]  }
  0x32   : > { %v745_v12 = vshrl.u32 %v2676_v7, 16  ;;  %v747_v13 = vshll.u32 %v2676_v7, 16  ;;  %v754_v14 = vrot.slane %v752_v63, 1  ;;  %v2688_v16 = vsel %vm743_vm3, %v786_v2, %v790_v56  ;;  %1281 = vmatprep.subr.bf16.mxu1 %v2358_v0 }
  0x33   : > { %v2696_v19 = vsel %vm2581_vm4, 0, %v664_v8  ;;  %v800_v20 = vshll.u32 %v2680_v9, 16  ;;  %v582_v21 = vmax.f32 %v566_v3, 0.0  ;;  %v583_v22 = vmax.f32 %v567_v10, 0.0  ;;  %1110 = vmatpush1.bf16.msra.mxu0 %v2301_v46  ;;  %v2303_v3 = vld [vmem:[%s3197_s3 + $0xb8] sm:$0xff]  }
  0x34   : > { %v749_v23 = vrot.slane %v747_v13, 1  ;;  %844 = vrot.lane.b32.xlu0 %v779_v1, %s2359_s18  ;;  %v793_v25 = vshrl.u32 %v2696_v19, 16  ;;  %v795_v27 = vshll.u32 %v2696_v19, 16  ;;  %v2191_v28 = vunpack.c.l.bf16 %v2213_v62  ;;  %1111 = vmatprep.subr.bf16.mxu0 %v2358_v0 }
  0x35   : > { %v802_v30 = vrot.slane %v800_v20, 1  ;;  %v594_v31 = vpack.c.bf16 %v583_v22, %v582_v21  ;;  %v2192_v32 = vunpack.c.h.bf16 %v2213_v62  ;;  %v2195_v33 = vunpack.c.l.bf16 %v2214_v5  ;;  %1282 = vmatpush1.bf16.msra.mxu1 %v2304_v55  ;;  %v2306_v20 = vld [vmem:[%s3197_s3 + $0x58] sm:$0xff]  }
  0x36   : > { %v750_v36 = vor.u32 %v749_v23, %v745_v12  ;;  %v797_v37 = vrot.slane %v795_v27, 1  ;;  %v546_v38 = vmul.f32 %v2191_v28, %v2467_v4  ;;  %v2196_v39 = vunpack.c.h.bf16 %v2214_v5  ;;  %1283 = vmatprep.subr.bf16.mxu1 %v2358_v0 }
  0x37   : > { %v666_v41 = vshrl.u32 %v594_v31, 16  ;;  %v669_v42 = vshll.u32 %v594_v31, 16  ;;  %v547_v44 = vmul.f32 %v2192_v32, %v2467_v4  ;;  %v548_v45 = vmul.f32 %v2195_v33, %v2467_v4  ;;  %1112 = vmatpush1.bf16.msra.mxu0 %v2303_v3 }
  0x38   : > { %v755_v47 = vsel %vm743_vm3, %v750_v36, %v754_v14  ;;  %v798_v48 = vor.u32 %v797_v37, %v793_v25  ;;  %v568_v49 = vadd.f32 %v2492_v15, %v546_v38  ;;  %v549_v50 = vmul.f32 %v2196_v39, %v2467_v4  ;;  %1480 = vmatprep.subr.bf16.mxu0 %v2358_v0 }
  0x39   : > { %840 = vrot.lane.b32.xlu1 %v755_v47, %s2359_s18  ;;  %v668_v51 = vrot.slane %v666_v41, 7  ;;  %v569_v52 = vadd.f32 %v2492_v15, %v547_v44  ;;  %v570_v53 = vadd.f32 %v2492_v15, %v548_v45  ;;  %v2199_v54 = vunpack.c.l.bf16 %v2215_v40  ;;  %1284 = vmatpush1.bf16.msra.mxu1 %v2306_v20 }
  0x3a   : > { %v803_v56 = vsel %vm743_vm3, %v798_v48, %v802_v30  ;;  %v584_v57 = vmax.f32 %v568_v49, 0.0  ;;  %v571_v58 = vadd.f32 %v2492_v15, %v549_v50  ;;  %v2200_v59 = vunpack.c.h.bf16 %v2215_v40  ;;  %2216 = vmatprep.subr.bf16.mxu1 %v2358_v0 }
  0x3b   : > { %848 = vrot.lane.b32.xlu0 %v803_v56, %s2359_s18  ;;  %v671_v62 = vor.u32 %v669_v42, %v668_v51  ;;  %v2736_v63 = vsel %vm2581_vm4, %v668_v51, 0  ;;  %v585_v1 = vmax.f32 %v569_v52, 0.0  ;;  %v586_v2 = vmax.f32 %v570_v53, 0.0 }
  0x3c   : > { %v812_v5 = vshll.u32 %v2736_v63, 16  ;;  %v587_v6 = vmax.f32 %v571_v58, 0.0  ;;  %v550_v8 = vmul.f32 %v2199_v54, %v2467_v4  ;;  %v551_v10 = vmul.f32 %v2200_v59, %v2467_v4 }
  0x3d   : > { %846 = vrot.lane.b32.xlu1 %v2688_v16, %s2359_s18  ;;  %v2749_v12 = vsel %vm2581_vm4, 0, %v671_v62  ;;  %v595_v13 = vpack.c.bf16 %v585_v1, %v584_v57  ;;  %v2207_v14 = vunpack.c.l.bf16 %v2206_v61  ;;  %v2208_v17 = vunpack.c.h.bf16 %v2206_v61 }
  0x3e   : > { %v805_v21 = vshrl.u32 %v2749_v12, 16  ;;  %v807_v22 = vshll.u32 %v2749_v12, 16  ;;  %v814_v23 = vrot.slane %v812_v5, 1  ;;  %v596_v25 = vpack.c.bf16 %v587_v6, %v586_v2 }
  0x3f   : > { %v673_v16 = vshrl.u32 %v595_v13, 16  ;;  %v676_v27 = vshll.u32 %v595_v13, 16  ;;  %v572_v28 = vadd.f32 %v2492_v15, %v550_v8  ;;  %v573_v30 = vadd.f32 %v2492_v15, %v551_v10 }
  0x40   : > { %v809_v31 = vrot.slane %v807_v22, 1  ;;  %v680_v32 = vshrl.u32 %v596_v25, 16  ;;  %v683_v33 = vshll.u32 %v596_v25, 16  ;;  %v613_v35 = vmul.f32 %v2207_v14, %v2467_v4 }
  0x41   : > { %v675_v36 = vrot.slane %v673_v16, 7  ;;  %v588_v37 = vmax.f32 %v572_v28, 0.0  ;;  %v589_v38 = vmax.f32 %v573_v30, 0.0  ;;  %v614_v39 = vmul.f32 %v2208_v17, %v2467_v4 }
  0x42   : > { %v810_v40 = vor.u32 %v809_v31, %v805_v21  ;;  %v682_v41 = vrot.slane %v680_v32, 7  ;;  %v615_v42 = vadd.f32 %v2492_v15, %v613_v35  ;;  %v627_v44 = vstv %s2642_s28  ;;  %s3051_s28 = scalar_lea.vmem %s3201_s7, %s2002_s24 }
  0x43   : > { %v678_v45 = vor.u32 %v676_v27, %v675_v36  ;;  %v2767_v46 = vsel %vm2581_vm4, %v675_v36, 0  ;;  %v597_v47 = vpack.c.bf16 %v589_v38, %v588_v37  ;;  %v616_v48 = vadd.f32 %v2492_v15, %v614_v39 }
  0x44   : > { %v815_v49 = vsel %vm743_vm3, %v810_v40, %v814_v23  ;;  %v824_v4 = vshll.u32 %v2767_v46, 16  ;;  %v685_v50 = vor.u32 %v683_v33, %v682_v41  ;;  %v2774_v51 = vsel %vm2581_vm4, %v682_v41, 0 }
  0x45   : > { %850 = vrot.lane.b32.xlu1 %v815_v49, %s2359_s18  ;;  %v2779_v52 = vsel %vm2581_vm4, 0, %v678_v45  ;;  %v836_v53 = vshll.u32 %v2774_v51, 16  ;;  %v687_v54 = vshrl.u32 %v597_v47, 16  ;;  %v690_v55 = vshll.u32 %v597_v47, 16 }
  0x46   : > { %v817_v15 = vshrl.u32 %v2779_v52, 16  ;;  %v819_v56 = vshll.u32 %v2779_v52, 16  ;;  %v826_v57 = vrot.slane %v824_v4, 1  ;;  %v2786_v58 = vsel %vm2581_vm4, 0, %v685_v50 }
  0x47   : > { %v829_v59 = vshrl.u32 %v2786_v58, 16  ;;  %v831_v61 = vshll.u32 %v2786_v58, 16  ;;  %v838_v62 = vrot.slane %v836_v53, 1  ;;  %v689_v1 = vrot.slane %v687_v54, 7 }
  0x48   : > { %v821_v2 = vrot.slane %v819_v56, 1  ;;  %v617_v3 = vmax.f32 %v615_v42, 0.0  ;;  %v618_v5 = vmax.f32 %v616_v48, 0.0  ;;  %vm2790_vm5 = vcmp.eq.s32.totalorder %v627_v44, 1 }
  0x49   : > { %v833_v8 = vrot.slane %v831_v61, 1  ;;  %v692_v10 = vor.u32 %v690_v55, %v689_v1  ;;  %v2796_v13 = vsel %vm2581_vm4, %v689_v1, 0  ;;  %v876_v21 = vrot.slane %v2609_v26, 1 }
  0x4a   : > { %v822_v14 = vor.u32 %v821_v2, %v817_v15  ;;  %v954_v17 = vshll.u32 %v2796_v13, 16  ;;  %v619_v20 = vpack.c.bf16 %v618_v5, %v617_v3  ;;  %v877_v25 = vrot.slane %v2594_v18, 1 }
  0x4b   : > { %v834_v22 = vor.u32 %v833_v8, %v829_v59  ;;  %v2802_v23 = vsel %vm2581_vm4, 0, %v692_v10  ;;  %v873_v18 = vrot.slane %v2676_v7, 1  ;;  %v874_v38 = vrot.slane %v2661_v60, 1 }
  0x4c   : > { %v827_v16 = vsel %vm743_vm3, %v822_v14, %v826_v57  ;;  %v947_v27 = vshrl.u32 %v2802_v23, 16  ;;  %v949_v28 = vshll.u32 %v2802_v23, 16  ;;  %v956_v30 = vrot.slane %v954_v17, 1 }
  0x4d   : > { %852 = vrot.lane.b32.xlu0 %v827_v16, %s2359_s18  ;;  %v839_v31 = vsel %vm743_vm3, %v834_v22, %v838_v62  ;;  %v629_v32 = vsel %vm2790_vm5, %v619_v20, 0  ;;  %v2813_v33 = vsel %vm872_vm6, %v876_v21, %v877_v25  ;;  %v879_v39 = vrot.slane %v2624_v34, 1  ;;  %v2305_v21 = vld [vmem:[%s3197_s3 + $0xc0] sm:$0xff]  }
  0x4e   : > { %854 = vrot.lane.b32.xlu1 %v839_v31, %s2359_s18  ;;  %v951_v35 = vrot.slane %v949_v28, 1  ;;  %v694_v36 = vshrl.u32 %v629_v32, 16  ;;  %v697_v37 = vshll.u32 %v629_v32, 16  ;;  %2054 = vmatprep.mubr.msk.bf16.mxu0 %vm897_vm7, %v2813_v33  ;;  %v880_v40 = vrot.slane %v2605_v24, 1  ;;  %v2309_v31 = vld [vmem:[%s3197_s3 + $0xd8] sm:$0xff]   ;;  %v2310_v32 = vld [vmem:[%s3197_s3 + $0xe0] sm:$0xff]  }
  0x4f   : > { %v882_v41 = vrot.slane %v2638_v43, 1  ;;  %v883_v42 = vrot.slane %v2614_v29, 1  ;;  %v875_v47 = vsel %vm872_vm6, %v873_v18, %v874_v38  ;;  %v885_v48 = vrot.slane %v2696_v19, 1  ;;  %v2314_v38 = vld [vmem:[%s3197_s3 + $0x100] sm:$0xff]  }
  0x50   : > { %v952_v44 = vor.u32 %v951_v35, %v947_v27  ;;  %v696_v45 = vrot.slane %v694_v36, 7  ;;  %2074 = vmatprep.mubr.msk.bf16.mxu1 %vm897_vm7, %v875_v47  ;;  %v2828_v49 = vsel %vm872_vm6, %v879_v39, %v880_v40  ;;  %v886_v24 = vrot.slane %v2680_v9, 1  ;;  %v2312_v35 = vld [vmem:[%s3197_s3 + $0xf0] sm:$0xff]   ;;  %v2313_v36 = vld [vmem:[%s3197_s3 + $0xf8] sm:$0xff]   ;;  %v2315_v39 = vld [vmem:[%s3197_s3 + $0x108] sm:$0xff]  }
  0x51   : > { %v2831_v60 = vsel %vm872_vm6, %v882_v41, %v883_v42  ;;  %v888_v4 = vrot.slane %v2749_v12, 1  ;;  %v889_v54 = vrot.slane %v2736_v63, 1  ;;  %v891_v56 = vrot.slane %v2779_v52, 1  ;;  %v2316_v41 = vld [vmem:[%s3197_s3 + $0x110] sm:$0xff]   ;;  %v2317_v42 = vld [vmem:[%s3197_s3 + $0x118] sm:$0xff]  }
  0x52   : > { %v957_v29 = vsel %vm743_vm3, %v952_v44, %v956_v30  ;;  %v699_v50 = vor.u32 %v697_v37, %v696_v45  ;;  %v742_v53 = vsel %vm2581_vm4, %v696_v45, 0  ;;  %v2841_v15 = vsel %vm872_vm6, %v885_v48, %v886_v24 }
  0x53   : > { %958 = vrot.lane.b32.xlu0 %v957_v29, %s2359_s18  ;;  %v1366_v55 = vshll.u32 %v742_v53, 16  ;;  %v892_v9 = vrot.slane %v2767_v46, 1  ;;  %v2850_v59 = vsel %vm872_vm6, %v888_v4, %v889_v54  ;;  %v894_v1 = vrot.slane %v2786_v58, 1 }
  0x54   : > { %v2847_v57 = vsel %vm2581_vm4, 0, %v699_v50  ;;  %v895_v2 = vrot.slane %v2774_v51, 1  ;;  %v962_v8 = vrot.slane %v2802_v23, 1  ;;  %v963_v10 = vrot.slane %v2796_v13, 1  ;;  %v2307_v13 = vld [vmem:[%s3197_s3 + $0xc8] sm:$0xff]  }
  0x55   : > { %v1359_v61 = vshrl.u32 %v2847_v57, 16  ;;  %v1361_v63 = vshll.u32 %v2847_v57, 16  ;;  %v2855_v62 = vsel %vm872_vm6, %v891_v56, %v892_v9  ;;  %v1368_v46 = vrot.slane %v1366_v55, 1 }
  0x56   : > { %v2860_v11 = vsel %vm872_vm6, %v894_v1, %v895_v2  ;;  %v2867_v14 = vsel %vm872_vm6, %v962_v8, %v963_v10  ;;  %v1374_v17 = vrot.slane %v2847_v57, 1  ;;  %v1375_v51 = vrot.slane %v742_v53, 1 }
  0x57   : > { %v1363_v3 = vrot.slane %v1361_v63, 1 }
  0x58   : > { %v2871_v20 = vsel %vm872_vm6, %v1374_v17, %v1375_v51 }
  0x59   : > { %v1364_v5 = vor.u32 %v1363_v3, %v1359_v61 }
  0x5b   : > { %v1369_v6 = vsel %vm743_vm3, %v1364_v5, %v1368_v46 }
  0x5c   : > { %1370 = vrot.lane.b32.xlu1 %v1369_v6, %s2359_s18  ;;  %s494_s18 = scalar_lea.vmem %s3202_s8, %s2015_s23 }
  0xa2   : > { %v843_v22 = vpop.permute.xlu0 %842 }
  0xa3   : > { %v902_v25 = vsel %vm897_vm7, %v2609_v26, %v843_v22  ;;  %v2308_v26 = vld [vmem:[%s3197_s3 + $0xd0] sm:$0xff]  }
  0xa4   : > { %1122 = vmatmul.mubr.bf16.vlgmr.msra.gmra.mrb[0].mxu0 %v902_v25 }
  0xa5   : > { %1481 = vmatpush1.bf16.msra.mxu0 %v2305_v21  ;;  %2055 = vmatprep.mubr.msk.bf16.mxu0 %vm897_vm7, %v2828_v49 }
  0xa6   : > { %1482 = vmatprep.subr.bf16.mxu0 %v2358_v0  ;;  %v845_v16 = vpop.permute.xlu0 %844 }
  0xa7   : > { %v2886_v27 = vsel %vm897_vm7, %v2624_v34, %v845_v16 }
  0xa9   : > { %1483 = vmatpush1.bf16.msra.mxu0 %v2307_v13 }
  0xaa   : > { %1484 = vmatprep.subr.bf16.mxu0 %v2358_v0 }
  0xab   : > { %v841_v28 = vpop.permute.xlu1 %840 }
  0xac   : > { %v899_v30 = vsel %vm897_vm7, %v2676_v7, %v841_v28  ;;  %1130 = vmatmul.mubr.bf16.gmra.mrb[4].mxu0 %v2886_v27 }
  0xad   : > { %1294 = vmatmul.mubr.bf16.vlgmr.msra.gmra.mrb[0].mxu1 %v899_v30  ;;  %1485 = vmatpush1.bf16.msra.mxu0 %v2308_v26 }
  0xae   : > { %2075 = vmatprep.mubr.msk.bf16.mxu1 %vm897_vm7, %v2813_v33  ;;  %2056 = vmatprep.mubr.msk.bf16.mxu0 %vm897_vm7, %v2831_v60  ;;  %v2311_v33 = vld [vmem:[%s3197_s3 + $0xe8] sm:$0xff]  }
  0xaf   : > { %v847_v34 = vpop.permute.xlu1 %846  ;;  %1486 = vmatprep.subr.bf16.mxu0 %v2358_v0  ;;  %2228 = vmatpush1.bf16.msra.mxu1 %v2305_v21 }
  0xb0   : > { %2217 = vmatprep.subr.bf16.mxu1 %v2358_v0  ;;  %v2906_v7 = vsel %vm897_vm7, %v2638_v43, %v847_v34  ;;  %v849_v43 = vpop.permute.xlu0 %848 }
  0xb1   : > { %1487 = vmatpush1.bf16.msra.mxu0 %v2309_v31  ;;  %v2925_v18 = vsel %vm897_vm7, %v2696_v19, %v849_v43 }
  0xb2   : > { %1488 = vmatprep.subr.bf16.mxu0 %v2358_v0 }
  0xb3   : > { %2229 = vmatpush1.bf16.msra.mxu1 %v2307_v13 }
  0xb4   : > { %1138 = vmatmul.mubr.bf16.gmra.mrb[8].mxu0 %v2906_v7  ;;  %2218 = vmatprep.subr.bf16.mxu1 %v2358_v0 }
  0xb5   : > { %1302 = vmatmul.mubr.bf16.gmra.mrb[4].mxu1 %v902_v25  ;;  %1489 = vmatpush1.bf16.msra.mxu0 %v2310_v32 }
  0xb6   : > { %2076 = vmatprep.mubr.msk.bf16.mxu1 %vm897_vm7, %v2828_v49  ;;  %2057 = vmatprep.mubr.msk.bf16.mxu0 %vm897_vm7, %v2841_v15 }
  0xb7   : > { %1490 = vmatprep.subr.bf16.mxu0 %v2358_v0  ;;  %2230 = vmatpush1.bf16.msra.mxu1 %v2308_v26  ;;  %v851_v19 = vpop.permute.xlu1 %850 }
  0xb8   : > { %2219 = vmatprep.subr.bf16.mxu1 %v2358_v0  ;;  %v914_v37 = vsel %vm897_vm7, %v2749_v12, %v851_v19 }
  0xb9   : > { %1491 = vmatpush1.bf16.msra.mxu0 %v2311_v33 }
  0xba   : > { %1492 = vmatprep.subr.bf16.mxu0 %v2358_v0 }
  0xbb   : > { %2231 = vmatpush1.bf16.msra.mxu1 %v2309_v31 }
  0xbc   : > { %1146 = vmatmul.mubr.bf16.gmra.mrb[12].mxu0 %v2925_v18  ;;  %2220 = vmatprep.subr.bf16.mxu1 %v2358_v0 }
  0xbd   : > { %1310 = vmatmul.mubr.bf16.gmra.mrb[8].mxu1 %v2886_v27  ;;  %2058 = vmatprep.mubr.msk.bf16.mxu0 %vm897_vm7, %v2850_v59 }
  0xbe   : > { %2077 = vmatprep.mubr.msk.bf16.mxu1 %vm897_vm7, %v2831_v60  ;;  %1493 = vmatpush1.bf16.msra.mxu0 %v2312_v35 }
  0xbf   : > { %2232 = vmatpush1.bf16.msra.mxu1 %v2310_v32  ;;  %1494 = vmatprep.subr.bf16.mxu0 %v2358_v0  ;;  %v853_v12 = vpop.permute.xlu0 %852 }
  0xc0   : > { %2221 = vmatprep.subr.bf16.mxu1 %v2358_v0  ;;  %v917_v40 = vsel %vm897_vm7, %v2779_v52, %v853_v12  ;;  %v855_v52 = vpop.permute.xlu1 %854 }
  0xc1   : > { %v920_v44 = vsel %vm897_vm7, %v2786_v58, %v855_v52 }
  0xc2   : > { %1495 = vmatpush1.bf16.msra.mxu0 %v2313_v36 }
  0xc3   : > { %2233 = vmatpush1.bf16.msra.mxu1 %v2311_v33  ;;  %1496 = vmatprep.subr.bf16.mxu0 %v2358_v0 }
  0xc4   : > { %1154 = vmatmul.mubr.bf16.gmra.mrb[16].mxu0 %v914_v37  ;;  %2222 = vmatprep.subr.bf16.mxu1 %v2358_v0 }
  0xc5   : > { %1318 = vmatmul.mubr.bf16.gmra.mrb[12].mxu1 %v2906_v7  ;;  %2059 = vmatprep.mubr.msk.bf16.mxu0 %vm897_vm7, %v2855_v62  ;;  %v959_v45 = vpop.permute.xlu0 %958 }
  0xc6   : > { %2078 = vmatprep.mubr.msk.bf16.mxu1 %vm897_vm7, %v2841_v15  ;;  %1497 = vmatpush1.bf16.msra.mxu0 %v2314_v38  ;;  %v966_v47 = vsel %vm897_vm7, %v2802_v23, %v959_v45 }
  0xc7   : > { %2234 = vmatpush1.bf16.msra.mxu1 %v2312_v35  ;;  %1498 = vmatprep.subr.bf16.mxu0 %v2358_v0 }
  0xc8   : > { %2223 = vmatprep.subr.bf16.mxu1 %v2358_v0 }
  0xca   : > { %1499 = vmatpush1.bf16.msra.mxu0 %v2315_v39 }
  0xcb   : > { %2235 = vmatpush1.bf16.msra.mxu1 %v2313_v36  ;;  %1500 = vmatprep.subr.bf16.mxu0 %v2358_v0 }
  0xcc   : > { %1162 = vmatmul.mubr.bf16.gmra.mrb[20].mxu0 %v917_v40  ;;  %2224 = vmatprep.subr.bf16.mxu1 %v2358_v0 }
  0xcd   : > { %1326 = vmatmul.mubr.bf16.gmra.mrb[16].mxu1 %v2925_v18  ;;  %2060 = vmatprep.mubr.msk.bf16.mxu0 %vm897_vm7, %v2860_v11 }
  0xce   : > { %2079 = vmatprep.mubr.msk.bf16.mxu1 %vm897_vm7, %v2850_v59  ;;  %1501 = vmatpush1.bf16.msra.mxu0 %v2316_v41 }
  0xcf   : > { %2236 = vmatpush1.bf16.msra.mxu1 %v2314_v38  ;;  %1502 = vmatprep.subr.bf16.mxu0 %v2358_v0 }
  0xd0   : > { %2225 = vmatprep.subr.bf16.mxu1 %v2358_v0 }
  0xd2   : > { %1503 = vmatpush1.bf16.msra.mxu0 %v2317_v42 }
  0xd3   : > { %2237 = vmatpush1.bf16.msra.mxu1 %v2315_v39 }
  0xd4   : > { %1170 = vmatmul.mubr.bf16.gmra.mrb[24].mxu0 %v920_v44  ;;  %2226 = vmatprep.subr.bf16.mxu1 %v2358_v0 }
  0xd5   : > { %1334 = vmatmul.mubr.bf16.gmra.mrb[20].mxu1 %v914_v37  ;;  %2061 = vmatprep.mubr.msk.bf16.mxu0 %vm897_vm7, %v2867_v14 }
  0xd6   : > { %2080 = vmatprep.mubr.msk.bf16.mxu1 %vm897_vm7, %v2855_v62 }
  0xd7   : > { %2238 = vmatpush1.bf16.msra.mxu1 %v2316_v41 }
  0xd8   : > { %2227 = vmatprep.subr.bf16.mxu1 %v2358_v0  ;;  %v1371_v0 = vpop.permute.xlu1 %1370 }
  0xd9   : > { %v1378_v58 = vsel %vm897_vm7, %v2847_v57, %v1371_v0 }
  0xdb   : > { %2239 = vmatpush1.bf16.msra.mxu1 %v2317_v42 }
  0xdc   : > { %1178 = vmatmul.mubr.bf16.gmra.mrb[28].mxu0 %v966_v47 }
  0xdd   : > { %1342 = vmatmul.mubr.bf16.gmra.mrb[24].mxu1 %v917_v40  ;;  %2118 = vmatprep.mubr.msk.bf16.mxu0 %vm897_vm7, %v2828_v49 }
  0xde   : > { %2081 = vmatprep.mubr.msk.bf16.mxu1 %vm897_vm7, %v2860_v11 }
  0xe4   : > { %1513 = vmatmul.mubr.bf16.vlgmr.msra.gmra.mrb[32].mxu0 %v2886_v27 }
  0xe5   : > { %1350 = vmatmul.mubr.bf16.gmra.mrb[28].mxu1 %v920_v44  ;;  %2119 = vmatprep.mubr.msk.bf16.mxu0 %vm897_vm7, %v2831_v60 }
  0xe6   : > { %2122 = vmatprep.mubr.msk.bf16.mxu1 %vm897_vm7, %v2855_v62 }
  0xec   : > { %1521 = vmatmul.mubr.bf16.gmra.mrb[36].mxu0 %v2906_v7 }
  0xed   : > { %1545 = vmatmul.mubr.bf16.vlgmr.msra.gmra.mrb[32].mxu1 %v917_v40  ;;  %2120 = vmatprep.mubr.msk.bf16.mxu0 %vm897_vm7, %v2841_v15 }
  0xee   : > { %2123 = vmatprep.mubr.msk.bf16.mxu1 %vm897_vm7, %v2860_v11 }
  0xf4   : > { %1529 = vmatmul.mubr.bf16.gmra.mrb[40].mxu0 %v2925_v18 }
  0xf5   : > { %1553 = vmatmul.mubr.bf16.gmra.mrb[36].mxu1 %v920_v44  ;;  %2121 = vmatprep.mubr.msk.bf16.mxu0 %vm897_vm7, %v2850_v59 }
  0xf6   : > { %2124 = vmatprep.mubr.msk.bf16.mxu1 %vm897_vm7, %v2867_v14 }
  0xfc   : > { %1537 = vmatmul.mubr.bf16.gmra.mrb[44].mxu0 %v914_v37 }
  0xfd   : > { %1561 = vmatmul.mubr.bf16.gmra.mrb[40].mxu1 %v966_v47 }
  0xfe   : > { %2125 = vmatprep.mubr.msk.bf16.mxu1 %vm897_vm7, %v2871_v20 }
 0x105   : > { %1569 = vmatmul.mubr.bf16.gmra.mrb[44].mxu1 %v1378_v58 }
 0x177   : > { %v1123_v23 = vpop.f32.mrb[0].mxu0 }
 0x178   : > { %v1125_v48 = vpop.f32.mrb[1].mxu0 }
 0x179   : > { %v1126_v49 = vpop.f32.mrb[2].mxu0 }
 0x17a   : > { %v1128_v60 = vpop.f32.mrb[3].mxu0 }
 0x17f   : > { %v1131_v24 = vpop.f32.mrb[4].mxu0 }
 0x180   : > { %v1295_v4 = vpop.f32.mrb[0].mxu1  ;;  %v1133_v29 = vpop.f32.mrb[5].mxu0 }
 0x181   : > { %v3010_v50 = vadd.f32 %v1295_v4, %v1123_v23  ;;  %v1297_v53 = vpop.f32.mrb[1].mxu1  ;;  %v1134_v54 = vpop.f32.mrb[6].mxu0 }
 0x182   : > { %v1298_v55 = vpop.f32.mrb[2].mxu1  ;;  %v1136_v15 = vpop.f32.mrb[7].mxu0 }
 0x183   : > { %v3012_v56 = vadd.f32 %v1298_v55, %v1126_v49  ;;  %v1300_v9 = vpop.f32.mrb[3].mxu1 }
 0x184   : > { %v3039_v9 = vld [vmem:[%s3198_s4] ss:$0 sm:$0xff] }
 0x187   : > { %v1139_v59 = vpop.f32.mrb[8].mxu0 }
 0x188   : > { %v1303_v61 = vpop.f32.mrb[4].mxu1  ;;  %v1141_v57 = vpop.f32.mrb[9].mxu0 }
 0x189   : > { %v3014_v63 = vadd.f32 %v1303_v61, %v1131_v24  ;;  %v1305_v62 = vpop.f32.mrb[5].mxu1  ;;  %v1142_v1 = vpop.f32.mrb[10].mxu0 }
 0x18a   : > { %v1306_v2 = vpop.f32.mrb[6].mxu1  ;;  %v1144_v3 = vpop.f32.mrb[11].mxu0 }
 0x18b   : > { %v3016_v46 = vadd.f32 %v1306_v2, %v1134_v54  ;;  %v1308_v11 = vpop.f32.mrb[7].mxu1 }
 0x18f   : > { %v1147_v5 = vpop.f32.mrb[12].mxu0 }
 0x190   : > { %v1311_v6 = vpop.f32.mrb[8].mxu1  ;;  %v1149_v8 = vpop.f32.mrb[13].mxu0 }
 0x191   : > { %v3018_v10 = vadd.f32 %v1311_v6, %v1139_v59  ;;  %v1313_v14 = vpop.f32.mrb[9].mxu1  ;;  %v1150_v17 = vpop.f32.mrb[14].mxu0 }
 0x192   : > { %v1314_v51 = vpop.f32.mrb[10].mxu1  ;;  %v1152_v20 = vpop.f32.mrb[15].mxu0 }
 0x193   : > { %v3020_v21 = vadd.f32 %v1314_v51, %v1142_v1  ;;  %v1316_v22 = vpop.f32.mrb[11].mxu1 }
 0x197   : > { %v1155_v25 = vpop.f32.mrb[16].mxu0 }
 0x198   : > { %v1319_v13 = vpop.f32.mrb[12].mxu1  ;;  %v1157_v16 = vpop.f32.mrb[17].mxu0 }
 0x199   : > { %v3022_v27 = vadd.f32 %v1319_v13, %v1147_v5  ;;  %v1321_v26 = vpop.f32.mrb[13].mxu1  ;;  %v1158_v28 = vpop.f32.mrb[18].mxu0 }
 0x19a   : > { %v1322_v30 = vpop.f32.mrb[14].mxu1  ;;  %v1160_v31 = vpop.f32.mrb[19].mxu0 }
 0x19b   : > { %v3024_v34 = vadd.f32 %v1322_v30, %v1150_v17  ;;  %v1324_v7 = vpop.f32.mrb[15].mxu1 }
 0x19f   : > { %v1163_v32 = vpop.f32.mrb[20].mxu0 }
 0x1a0   : > { %v1327_v33 = vpop.f32.mrb[16].mxu1  ;;  %v1165_v43 = vpop.f32.mrb[21].mxu0 }
 0x1a1   : > { %v1328_v18 = vadd.f32 %v1327_v33, %v1155_v25  ;;  %v1329_v35 = vpop.f32.mrb[17].mxu1  ;;  %v1166_v19 = vpop.f32.mrb[22].mxu0 }
 0x1a2   : > { %v1330_v36 = vpop.f32.mrb[18].mxu1  ;;  %v1168_v37 = vpop.f32.mrb[23].mxu0 }
 0x1a3   : > { %v3026_v38 = vadd.f32 %v1330_v36, %v1158_v28  ;;  %v1332_v12 = vpop.f32.mrb[19].mxu1 }
 0x1a7   : > { %v1171_v39 = vpop.f32.mrb[24].mxu0 }
 0x1a8   : > { %v1335_v40 = vpop.f32.mrb[20].mxu1  ;;  %v1173_v41 = vpop.f32.mrb[25].mxu0 }
 0x1a9   : > { %v3028_v52 = vadd.f32 %v1335_v40, %v1163_v32  ;;  %v1337_v42 = vpop.f32.mrb[21].mxu1  ;;  %v1174_v44 = vpop.f32.mrb[26].mxu0 }
 0x1aa   : > { %v1338_v45 = vpop.f32.mrb[22].mxu1  ;;  %v1176_v47 = vpop.f32.mrb[27].mxu0 }
 0x1ab   : > { %v3030_v0 = vadd.f32 %v1338_v45, %v1166_v19  ;;  %v1340_v58 = vpop.f32.mrb[23].mxu1 }
 0x1af   : > { %v1179_v23 = vpop.f32.mrb[28].mxu0 }
 0x1b0   : > { %v1343_v48 = vpop.f32.mrb[24].mxu1  ;;  %v1181_v49 = vpop.f32.mrb[29].mxu0 }
 0x1b1   : > { %v3032_v60 = vadd.f32 %v1343_v48, %v1171_v39  ;;  %v1345_v24 = vpop.f32.mrb[25].mxu1  ;;  %v1182_v4 = vpop.f32.mrb[30].mxu0 }
 0x1b2   : > { %v1346_v29 = vpop.f32.mrb[26].mxu1  ;;  %v1184_v53 = vpop.f32.mrb[31].mxu0 }
 0x1b3   : > { %v3034_v54 = vadd.f32 %v1346_v29, %v1174_v44  ;;  %v1348_v55 = vpop.f32.mrb[27].mxu1 }
 0x1b7   : > { %v1514_v15 = vpop.f32.mrb[32].mxu0 }
 0x1b8   : > { %v1351_v59 = vpop.f32.mrb[28].mxu1  ;;  %v1577_v61 = vadd.f32 %v1514_v15, %v3010_v50  ;;  %v1516_v57 = vpop.f32.mrb[33].mxu0 }
 0x1b9   : > { %v3042_v62 = vadd.f32 %v1351_v59, %v1179_v23  ;;  %v1353_v1 = vpop.f32.mrb[29].mxu1  ;;  %v1517_v2 = vpop.f32.mrb[34].mxu0 }
 0x1ba   : > { %v1354_v3 = vpop.f32.mrb[30].mxu1  ;;  %v1600_v11 = vadd.f32 %v3039_v9, %v1577_v61  ;;  %v1578_v5 = vadd.f32 %v1517_v2, %v3012_v56  ;;  %v1519_v6 = vpop.f32.mrb[35].mxu0 }
 0x1bb   : > { %v3053_v50 = vadd.f32 %v1354_v3, %v1182_v4  ;;  %v1356_v8 = vpop.f32.mrb[31].mxu1 }
 0x1bc   : > { %v2153_v14 = vpack.c.bf16 %v1600_v11, %v1600_v11  ;;  %v1736_v17 = vmul.f32 %v1600_v11, %v1600_v11  ;;  %v1601_v51 = vadd.f32 %v3039_v9, %v1578_v5  ;;  %v1697_v56 = vsel %vm897_vm7, %v1600_v11, 0.0 }
 0x1be   : > { %1681 = vst.msk [vmem:[%s3051_s28] sm:$0xf] %vm1680_vm8, %v2153_v14  ;;  %v2154_v20 = vpack.c.bf16 %v1601_v51, %v1601_v51  ;;  %v1698_v22 = vsel %vm897_vm7, %v1601_v51, 0.0  ;;  %v1737_v25 = vmul.f32 %v1601_v51, %v1601_v51  ;;  %v1752_v26 = vsel %vm897_vm7, %v1736_v17, 0.0 }
 0x1bf   : > { %v1699_v13 = vadd.f32 %v1698_v22, %v1697_v56  ;;  %v1522_v16 = vpop.f32.mrb[36].mxu0 }
 0x1c0   : > { %1682 = vst.msk [vmem:[%s3051_s28 + $0x4] sm:$0xf] %vm1680_vm8, %v2154_v20  ;;  %v1753_v28 = vsel %vm897_vm7, %v1737_v25, 0.0  ;;  %v1546_v30 = vpop.f32.mrb[32].mxu1  ;;  %v1579_v31 = vadd.f32 %v1522_v16, %v3014_v63  ;;  %v1524_v7 = vpop.f32.mrb[37].mxu0 }
 0x1c1   : > { %v1754_v32 = vadd.f32 %v1753_v28, %v1752_v26  ;;  %v1585_v33 = vadd.f32 %v1546_v30, %v1328_v18  ;;  %v1548_v43 = vpop.f32.mrb[33].mxu1  ;;  %v1525_v35 = vpop.f32.mrb[38].mxu0 }
 0x1c2   : > { %v1549_v19 = vpop.f32.mrb[34].mxu1  ;;  %v1602_v36 = vadd.f32 %v3039_v9, %v1579_v31  ;;  %v1580_v37 = vadd.f32 %v1525_v35, %v3016_v46  ;;  %v1527_v12 = vpop.f32.mrb[39].mxu0 }
 0x1c3   : > { %v3068_v39 = vadd.f32 %v3039_v9, %v1585_v33  ;;  %v1586_v40 = vadd.f32 %v1549_v19, %v3026_v38  ;;  %v1551_v41 = vpop.f32.mrb[35].mxu1 }
 0x1c4   : > { %v2155_v63 = vpack.c.bf16 %v1602_v36, %v1602_v36  ;;  %v1700_v18 = vsel %vm897_vm7, %v1602_v36, 0.0  ;;  %v1738_v42 = vmul.f32 %v1602_v36, %v1602_v36  ;;  %v1603_v44 = vadd.f32 %v3039_v9, %v1580_v37 }
 0x1c5   : > { %v2161_v45 = vpack.c.bf16 %v3068_v39, %v3068_v39  ;;  %v3076_v46 = vadd.f32 %v3039_v9, %v1586_v40  ;;  %v1701_v47 = vadd.f32 %v1700_v18, %v1699_v13 }
 0x1c6   : > { %1683 = vst.msk [vmem:[%s3051_s28 + $0x8] sm:$0xf] %vm1680_vm8, %v2155_v63  ;;  %v1755_v38 = vsel %vm897_vm7, %v1738_v42, 0.0  ;;  %v2156_v58 = vpack.c.bf16 %v1603_v44, %v1603_v44  ;;  %v1702_v23 = vsel %vm897_vm7, %v1603_v44, 0.0  ;;  %v1739_v29 = vmul.f32 %v1603_v44, %v1603_v44 }
 0x1c7   : > { %1689 = vst.msk [vmem:[%s3051_s28 + $0x20] sm:$0xf] %vm1680_vm8, %v2161_v45  ;;  %v2162_v48 = vpack.c.bf16 %v3076_v46, %v3076_v46  ;;  %v1530_v49 = vpop.f32.mrb[40].mxu0  ;;  %v1756_v24 = vadd.f32 %v1755_v38, %v1754_v32  ;;  %v1703_v4 = vadd.f32 %v1702_v23, %v1701_v47 }
 0x1c8   : > { %1684 = vst.msk [vmem:[%s3051_s28 + $0xc] sm:$0xf] %vm1680_vm8, %v2156_v58  ;;  %v1554_v53 = vpop.f32.mrb[36].mxu1  ;;  %v1581_v55 = vadd.f32 %v1530_v49, %v3018_v10  ;;  %v1532_v15 = vpop.f32.mrb[41].mxu0  ;;  %v1757_v1 = vsel %vm897_vm7, %v1739_v29, 0.0 }
 0x1c9   : > { %1690 = vst.msk [vmem:[%s3051_s28 + $0x24] sm:$0xf] %vm1680_vm8, %v2162_v48  ;;  %v1587_v59 = vadd.f32 %v1554_v53, %v3028_v52  ;;  %v1556_v61 = vpop.f32.mrb[37].mxu1  ;;  %v1533_v57 = vpop.f32.mrb[42].mxu0  ;;  %v1758_v6 = vadd.f32 %v1757_v1, %v1756_v24  ;;  %v1744_v24 = vmul.f32 %v3068_v39, %v3068_v39  ;;  %v1712_v15 = vsel %vm897_vm7, %v3068_v39, 0.0 }
 0x1ca   : > { %v1557_v2 = vpop.f32.mrb[38].mxu1  ;;  %v1604_v3 = vadd.f32 %v3039_v9, %v1581_v55  ;;  %v1582_v11 = vadd.f32 %v1533_v57, %v3020_v21  ;;  %v1535_v5 = vpop.f32.mrb[43].mxu0  ;;  %v1745_v57 = vmul.f32 %v3076_v46, %v3076_v46 }
 0x1cb   : > { %v3096_v10 = vadd.f32 %v3039_v9, %v1587_v59  ;;  %v1588_v8 = vadd.f32 %v1557_v2, %v3030_v0  ;;  %v1559_v14 = vpop.f32.mrb[39].mxu1 }
 0x1cc   : > { %v2157_v52 = vpack.c.bf16 %v1604_v3, %v1604_v3  ;;  %v1704_v17 = vsel %vm897_vm7, %v1604_v3, 0.0  ;;  %v1740_v51 = vmul.f32 %v1604_v3, %v1604_v3  ;;  %v1605_v56 = vadd.f32 %v3039_v9, %v1582_v11 }
 0x1cd   : > { %v2163_v20 = vpack.c.bf16 %v3096_v10, %v3096_v10  ;;  %v3104_v21 = vadd.f32 %v3039_v9, %v1588_v8  ;;  %v1705_v22 = vadd.f32 %v1704_v17, %v1703_v4  ;;  %v1714_v11 = vsel %vm897_vm7, %v3076_v46, 0.0 }
 0x1ce   : > { %1685 = vst.msk [vmem:[%s3051_s28 + $0x10] sm:$0xf] %vm1680_vm8, %v2157_v52  ;;  %v1759_v0 = vsel %vm897_vm7, %v1740_v51, 0.0  ;;  %v2158_v25 = vpack.c.bf16 %v1605_v56, %v1605_v56  ;;  %v1706_v13 = vsel %vm897_vm7, %v1605_v56, 0.0  ;;  %v1741_v31 = vmul.f32 %v1605_v56, %v1605_v56 }
 0x1cf   : > { %1691 = vst.msk [vmem:[%s3051_s28 + $0x28] sm:$0xf] %vm1680_vm8, %v2163_v20  ;;  %v2164_v16 = vpack.c.bf16 %v3104_v21, %v3104_v21  ;;  %v1538_v26 = vpop.f32.mrb[44].mxu0  ;;  %v1760_v28 = vadd.f32 %v1759_v0, %v1758_v6  ;;  %v1707_v30 = vadd.f32 %v1706_v13, %v1705_v22  ;;  %v1746_v14 = vmul.f32 %v3096_v10, %v3096_v10 }
 0x1d0   : > { %1686 = vst.msk [vmem:[%s3051_s28 + $0x14] sm:$0xf] %vm1680_vm8, %v2158_v25  ;;  %v1562_v7 = vpop.f32.mrb[40].mxu1  ;;  %v1583_v32 = vadd.f32 %v1538_v26, %v3022_v27  ;;  %v1540_v33 = vpop.f32.mrb[45].mxu0  ;;  %v1761_v36 = vsel %vm897_vm7, %v1741_v31, 0.0  ;;  %v1716_v17 = vsel %vm897_vm7, %v3096_v10, 0.0  ;;  %v1747_v20 = vmul.f32 %v3104_v21, %v3104_v21 }
 0x1d1   : > { %1692 = vst.msk [vmem:[%s3051_s28 + $0x2c] sm:$0xf] %vm1680_vm8, %v2164_v16  ;;  %v1589_v43 = vadd.f32 %v1562_v7, %v3032_v60  ;;  %v1564_v35 = vpop.f32.mrb[41].mxu1  ;;  %v1541_v19 = vpop.f32.mrb[46].mxu0  ;;  %v1762_v63 = vadd.f32 %v1761_v36, %v1760_v28  ;;  %v1769_v46 = vsel %vm897_vm7, %v1745_v57, 0.0  ;;  %v1718_v0 = vsel %vm897_vm7, %v3104_v21, 0.0 }
 0x1d2   : > { %v1565_v37 = vpop.f32.mrb[42].mxu1  ;;  %v1606_v12 = vadd.f32 %v3039_v9, %v1583_v32  ;;  %v1584_v40 = vadd.f32 %v1541_v19, %v3024_v34  ;;  %v1543_v41 = vpop.f32.mrb[47].mxu0  ;;  %v1771_v13 = vsel %vm897_vm7, %v1746_v14, 0.0  ;;  %v1773_v31 = vsel %vm897_vm7, %v1747_v20, 0.0 }
 0x1d3   : > { %v1612_v27 = vadd.f32 %v3039_v9, %v1589_v43  ;;  %v1590_v18 = vadd.f32 %v1565_v37, %v3034_v54  ;;  %v1567_v42 = vpop.f32.mrb[43].mxu1 }
 0x1d4   : > { %v2159_v60 = vpack.c.bf16 %v1606_v12, %v1606_v12  ;;  %v1708_v44 = vsel %vm897_vm7, %v1606_v12, 0.0  ;;  %v1742_v45 = vmul.f32 %v1606_v12, %v1606_v12  ;;  %v1607_v47 = vadd.f32 %v3039_v9, %v1584_v40 }
 0x1d5   : > { %v2165_v38 = vpack.c.bf16 %v1612_v27, %v1612_v27  ;;  %v1613_v58 = vadd.f32 %v3039_v9, %v1590_v18  ;;  %v1709_v34 = vadd.f32 %v1708_v44, %v1707_v30  ;;  %v1748_v10 = vmul.f32 %v1612_v27, %v1612_v27 }
 0x1d6   : > { %1687 = vst.msk [vmem:[%s3051_s28 + $0x18] sm:$0xf] %vm1680_vm8, %v2159_v60  ;;  %v1763_v23 = vsel %vm897_vm7, %v1742_v45, 0.0  ;;  %v2160_v48 = vpack.c.bf16 %v1607_v47, %v1607_v47  ;;  %v1710_v54 = vsel %vm897_vm7, %v1607_v47, 0.0  ;;  %v1743_v53 = vmul.f32 %v1607_v47, %v1607_v47 }
 0x1d7   : > { %1693 = vst.msk [vmem:[%s3051_s28 + $0x30] sm:$0xf] %vm1680_vm8, %v2165_v38  ;;  %v2166_v49 = vpack.c.bf16 %v1613_v58, %v1613_v58  ;;  %v1764_v4 = vadd.f32 %v1763_v23, %v1762_v63  ;;  %v1711_v29 = vadd.f32 %v1710_v54, %v1709_v34  ;;  %v1720_v28 = vsel %vm897_vm7, %v1612_v27, 0.0 }
 0x1d8   : > { %1688 = vst.msk [vmem:[%s3051_s28 + $0x1c] sm:$0xf] %vm1680_vm8, %v2160_v48  ;;  %v1570_v55 = vpop.f32.mrb[44].mxu1  ;;  %v1765_v2 = vsel %vm897_vm7, %v1743_v53, 0.0  ;;  %v1749_v7 = vmul.f32 %v1613_v58, %v1613_v58  ;;  %v1775_v33 = vsel %vm897_vm7, %v1748_v10, 0.0 }
 0x1d9   : > { %1694 = vst.msk [vmem:[%s3051_s28 + $0x34] sm:$0xf] %vm1680_vm8, %v2166_v49  ;;  %v1591_v59 = vadd.f32 %v1570_v55, %v3042_v62  ;;  %v1572_v61 = vpop.f32.mrb[45].mxu1  ;;  %v1713_v1 = vadd.f32 %v1712_v15, %v1711_v29  ;;  %v1766_v5 = vadd.f32 %v1765_v2, %v1764_v4  ;;  %v1767_v62 = vsel %vm897_vm7, %v1744_v24, 0.0 }
 0x1da   : > { %v1573_v3 = vpop.f32.mrb[46].mxu1  ;;  %v1777_v37 = vsel %vm897_vm7, %v1749_v7, 0.0 }
 0x1db   : > { %v1614_v6 = vadd.f32 %v3039_v9, %v1591_v59  ;;  %v1592_v39 = vadd.f32 %v1573_v3, %v3053_v50  ;;  %v1575_v8 = vpop.f32.mrb[47].mxu1  ;;  %v1715_v52 = vadd.f32 %v1714_v11, %v1713_v1  ;;  %v1768_v51 = vadd.f32 %v1767_v62, %v1766_v5 }
 0x1dd   : > { %v2167_v56 = vpack.c.bf16 %v1614_v6, %v1614_v6  ;;  %v1717_v22 = vadd.f32 %v1716_v17, %v1715_v52  ;;  %v1615_v50 = vadd.f32 %v3039_v9, %v1592_v39  ;;  %v1770_v25 = vadd.f32 %v1769_v46, %v1768_v51 }
 0x1de   : > { %v1722_v9 = vsel %vm897_vm7, %v1613_v58, 0.0  ;;  %v1750_v35 = vmul.f32 %v1614_v6, %v1614_v6  ;;  %v1724_v19 = vsel %vm897_vm7, %v1614_v6, 0.0 }
 0x1df   : > { %1695 = vst.msk [vmem:[%s3051_s28 + $0x38] sm:$0xf] %vm1680_vm8, %v2167_v56  ;;  %v1719_v16 = vadd.f32 %v1718_v0, %v1717_v22  ;;  %v2168_v26 = vpack.c.bf16 %v1615_v50, %v1615_v50  ;;  %v1772_v30 = vadd.f32 %v1771_v13, %v1770_v25  ;;  %v1751_v40 = vmul.f32 %v1615_v50, %v1615_v50 }
 0x1e0   : > { %v1726_v63 = vsel %vm897_vm7, %v1615_v50, 0.0  ;;  %v1779_v27 = vsel %vm897_vm7, %v1750_v35, 0.0 }
 0x1e1   : > { %v1721_v32 = vadd.f32 %v1720_v28, %v1719_v16  ;;  %1696 = vst.msk [vmem:[%s3051_s28 + $0x3c] sm:$0xf] %vm1680_vm8, %v2168_v26  ;;  %v1774_v21 = vadd.f32 %v1773_v31, %v1772_v30  ;;  %v1781_v44 = vsel %vm897_vm7, %v1751_v40, 0.0 }
 0x1e3   : > { %v1723_v43 = vadd.f32 %v1722_v9, %v1721_v32  ;;  %v1776_v36 = vadd.f32 %v1775_v33, %v1774_v21 }
 0x1e5   : > { %v1725_v12 = vadd.f32 %v1724_v19, %v1723_v43  ;;  %v1778_v41 = vadd.f32 %v1777_v37, %v1776_v36 }
 0x1e7   : > { %v1727_v18 = vadd.f32 %v1726_v63, %v1725_v12  ;;  %v1780_v42 = vadd.f32 %v1779_v27, %v1778_v41 }
 0x1e9   : > { %v1728_v60 = vrot.slane %v1727_v18, 4  ;;  %v1782_v45 = vadd.f32 %v1781_v44, %v1780_v42 }
 0x1eb   : > { %v1729_v47 = vadd.f32 %v1728_v60, %v1727_v18  ;;  %v1783_v38 = vrot.slane %v1782_v45, 4 }
 0x1ed   : > { %v1730_v58 = vrot.slane %v1729_v47, 2  ;;  %v1784_v34 = vadd.f32 %v1783_v38, %v1782_v45 }
 0x1ef   : > { %v1731_v23 = vadd.f32 %v1730_v58, %v1729_v47  ;;  %v1785_v48 = vrot.slane %v1784_v34, 2 }
 0x1f1   : > { %v1732_v54 = vrot.slane %v1731_v23, 1  ;;  %v1786_v49 = vadd.f32 %v1785_v48, %v1784_v34 }
 0x1f3   : > { %v1733_v24 = vadd.f32 %v1732_v54, %v1731_v23  ;;  %v1787_v4 = vrot.slane %v1786_v49, 1 }
 0x1f5   : > { %1735 = vst.msk [vmem:[%s494_s18] sm:$0x1] %vm1734_vm9, %v1733_v24  ;;  %v1788_v29 = vadd.f32 %v1787_v4, %v1786_v49 }
 0x1f7   : > { %1789 = vst.msk [vmem:[%s494_s18 + $0x1] sm:$0x1] %vm1734_vm9, %v1788_v29 }
 0x1f8 PF: > { %s19_s9 = sadd.s32 1, %s2356_s9   ;;  %s3210_s27 = smov %s2348_s29 }
 0x1f9   : > { %p16_p12 = scmp.ge.s32.totalorder %s19_s9, 6   ;;  %s3211_s28 = smov %s2352_s30 }
 0x1fa   : > { %s3212_s29 = smov %s3215_s10  ;;  %s3213_s30 = smov %s3219_s11 }
 0x1fb   :  { %18 = sbr.rel (!%p16_p12) target bundleno = 3 (0x3), region = 98 }

// kernel: _lambda_.11
= control target key start
LH: loop header
LB: loop body
LE: loop exit
PB: predicated region body
PF: predicated region fallthrough
CT: control target
= control target key end

     0   :  { %s2114_s24 = smov 0   ;;  %s2116_s25 = smov 0   ;;  %s2804_s0 = inlined_call_operand.vmem [shape: bf16[2,16,16,64], index: 0, kind: input, shape index: {}, may-alias: {0,1,2}]   ;;  %s2805_s1 = inlined_call_operand.vmem [shape: bf16[2,16,16,64], index: 1, kind: input, shape index: {}, may-alias: {0,1,2}]   ;;  %s2806_s2 = inlined_call_operand.vmem [shape: bf16[2,16,16,64], index: 2, kind: input, shape index: {}, may-alias: {0,1,2}]   ;;  %s2807_s3 = inlined_call_operand.vmem [shape: bf16[3,192,2], index: 3, kind: input, shape index: {}]   ;;  %s2808_s4 = inlined_call_operand.vmem [shape: f32[1,2], index: 4, kind: input, shape index: {}]   ;;  %s2809_s5 = inlined_call_operand.vmem [shape: f32[1,64], index: 5, kind: input, shape index: {}]   ;;  %s2810_s6 = inlined_call_operand.vmem [shape: f32[1,64], index: 6, kind: input, shape index: {}]   ;;  %s2811_s7 = inlined_call_operand.vmem [shape: f32[2,16,16,2], index: 7, kind: output, shape index: {}]  }
   0x1   :  { %s2118_s26 = smov 0   ;;  %s2120_s27 = smov 0  }
   0x2   :  { %s2122_s28 = smov 0  }
   0x3 LB: > { %s26_s29 = sadd.s32 1, %s2062_s26  ;;  %s29_s30 = sadd.s32 1, %s2066_s27  ;;  %s2070_s28 = sphi %s2122_s28, %s17_s28   ;;  %s2066_s27 = sphi %s2120_s27, %s2822_s27   ;;  %s2062_s26 = sphi %s2118_s26, %s2821_s26   ;;  %s2058_s25 = sphi %s2116_s25, %s2820_s25   ;;  %s2054_s24 = sphi %s2114_s24, %s2819_s24  }
   0x4   : > { %p27_p0 = scmp.ge.s32.totalorder %s26_s29, 2  ;;  %p1736_p1 = scmp.ge.s32.totalorder %s2070_s28, 1 }
   0x5   : > { %p323_p2 = scmp.lt.s32.totalorder %s2070_s28, 5 }
   0x6   : > { %s2824_s29 = smov (%p27_p0, %s26_s29), 0  ;;  %s2826_s30 = smov (!%p27_p0, %s29_s30), %s2066_s27 }
   0x7   : > { %p324_p3 = pnand %p1736_p1, %p323_p2  ;;  %p31_p4 = scmp.ge.s32.totalorder %s2826_s30, 2 }
   0x8   : > { %s2147_s8 = sshll.u32 (!%p324_p3), %s2054_s24, 3  ;;  %p395_p5 = scmp.lt.s32.totalorder (!%p324_p3), %s2058_s25, 1  ;;  %v2072_v0 = vmov (!%p324_p3), 0   ;;  %v1996_v1 = vld [vmem:[%s2807_s3] sm:$0xff] (!%p324_p3)   ;;  %v1998_v3 = vld [vmem:[%s2807_s3 + $0x8] sm:$0xff] (!%p324_p3)   ;;  %v2000_v5 = vld [vmem:[%s2807_s3 + $0x10] sm:$0xff] (!%p324_p3)  }
   0x9   : > { %s2828_s30 = smov (%p31_p4, %s2826_s30), 0  ;;  %327 = sbr.rel (%p324_p3) target bundleno = 476 (0x1dc), region = 48 }
   0xa   : > { %s1738_s9 = sadd.s32 (!%p324_p3), 4294967295, %s2147_s8  ;;  %p411_p6 = scmp.lt.s32.totalorder (!%p324_p3), %s2147_s8, 15  ;;  %1213 = vmatprep.subr.bf16.mxu1 (!%p324_p3), %v2072_v0  ;;  %1041 = vmatprep.subr.bf16.mxu0 (!%p324_p3), %v2072_v0  ;;  %v1997_v2 = vld [vmem:[%s2807_s3 + $0x60] sm:$0xff] (!%p324_p3)   ;;  %v1999_v4 = vld [vmem:[%s2807_s3 + $0x68] sm:$0xff] (!%p324_p3)   ;;  %v2001_v7 = vld [vmem:[%s2807_s3 + $0x70] sm:$0xff] (!%p324_p3)   ;;  %vm672_vm0 = vcmask (!%p324_p3), 1040384  }
   0xb   : > { %p393_p7 = scmp.gt.s32.totalorder (!%p324_p3), %s1738_s9, 0  ;;  %p1739_p8 = scmp.lt.s32.totalorder (!%p324_p3), %s1738_s9, 15  ;;  %1214 = vmatpush1.bf16.msra.mxu1 (!%p324_p3), %v1996_v1  ;;  %1042 = vmatpush1.bf16.msra.mxu0 (!%p324_p3), %v1997_v2  ;;  %v2183_v6 = vld [vmem:[%s2809_s5] ss:$0 sm:$0xff] (!%p324_p3)  ;;  %v2002_v8 = vld [vmem:[%s2807_s3 + $0x18] sm:$0xff] (!%p324_p3)   ;;  %v2006_v53 = vld [vmem:[%s2807_s3 + $0x28] sm:$0xff] (!%p324_p3)  }
   0xc   : > { %1215 = vmatprep.subr.bf16.mxu1 (!%p324_p3), %v2072_v0  ;;  %1043 = vmatprep.subr.bf16.mxu0 (!%p324_p3), %v2072_v0  ;;  %p572_p9 = scmp.gt.s32.totalorder (!%p324_p3), %s2054_s24, 0  ;;  %v2209_v15 = vld [vmem:[%s2810_s6] ss:$0 sm:$0xff] (!%p324_p3)  ;;  %v2003_v20 = vld [vmem:[%s2807_s3 + $0x78] sm:$0xff] (!%p324_p3)   ;;  %vm673_vm1 = vsmask.f32 (!%p324_p3), 256 }
   0xd   : > { %v2004_v33 = vld [vmem:[%s2807_s3 + $0x20] sm:$0xff] (!%p324_p3)   ;;  %v2007_v58 = vld [vmem:[%s2807_s3 + $0x88] sm:$0xff] (!%p324_p3)   ;;  %vm695_vm3 = vsmask.f32 (!%p324_p3), 7424  ;;  %vm2289_vm4 = vmand (!%p324_p3), %vm672_vm0, %vm673_vm1  ;;  %s2073_s15 = smov (!%p324_p3), 64   ;;  %p577_p11 = scmp.lt.s32.totalorder (!%p324_p3), %s2054_s24, 1 }
   0xe   : > { %v2005_v39 = vld [vmem:[%s2807_s3 + $0x80] sm:$0xff] (!%p324_p3)   ;;  %vm824_vm6 = vcmask (!%p324_p3), 1046528   ;;  %vm849_vm7 = vcmask (!%p324_p3), 523264   ;;  %vm1568_vm8 = vcmask (!%p324_p3), 15360  }
   0xf   : > { %1216 = vmatpush1.bf16.msra.mxu1 (!%p324_p3), %v1998_v3  ;;  %1044 = vmatpush1.bf16.msra.mxu0 (!%p324_p3), %v1999_v4 }
  0x10   : > { %s2830_s25 = smov (!%p395_p5, %s2058_s25), 1  ;;  %s2832_s9 = smov (!%p393_p7, %s1738_s9), 0  ;;  %1217 = vmatprep.subr.bf16.mxu1 %v2072_v0  ;;  %1045 = vmatprep.subr.bf16.mxu0 %v2072_v0 }
  0x11   : > { %s2159_s14 = sshll.u32 %s2830_s25, 5  ;;  %s2834_s9 = smov (!%p1739_p8, %s2832_s9), 15 }
  0x12   : > { %s412_s19 = scalar_select %p411_p6, %s2147_s8, 15 }
  0x13   : > { %s1744_s20 = sshll.u32 %s2834_s9, 1  ;;  %1218 = vmatpush1.bf16.msra.mxu1 %v2000_v5  ;;  %1046 = vmatpush1.bf16.msra.mxu0 %v2001_v7 }
  0x14   : > { %s401_s21 = sadd.s32 %s2159_s14, %s1744_s20  ;;  %s1748_s22 = sshll.u32 %s412_s19, 1  ;;  %1219 = vmatprep.subr.bf16.mxu1 %v2072_v0  ;;  %1047 = vmatprep.subr.bf16.mxu0 %v2072_v0 }
  0x15   : > { %s1746_s10 = sshll.u32 %s401_s21, 2  ;;  %s2178_s11 = sadd.s32 %s1748_s22, %s2159_s14 }
  0x16   : > { %s403_s18 = scalar_lea.vmem %s2804_s0, %s1746_s10  ;;  %s1750_s19 = sshll.u32 %s2178_s11, 2 }
  0x17   : > { %s2200_s25 = scalar_lea.vmem %s2805_s1, %s1750_s19  ;;  %v1916_v9 = vld [vmem:[%s403_s18] sm:$0xff]   ;;  %s1882_s10 = sadd.s32 8, %s2147_s8  ;;  %1220 = vmatpush1.bf16.msra.mxu1 %v2002_v8  ;;  %1048 = vmatpush1.bf16.msra.mxu0 %v2003_v20 }
  0x18   : > { %v1917_v10 = vunpack.c.l.bf16 %v1916_v9  ;;  %v1918_v11 = vunpack.c.h.bf16 %v1916_v9  ;;  %v1884_v12 = vld [vmem:[%s2200_s25] sm:$0xff]   ;;  %v1923_v13 = vld [vmem:[%s2200_s25 + $0x8] sm:$0xff]   ;;  %v1924_v14 = vld [vmem:[%s2200_s25 + $0x10] sm:$0xff]   ;;  %s573_s9 = scalar_select %p572_p9, 1, 0  ;;  %1221 = vmatprep.subr.bf16.mxu1 %v2072_v0  ;;  %1049 = vmatprep.subr.bf16.mxu0 %v2072_v0 }
  0x19   : > { %v1885_v16 = vunpack.c.l.bf16 %v1884_v12  ;;  %v1886_v17 = vunpack.c.h.bf16 %v1884_v12  ;;  %v1889_v18 = vunpack.c.l.bf16 %v1923_v13  ;;  %v1890_v19 = vunpack.c.h.bf16 %v1923_v13  ;;  %p2222_p10 = scmp.lt.s32.totalorder %s1882_s10, 15  ;;  %v1925_v38 = vld [vmem:[%s2200_s25 + $0x18] sm:$0xff]   ;;  %v2250_v44 = vld [vmem:[%s2200_s25 + $0x20] sm:$0xff]   ;;  %v2008_v9 = vld [vmem:[%s2807_s3 + $0x30] sm:$0xff]   ;;  %s1761_s19 = sshll.u32 %s2178_s11, 3 }
  0x1a   : > { %v554_v21 = vmul.f32 %v1917_v10, %v2183_v6  ;;  %v555_v22 = vmul.f32 %v1918_v11, %v2183_v6  ;;  %v1893_v23 = vunpack.c.l.bf16 %v1924_v14  ;;  %v1894_v24 = vunpack.c.h.bf16 %v1924_v14  ;;  %v2009_v10 = vld [vmem:[%s2807_s3 + $0x90] sm:$0xff]   ;;  %s2443_s13 = scalar_select %p577_p11, 1, 0 }
  0x1b   : > { %v574_v25 = vstv %s573_s9  ;;  %v488_v26 = vmul.f32 %v1885_v16, %v2183_v6  ;;  %v489_v27 = vmul.f32 %v1886_v17, %v2183_v6  ;;  %v490_v28 = vmul.f32 %v1889_v18, %v2183_v6  ;;  %s2836_s10 = smov (!%p2222_p10, %s1882_s10), 15  ;;  %1222 = vmatpush1.bf16.msra.mxu1 %v2004_v33  ;;  %1050 = vmatpush1.bf16.msra.mxu0 %v2005_v39 }
  0x1c   : > { %v556_v29 = vadd.f32 %v2209_v15, %v554_v21  ;;  %v557_v30 = vadd.f32 %v2209_v15, %v555_v22  ;;  %vm2231_vm2 = vcmp.eq.s32.totalorder %v574_v25, 1  ;;  %v491_v32 = vmul.f32 %v1890_v19, %v2183_v6  ;;  %1223 = vmatprep.subr.bf16.mxu1 %v2072_v0  ;;  %s2838_s10 = smov (!%p2222_p10, %s2836_s10), 15  ;;  %1051 = vmatprep.subr.bf16.mxu0 %v2072_v0  ;;  %v2010_v21 = vld [vmem:[%s2807_s3 + $0x38] sm:$0xff]  }
  0x1d   : > { %v510_v34 = vadd.f32 %v2209_v15, %v488_v26  ;;  %v511_v35 = vadd.f32 %v2209_v15, %v489_v27  ;;  %v512_v36 = vadd.f32 %v2209_v15, %v490_v28  ;;  %v492_v37 = vmul.f32 %v1893_v23, %v2183_v6  ;;  %s2294_s17 = sshll.u32 %s2838_s10, 1 }
  0x1e   : > { %v558_v40 = vmax.f32 %v556_v29, 0.0  ;;  %v559_v41 = vmax.f32 %v557_v30, 0.0  ;;  %v513_v42 = vadd.f32 %v2209_v15, %v491_v32  ;;  %v493_v43 = vmul.f32 %v1894_v24, %v2183_v6  ;;  %v2011_v30 = vld [vmem:[%s2807_s3 + $0x98] sm:$0xff]   ;;  %s429_s23 = sadd.s32 %s2294_s17, %s2159_s14 }
  0x1f   : > { %v526_v45 = vmax.f32 %v510_v34, 0.0  ;;  %v527_v46 = vmax.f32 %v511_v35, 0.0  ;;  %v528_v47 = vmax.f32 %v512_v36, 0.0  ;;  %v514_v48 = vadd.f32 %v2209_v15, %v492_v37  ;;  %1224 = vmatpush1.bf16.msra.mxu1 %v2006_v53  ;;  %1052 = vmatpush1.bf16.msra.mxu0 %v2007_v58  ;;  %v2013_v53 = vld [vmem:[%s2807_s3 + $0xa0] sm:$0xff]   ;;  %s2360_s14 = sshll.u32 %s429_s23, 2  ;;  %s2729_s23 = scalar_lea.vmem %s2811_s7, %s1761_s19 }
  0x20   : > { %v560_v49 = vpack.c.bf16 %v559_v41, %v558_v40  ;;  %v529_v50 = vmax.f32 %v513_v42, 0.0  ;;  %v515_v51 = vadd.f32 %v2209_v15, %v493_v43  ;;  %v1897_v52 = vunpack.c.l.bf16 %v1925_v38  ;;  %1225 = vmatprep.subr.bf16.mxu1 %v2072_v0  ;;  %1053 = vmatprep.subr.bf16.mxu0 %v2072_v0  ;;  %v2012_v43 = vld [vmem:[%s2807_s3 + $0x40] sm:$0xff]   ;;  %s431_s22 = scalar_lea.vmem %s2806_s2, %s2360_s14 }
  0x21   : > { %v542_v54 = vpack.c.bf16 %v527_v46, %v526_v45  ;;  %v530_v55 = vmax.f32 %v514_v48, 0.0  ;;  %v1898_v56 = vunpack.c.h.bf16 %v1925_v38  ;;  %v1901_v57 = vunpack.c.l.bf16 %v2250_v44 }
  0x22   : > { %v576_v59 = vsel %vm2231_vm2, %v560_v49, 0  ;;  %v543_v60 = vpack.c.bf16 %v529_v50, %v528_v47  ;;  %v531_v61 = vmax.f32 %v515_v51, 0.0  ;;  %v494_v62 = vmul.f32 %v1897_v52, %v2183_v6 }
  0x23   : > { %v583_v63 = vshrl.u32 %v576_v59, 16  ;;  %v586_v1 = vshll.u32 %v576_v59, 16  ;;  %v590_v2 = vshrl.u32 %v542_v54, 16  ;;  %v593_v3 = vshll.u32 %v542_v54, 16  ;;  %1226 = vmatpush1.bf16.msra.mxu1 %v2008_v9  ;;  %1054 = vmatpush1.bf16.msra.mxu0 %v2009_v10  ;;  %v1927_v59 = vld [vmem:[%s2200_s25 + $0x28] sm:$0xff]  }
  0x24   : > { %v597_v4 = vshrl.u32 %v543_v60, 16  ;;  %v600_v5 = vshll.u32 %v543_v60, 16  ;;  %v544_v7 = vpack.c.bf16 %v531_v61, %v530_v55  ;;  %v495_v8 = vmul.f32 %v1898_v56, %v2183_v6  ;;  %1227 = vmatprep.subr.bf16.mxu1 %v2072_v0  ;;  %1055 = vmatprep.subr.bf16.mxu0 %v2072_v0 }
  0x25   : > { %v585_v11 = vrot.slane %v583_v63, 7  ;;  %v592_v12 = vrot.slane %v590_v2, 7  ;;  %v516_v13 = vadd.f32 %v2209_v15, %v494_v62  ;;  %v1902_v14 = vunpack.c.h.bf16 %v2250_v44  ;;  %v1928_v62 = vld [vmem:[%s2200_s25 + $0x30] sm:$0xff]  }
  0x26   : > { %v599_v17 = vrot.slane %v597_v4, 7  ;;  %v604_v18 = vshrl.u32 %v544_v7, 16  ;;  %v607_v19 = vshll.u32 %v544_v7, 16  ;;  %v517_v20 = vadd.f32 %v2209_v15, %v495_v8  ;;  %v2369_v4 = vld [vmem:[%s2200_s25 + $0x38] sm:$0xff]  }
  0x27   : > { %v588_v22 = vor.u32 %v586_v1, %v585_v11  ;;  %v2302_v23 = vsel %vm2289_vm4, %v585_v11, 0  ;;  %v595_v24 = vor.u32 %v593_v3, %v592_v12  ;;  %v2306_v25 = vsel %vm2289_vm4, %v592_v12, 0  ;;  %1228 = vmatpush1.bf16.msra.mxu1 %v2010_v21  ;;  %1056 = vmatpush1.bf16.msra.mxu0 %v2011_v30  ;;  %v2015_v11 = vld [vmem:[%s2807_s3 + $0xa8] sm:$0xff]  }
  0x28   : > { %v704_v26 = vshll.u32 %v2302_v23, 16  ;;  %v716_v27 = vshll.u32 %v2306_v25, 16  ;;  %v602_v28 = vor.u32 %v600_v5, %v599_v17  ;;  %v2312_v29 = vsel %vm2289_vm4, %v599_v17, 0  ;;  %1229 = vmatprep.subr.bf16.mxu1 %v2072_v0  ;;  %1057 = vmatprep.subr.bf16.mxu0 %v2072_v0  ;;  %v2014_v5 = vld [vmem:[%s2807_s3 + $0x48] sm:$0xff]  }
  0x29   : > { %v2319_v31 = vsel %vm2289_vm4, 0, %v588_v22  ;;  %v2323_v32 = vsel %vm2289_vm4, 0, %v595_v24  ;;  %v728_v33 = vshll.u32 %v2312_v29, 16  ;;  %v832_v34 = vrot.slane %v2312_v29, 1  ;;  %v2016_v22 = vld [vmem:[%s2807_s3 + $0x50] sm:$0xff]  }
  0x2a   : > { %v697_v35 = vshrl.u32 %v2319_v31, 16  ;;  %v699_v36 = vshll.u32 %v2319_v31, 16  ;;  %v706_v37 = vrot.slane %v704_v26, 1  ;;  %v709_v38 = vshrl.u32 %v2323_v32, 16  ;;  %v2017_v24 = vld [vmem:[%s2807_s3 + $0xb0] sm:$0xff]  }
  0x2b   : > { %v711_v39 = vshll.u32 %v2323_v32, 16  ;;  %v718_v40 = vrot.slane %v716_v27, 1  ;;  %v2335_v41 = vsel %vm2289_vm4, 0, %v602_v28  ;;  %v730_v42 = vrot.slane %v728_v33, 1  ;;  %1230 = vmatpush1.bf16.msra.mxu1 %v2012_v43  ;;  %1058 = vmatpush1.bf16.msra.mxu0 %v2013_v53  ;;  %v2018_v53 = vld [vmem:[%s2807_s3 + $0x58] sm:$0xff]  }
  0x2c   : > { %v701_v45 = vrot.slane %v699_v36, 1  ;;  %v721_v46 = vshrl.u32 %v2335_v41, 16  ;;  %v723_v47 = vshll.u32 %v2335_v41, 16  ;;  %v606_v48 = vrot.slane %v604_v18, 7  ;;  %1231 = vmatprep.subr.bf16.mxu1 %v2072_v0  ;;  %1059 = vmatprep.subr.bf16.mxu0 %v2072_v0 }
  0x2d   : > { %v713_v49 = vrot.slane %v711_v39, 1  ;;  %v532_v50 = vmax.f32 %v516_v13, 0.0  ;;  %v533_v51 = vmax.f32 %v517_v20, 0.0  ;;  %v496_v52 = vmul.f32 %v1901_v57, %v2183_v6 }
  0x2e   : > { %v702_v54 = vor.u32 %v701_v45, %v697_v35  ;;  %v725_v55 = vrot.slane %v723_v47, 1  ;;  %v609_v56 = vor.u32 %v607_v19, %v606_v48  ;;  %v2353_v58 = vsel %vm2289_vm4, %v606_v48, 0  ;;  %v2411_v48 = vld [vmem:[%s431_s22] sm:$0xff]  }
  0x2f   : > { %v714_v44 = vor.u32 %v713_v49, %v709_v38  ;;  %v740_v57 = vshll.u32 %v2353_v58, 16  ;;  %v545_v60 = vpack.c.bf16 %v533_v51, %v532_v50  ;;  %v497_v61 = vmul.f32 %v1902_v14, %v2183_v6  ;;  %1232 = vmatpush1.bf16.msra.mxu1 %v2014_v5  ;;  %1060 = vmatpush1.bf16.msra.mxu0 %v2015_v11 }
  0x30   : > { %v707_v63 = vsel %vm695_vm3, %v702_v54, %v706_v37  ;;  %v726_v1 = vor.u32 %v725_v55, %v721_v46  ;;  %v2365_v2 = vsel %vm2289_vm4, 0, %v609_v56  ;;  %v518_v3 = vadd.f32 %v2209_v15, %v496_v52  ;;  %1233 = vmatprep.subr.bf16.mxu1 %v2072_v0  ;;  %1061 = vmatprep.subr.bf16.mxu0 %v2072_v0 }
  0x31   : > { %792 = vrot.lane.b32.xlu0 %v707_v63, %s2073_s15  ;;  %v719_v7 = vsel %vm695_vm3, %v714_v44, %v718_v40  ;;  %v733_v8 = vshrl.u32 %v2365_v2, 16  ;;  %v735_v9 = vshll.u32 %v2365_v2, 16  ;;  %v742_v10 = vrot.slane %v740_v57, 1  ;;  %v2019_v44 = vld [vmem:[%s2807_s3 + $0xb8] sm:$0xff]  }
  0x32   : > { %v731_v12 = vsel %vm695_vm3, %v726_v1, %v730_v42  ;;  %v611_v13 = vshrl.u32 %v545_v60, 16  ;;  %v614_v14 = vshll.u32 %v545_v60, 16  ;;  %v519_v17 = vadd.f32 %v2209_v15, %v497_v61 }
  0x33   : > { %796 = vrot.lane.b32.xlu1 %v731_v12, %s2073_s15  ;;  %v737_v18 = vrot.slane %v735_v9, 1  ;;  %v534_v19 = vmax.f32 %v518_v3, 0.0  ;;  %v1905_v20 = vunpack.c.l.bf16 %v1927_v59  ;;  %v1906_v21 = vunpack.c.h.bf16 %v1927_v59  ;;  %1234 = vmatpush1.bf16.msra.mxu1 %v2016_v22 }
  0x34   : > { %v613_v26 = vrot.slane %v611_v13, 7  ;;  %v535_v27 = vmax.f32 %v519_v17, 0.0  ;;  %v1909_v28 = vunpack.c.l.bf16 %v1928_v62  ;;  %v1910_v30 = vunpack.c.h.bf16 %v1928_v62  ;;  %1062 = vmatpush1.bf16.msra.mxu0 %v2017_v24  ;;  %1235 = vmatprep.subr.bf16.mxu1 %v2072_v0 }
  0x35   : > { %794 = vrot.lane.b32.xlu0 %v719_v7, %s2073_s15  ;;  %v738_v33 = vor.u32 %v737_v18, %v733_v8  ;;  %v498_v35 = vmul.f32 %v1905_v20, %v2183_v6  ;;  %v499_v36 = vmul.f32 %v1906_v21, %v2183_v6  ;;  %v1913_v37 = vunpack.c.l.bf16 %v2369_v4  ;;  %1063 = vmatprep.subr.bf16.mxu0 %v2072_v0 }
  0x36   : > { %v616_v38 = vor.u32 %v614_v14, %v613_v26  ;;  %v2402_v39 = vsel %vm2289_vm4, %v613_v26, 0  ;;  %v546_v40 = vpack.c.bf16 %v535_v27, %v534_v19  ;;  %v500_v42 = vmul.f32 %v1909_v28, %v2183_v6 }
  0x37   : > { %v743_v43 = vsel %vm695_vm3, %v738_v33, %v742_v10  ;;  %v752_v45 = vshll.u32 %v2402_v39, 16  ;;  %v520_v46 = vadd.f32 %v2209_v15, %v498_v35  ;;  %v521_v47 = vadd.f32 %v2209_v15, %v499_v36  ;;  %1236 = vmatpush1.bf16.msra.mxu1 %v2018_v53 }
  0x38   : > { %798 = vrot.lane.b32.xlu1 %v743_v43, %s2073_s15  ;;  %v2416_v49 = vsel %vm2289_vm4, 0, %v616_v38  ;;  %v618_v50 = vshrl.u32 %v546_v40, 16  ;;  %v621_v51 = vshll.u32 %v546_v40, 16  ;;  %v501_v52 = vmul.f32 %v1910_v30, %v2183_v6  ;;  %1064 = vmatpush1.bf16.msra.mxu0 %v2019_v44 }
  0x39   : > { %v745_v54 = vshrl.u32 %v2416_v49, 16  ;;  %v747_v55 = vshll.u32 %v2416_v49, 16  ;;  %v754_v56 = vrot.slane %v752_v45, 1  ;;  %v536_v59 = vmax.f32 %v520_v46, 0.0  ;;  %1930 = vmatprep.subr.bf16.mxu1 %v2072_v0  ;;  %1432 = vmatprep.subr.bf16.mxu0 %v2072_v0 }
  0x3a   : > { %v620_v57 = vrot.slane %v618_v50, 7  ;;  %v537_v60 = vmax.f32 %v521_v47, 0.0  ;;  %v522_v61 = vadd.f32 %v2209_v15, %v500_v42  ;;  %v523_v62 = vadd.f32 %v2209_v15, %v501_v52 }
  0x3b   : > { %v749_v63 = vrot.slane %v747_v55, 1  ;;  %v1914_v1 = vunpack.c.h.bf16 %v2369_v4  ;;  %v502_v3 = vmul.f32 %v1913_v37, %v2183_v6  ;;  %v1921_v5 = vunpack.c.l.bf16 %v2411_v48 }
  0x3c   : > { %v623_v7 = vor.u32 %v621_v51, %v620_v57  ;;  %v2437_v8 = vsel %vm2289_vm4, %v620_v57, 0  ;;  %v547_v9 = vpack.c.bf16 %v537_v60, %v536_v59  ;;  %v538_v10 = vmax.f32 %v522_v61, 0.0 }
  0x3d   : > { %v750_v11 = vor.u32 %v749_v63, %v745_v54  ;;  %v764_v12 = vshll.u32 %v2437_v8, 16  ;;  %v539_v13 = vmax.f32 %v523_v62, 0.0  ;;  %v503_v14 = vmul.f32 %v1914_v1, %v2183_v6 }
  0x3e   : > { %v2448_v4 = vsel %vm2289_vm4, 0, %v623_v7  ;;  %v625_v17 = vshrl.u32 %v547_v9, 16  ;;  %v628_v18 = vshll.u32 %v547_v9, 16  ;;  %v524_v19 = vadd.f32 %v2209_v15, %v502_v3 }
  0x3f   : > { %v755_v20 = vsel %vm695_vm3, %v750_v11, %v754_v56  ;;  %v757_v21 = vshrl.u32 %v2448_v4, 16  ;;  %v759_v22 = vshll.u32 %v2448_v4, 16  ;;  %v766_v24 = vrot.slane %v764_v12, 1 }
  0x40   : > { %800 = vrot.lane.b32.xlu0 %v755_v20, %s2073_s15  ;;  %v627_v26 = vrot.slane %v625_v17, 7  ;;  %v548_v27 = vpack.c.bf16 %v539_v13, %v538_v10  ;;  %v525_v28 = vadd.f32 %v2209_v15, %v503_v14  ;;  %v540_v30 = vmax.f32 %v524_v19, 0.0 }
  0x41   : > { %v761_v33 = vrot.slane %v759_v22, 1  ;;  %v1922_v35 = vunpack.c.h.bf16 %v2411_v48  ;;  %v565_v36 = vmul.f32 %v1921_v5, %v2183_v6  ;;  %v579_v37 = vstv %s2443_s13 }
  0x42   : > { %v630_v38 = vor.u32 %v628_v18, %v627_v26  ;;  %v2462_v40 = vsel %vm2289_vm4, %v627_v26, 0  ;;  %v632_v42 = vshrl.u32 %v548_v27, 16  ;;  %v635_v43 = vshll.u32 %v548_v27, 16 }
  0x43   : > { %v762_v45 = vor.u32 %v761_v33, %v757_v21  ;;  %v776_v46 = vshll.u32 %v2462_v40, 16  ;;  %v541_v47 = vmax.f32 %v525_v28, 0.0  ;;  %v566_v50 = vmul.f32 %v1922_v35, %v2183_v6 }
  0x44   : > { %v2468_v51 = vsel %vm2289_vm4, 0, %v630_v38  ;;  %v634_v48 = vrot.slane %v632_v42, 7  ;;  %v567_v52 = vadd.f32 %v2209_v15, %v565_v36  ;;  %vm2471_vm5 = vcmp.eq.s32.totalorder %v579_v37, 1 }
  0x45   : > { %v767_v54 = vsel %vm695_vm3, %v762_v45, %v766_v24  ;;  %v769_v55 = vshrl.u32 %v2468_v51, 16  ;;  %v771_v56 = vshll.u32 %v2468_v51, 16  ;;  %v778_v59 = vrot.slane %v776_v46, 1 }
  0x46   : > { %802 = vrot.lane.b32.xlu1 %v767_v54, %s2073_s15  ;;  %v637_v6 = vor.u32 %v635_v43, %v634_v48  ;;  %v2481_v44 = vsel %vm2289_vm4, %v634_v48, 0  ;;  %v549_v57 = vpack.c.bf16 %v541_v47, %v540_v30  ;;  %v568_v60 = vadd.f32 %v2209_v15, %v566_v50 }
  0x47   : > { %v773_v61 = vrot.slane %v771_v56, 1  ;;  %v788_v62 = vshll.u32 %v2481_v44, 16  ;;  %v569_v63 = vmax.f32 %v567_v52, 0.0  ;;  %v825_v14 = vrot.slane %v2319_v31, 1 }
  0x48   : > { %v2487_v1 = vsel %vm2289_vm4, 0, %v637_v6  ;;  %v639_v3 = vshrl.u32 %v549_v57, 16  ;;  %v642_v5 = vshll.u32 %v549_v57, 16  ;;  %v570_v7 = vmax.f32 %v568_v60, 0.0 }
  0x49   : > { %v774_v9 = vor.u32 %v773_v61, %v769_v55  ;;  %v781_v10 = vshrl.u32 %v2487_v1, 16  ;;  %v783_v11 = vshll.u32 %v2487_v1, 16  ;;  %v790_v12 = vrot.slane %v788_v62, 1 }
  0x4a   : > { %v641_v13 = vrot.slane %v639_v3, 7  ;;  %v571_v15 = vpack.c.bf16 %v570_v7, %v569_v63  ;;  %v826_v17 = vrot.slane %v2302_v23, 1  ;;  %v828_v20 = vrot.slane %v2323_v32, 1 }
  0x4b   : > { %v779_v18 = vsel %vm695_vm3, %v774_v9, %v778_v59  ;;  %v785_v19 = vrot.slane %v783_v11, 1  ;;  %v829_v35 = vrot.slane %v2306_v25, 1  ;;  %v831_v36 = vrot.slane %v2335_v41, 1 }
  0x4c   : > { %804 = vrot.lane.b32.xlu0 %v779_v18, %s2073_s15  ;;  %v644_v21 = vor.u32 %v642_v5, %v641_v13  ;;  %v693_v22 = vsel %vm2289_vm4, %v641_v13, 0  ;;  %v581_v24 = vsel %vm2471_vm5, %v571_v15, 0  ;;  %v827_v26 = vsel %vm824_vm6, %v825_v14, %v826_v17  ;;  %v2020_v18 = vld [vmem:[%s2807_s3 + $0xc0] sm:$0xff]  }
  0x4d   : > { %v786_v27 = vor.u32 %v785_v19, %v781_v10  ;;  %v906_v28 = vshll.u32 %v693_v22, 16  ;;  %v646_v23 = vshrl.u32 %v581_v24, 16  ;;  %v649_v30 = vshll.u32 %v581_v24, 16  ;;  %1820 = vmatprep.mubr.msk.bf16.mxu1 %vm849_vm7, %v827_v26  ;;  %v2022_v26 = vld [vmem:[%s2807_s3 + $0xd0] sm:$0xff]  }
  0x4e   : > { %v2504_v33 = vsel %vm2289_vm4, 0, %v644_v21  ;;  %v834_v37 = vrot.slane %v2365_v2, 1  ;;  %v830_v47 = vsel %vm824_vm6, %v828_v20, %v829_v35  ;;  %v2517_v25 = vsel %vm824_vm6, %v831_v36, %v832_v34  ;;  %v2021_v21 = vld [vmem:[%s2807_s3 + $0xc8] sm:$0xff]   ;;  %v2026_v35 = vld [vmem:[%s2807_s3 + $0xf0] sm:$0xff]  }
  0x4f   : > { %v791_v38 = vsel %vm695_vm3, %v786_v27, %v790_v12  ;;  %v899_v42 = vshrl.u32 %v2504_v33, 16  ;;  %v901_v43 = vshll.u32 %v2504_v33, 16  ;;  %v908_v45 = vrot.slane %v906_v28, 1  ;;  %1800 = vmatprep.mubr.msk.bf16.mxu0 %vm849_vm7, %v830_v47  ;;  %v2023_v27 = vld [vmem:[%s2807_s3 + $0xd8] sm:$0xff]   ;;  %v2024_v28 = vld [vmem:[%s2807_s3 + $0xe0] sm:$0xff]  }
  0x50   : > { %806 = vrot.lane.b32.xlu1 %v791_v38, %s2073_s15  ;;  %v648_v46 = vrot.slane %v646_v23, 7  ;;  %v835_v50 = vrot.slane %v2353_v58, 1  ;;  %v837_v52 = vrot.slane %v2416_v49, 1  ;;  %v838_v53 = vrot.slane %v2402_v39, 1  ;;  %v2028_v38 = vld [vmem:[%s2807_s3 + $0x100] sm:$0xff]  }
  0x51   : > { %v903_v48 = vrot.slane %v901_v43, 1  ;;  %v840_v54 = vrot.slane %v2448_v4, 1  ;;  %v841_v34 = vrot.slane %v2437_v8, 1  ;;  %v843_v57 = vrot.slane %v2468_v51, 1  ;;  %v2029_v43 = vld [vmem:[%s2807_s3 + $0x108] sm:$0xff]  }
  0x52   : > { %v651_v55 = vor.u32 %v649_v30, %v648_v46  ;;  %v694_v56 = vsel %vm2289_vm4, %v648_v46, 0  ;;  %v2527_v29 = vsel %vm824_vm6, %v834_v37, %v835_v50  ;;  %v2531_v6 = vsel %vm824_vm6, %v837_v52, %v838_v53  ;;  %v2025_v30 = vld [vmem:[%s2807_s3 + $0xe8] sm:$0xff]   ;;  %v2027_v37 = vld [vmem:[%s2807_s3 + $0xf8] sm:$0xff]  }
  0x53   : > { %v904_v59 = vor.u32 %v903_v48, %v899_v42  ;;  %v1318_v58 = vshll.u32 %v694_v56, 16  ;;  %v2539_v60 = vsel %vm824_vm6, %v840_v54, %v841_v34  ;;  %v844_v61 = vrot.slane %v2462_v40, 1 }
  0x54   : > { %v2536_v39 = vsel %vm2289_vm4, 0, %v651_v55  ;;  %v846_v16 = vrot.slane %v2487_v1, 1  ;;  %v847_v5 = vrot.slane %v2481_v44, 1  ;;  %v914_v12 = vrot.slane %v2504_v33, 1 }
  0x55   : > { %v909_v62 = vsel %vm695_vm3, %v904_v59, %v908_v45  ;;  %v1311_v8 = vshrl.u32 %v2536_v39, 16  ;;  %v1313_v63 = vshll.u32 %v2536_v39, 16  ;;  %v2547_v3 = vsel %vm824_vm6, %v843_v57, %v844_v61 }
  0x56   : > { %910 = vrot.lane.b32.xlu0 %v909_v62, %s2073_s15  ;;  %v1320_v9 = vrot.slane %v1318_v58, 1  ;;  %v2552_v10 = vsel %vm824_vm6, %v846_v16, %v847_v5  ;;  %v915_v13 = vrot.slane %v693_v22, 1  ;;  %v1326_v14 = vrot.slane %v2536_v39, 1 }
  0x57   : > { %v1315_v7 = vrot.slane %v1313_v63, 1  ;;  %v1327_v17 = vrot.slane %v694_v56, 1 }
  0x58   : > { %v2558_v15 = vsel %vm824_vm6, %v914_v12, %v915_v13 }
  0x59   : > { %v1316_v40 = vor.u32 %v1315_v7, %v1311_v8  ;;  %v2562_v44 = vsel %vm824_vm6, %v1326_v14, %v1327_v17 }
  0x5b   : > { %v1321_v11 = vsel %vm695_vm3, %v1316_v40, %v1320_v9 }
  0x5c   : > { %1322 = vrot.lane.b32.xlu1 %v1321_v11, %s2073_s15 }
  0xa3   : > { %v793_v19 = vpop.permute.xlu0 %792 }
  0xa4   : > { %v851_v20 = vsel %vm849_vm7, %v2319_v31, %v793_v19 }
  0xa5   : > { %1246 = vmatmul.mubr.bf16.vlgmr.msra.gmra.mrb[0].mxu1 %v851_v20  ;;  %v797_v31 = vpop.permute.xlu1 %796 }
  0xa6   : > { %1942 = vmatpush1.bf16.msra.mxu1 %v2020_v18  ;;  %1821 = vmatprep.mubr.msk.bf16.mxu1 %vm849_vm7, %v830_v47  ;;  %v2031_v47 = vld [vmem:[%s2807_s3 + $0x118] sm:$0xff]  }
  0xa7   : > { %v795_v22 = vpop.permute.xlu0 %794  ;;  %1931 = vmatprep.subr.bf16.mxu1 %v2072_v0 }
  0xa8   : > { %v854_v24 = vsel %vm849_vm7, %v2323_v32, %v795_v22  ;;  %v2585_v32 = vsel %vm849_vm7, %v2335_v41, %v797_v31 }
  0xa9   : > { %1074 = vmatmul.mubr.bf16.vlgmr.msra.gmra.mrb[0].mxu0 %v854_v24 }
  0xaa   : > { %1433 = vmatpush1.bf16.msra.mxu0 %v2020_v18  ;;  %1943 = vmatpush1.bf16.msra.mxu1 %v2021_v21  ;;  %v799_v41 = vpop.permute.xlu1 %798 }
  0xab   : > { %1434 = vmatprep.subr.bf16.mxu0 %v2072_v0  ;;  %1801 = vmatprep.mubr.msk.bf16.mxu0 %vm849_vm7, %v2517_v25  ;;  %v2605_v23 = vsel %vm849_vm7, %v2365_v2, %v799_v41 }
  0xac   : > { %1932 = vmatprep.subr.bf16.mxu1 %v2072_v0 }
  0xad   : > { %1254 = vmatmul.mubr.bf16.gmra.mrb[4].mxu1 %v854_v24 }
  0xae   : > { %1435 = vmatpush1.bf16.msra.mxu0 %v2021_v21  ;;  %1822 = vmatprep.mubr.msk.bf16.mxu1 %vm849_vm7, %v2517_v25 }
  0xaf   : > { %1436 = vmatprep.subr.bf16.mxu0 %v2072_v0  ;;  %1944 = vmatpush1.bf16.msra.mxu1 %v2022_v26 }
  0xb0   : > { %1933 = vmatprep.subr.bf16.mxu1 %v2072_v0 }
  0xb1   : > { %1082 = vmatmul.mubr.bf16.gmra.mrb[4].mxu0 %v2585_v32 }
  0xb2   : > { %1437 = vmatpush1.bf16.msra.mxu0 %v2022_v26  ;;  %1802 = vmatprep.mubr.msk.bf16.mxu0 %vm849_vm7, %v2527_v29  ;;  %v801_v2 = vpop.permute.xlu0 %800 }
  0xb3   : > { %1438 = vmatprep.subr.bf16.mxu0 %v2072_v0  ;;  %1945 = vmatpush1.bf16.msra.mxu1 %v2023_v27  ;;  %v2625_v36 = vsel %vm849_vm7, %v2416_v49, %v801_v2 }
  0xb4   : > { %1934 = vmatprep.subr.bf16.mxu1 %v2072_v0 }
  0xb5   : > { %1262 = vmatmul.mubr.bf16.gmra.mrb[8].mxu1 %v2585_v32 }
  0xb6   : > { %1439 = vmatpush1.bf16.msra.mxu0 %v2023_v27  ;;  %1823 = vmatprep.mubr.msk.bf16.mxu1 %vm849_vm7, %v2527_v29 }
  0xb7   : > { %1440 = vmatprep.subr.bf16.mxu0 %v2072_v0  ;;  %1946 = vmatpush1.bf16.msra.mxu1 %v2024_v28 }
  0xb8   : > { %1935 = vmatprep.subr.bf16.mxu1 %v2072_v0  ;;  %v803_v49 = vpop.permute.xlu1 %802 }
  0xb9   : > { %1090 = vmatmul.mubr.bf16.gmra.mrb[8].mxu0 %v2605_v23  ;;  %v866_v42 = vsel %vm849_vm7, %v2448_v4, %v803_v49  ;;  %v2030_v4 = vld [vmem:[%s2807_s3 + $0x110] sm:$0xff]  }
  0xba   : > { %1441 = vmatpush1.bf16.msra.mxu0 %v2024_v28  ;;  %1803 = vmatprep.mubr.msk.bf16.mxu0 %vm849_vm7, %v2531_v6 }
  0xbb   : > { %1442 = vmatprep.subr.bf16.mxu0 %v2072_v0  ;;  %1947 = vmatpush1.bf16.msra.mxu1 %v2025_v30 }
  0xbc   : > { %1936 = vmatprep.subr.bf16.mxu1 %v2072_v0 }
  0xbd   : > { %1270 = vmatmul.mubr.bf16.gmra.mrb[12].mxu1 %v2605_v23 }
  0xbe   : > { %1824 = vmatprep.mubr.msk.bf16.mxu1 %vm849_vm7, %v2531_v6  ;;  %1443 = vmatpush1.bf16.msra.mxu0 %v2025_v30  ;;  %v805_v45 = vpop.permute.xlu0 %804 }
  0xbf   : > { %1444 = vmatprep.subr.bf16.mxu0 %v2072_v0  ;;  %1948 = vmatpush1.bf16.msra.mxu1 %v2026_v35  ;;  %v869_v46 = vsel %vm849_vm7, %v2468_v51, %v805_v45 }
  0xc0   : > { %1937 = vmatprep.subr.bf16.mxu1 %v2072_v0 }
  0xc1   : > { %1098 = vmatmul.mubr.bf16.gmra.mrb[12].mxu0 %v2625_v36 }
  0xc2   : > { %1804 = vmatprep.mubr.msk.bf16.mxu0 %vm849_vm7, %v2539_v60  ;;  %1445 = vmatpush1.bf16.msra.mxu0 %v2026_v35  ;;  %v807_v50 = vpop.permute.xlu1 %806 }
  0xc3   : > { %1446 = vmatprep.subr.bf16.mxu0 %v2072_v0  ;;  %1949 = vmatpush1.bf16.msra.mxu1 %v2027_v37  ;;  %v872_v51 = vsel %vm849_vm7, %v2487_v1, %v807_v50 }
  0xc4   : > { %1938 = vmatprep.subr.bf16.mxu1 %v2072_v0 }
  0xc5   : > { %1278 = vmatmul.mubr.bf16.gmra.mrb[16].mxu1 %v2625_v36 }
  0xc6   : > { %1825 = vmatprep.mubr.msk.bf16.mxu1 %vm849_vm7, %v2539_v60  ;;  %1447 = vmatpush1.bf16.msra.mxu0 %v2027_v37 }
  0xc7   : > { %1448 = vmatprep.subr.bf16.mxu0 %v2072_v0  ;;  %1950 = vmatpush1.bf16.msra.mxu1 %v2028_v38 }
  0xc8   : > { %1939 = vmatprep.subr.bf16.mxu1 %v2072_v0  ;;  %v911_v48 = vpop.permute.xlu0 %910 }
  0xc9   : > { %1106 = vmatmul.mubr.bf16.gmra.mrb[16].mxu0 %v866_v42  ;;  %v918_v52 = vsel %vm849_vm7, %v2504_v33, %v911_v48 }
  0xca   : > { %1805 = vmatprep.mubr.msk.bf16.mxu0 %vm849_vm7, %v2547_v3  ;;  %1449 = vmatpush1.bf16.msra.mxu0 %v2028_v38 }
  0xcb   : > { %1450 = vmatprep.subr.bf16.mxu0 %v2072_v0  ;;  %1951 = vmatpush1.bf16.msra.mxu1 %v2029_v43 }
  0xcc   : > { %1940 = vmatprep.subr.bf16.mxu1 %v2072_v0 }
  0xcd   : > { %1286 = vmatmul.mubr.bf16.gmra.mrb[20].mxu1 %v866_v42 }
  0xce   : > { %1826 = vmatprep.mubr.msk.bf16.mxu1 %vm849_vm7, %v2547_v3  ;;  %1451 = vmatpush1.bf16.msra.mxu0 %v2029_v43 }
  0xcf   : > { %1452 = vmatprep.subr.bf16.mxu0 %v2072_v0  ;;  %1952 = vmatpush1.bf16.msra.mxu1 %v2030_v4 }
  0xd0   : > { %1941 = vmatprep.subr.bf16.mxu1 %v2072_v0 }
  0xd1   : > { %1114 = vmatmul.mubr.bf16.gmra.mrb[20].mxu0 %v869_v46 }
  0xd2   : > { %1806 = vmatprep.mubr.msk.bf16.mxu0 %vm849_vm7, %v2552_v10  ;;  %1453 = vmatpush1.bf16.msra.mxu0 %v2030_v4 }
  0xd3   : > { %1953 = vmatpush1.bf16.msra.mxu1 %v2031_v47  ;;  %1454 = vmatprep.subr.bf16.mxu0 %v2072_v0  ;;  %v1323_v0 = vpop.permute.xlu1 %1322 }
  0xd4   : > { %v1330_v1 = vsel %vm849_vm7, %v2536_v39, %v1323_v0 }
  0xd5   : > { %1294 = vmatmul.mubr.bf16.gmra.mrb[24].mxu1 %v869_v46 }
  0xd6   : > { %1827 = vmatprep.mubr.msk.bf16.mxu1 %vm849_vm7, %v2552_v10  ;;  %1455 = vmatpush1.bf16.msra.mxu0 %v2031_v47 }
  0xd9   : > { %1122 = vmatmul.mubr.bf16.gmra.mrb[24].mxu0 %v872_v51 }
  0xda   : > { %1807 = vmatprep.mubr.msk.bf16.mxu0 %vm849_vm7, %v2558_v15 }
  0xdd   : > { %1302 = vmatmul.mubr.bf16.gmra.mrb[28].mxu1 %v872_v51 }
  0xde   : > { %1868 = vmatprep.mubr.msk.bf16.mxu1 %vm849_vm7, %v2547_v3 }
  0xe1   : > { %1130 = vmatmul.mubr.bf16.gmra.mrb[28].mxu0 %v918_v52 }
  0xe2   : > { %1864 = vmatprep.mubr.msk.bf16.mxu0 %vm849_vm7, %v2517_v25 }
  0xe5   : > { %1497 = vmatmul.mubr.bf16.vlgmr.msra.gmra.mrb[32].mxu1 %v869_v46 }
  0xe6   : > { %1869 = vmatprep.mubr.msk.bf16.mxu1 %vm849_vm7, %v2552_v10 }
  0xe9   : > { %1465 = vmatmul.mubr.bf16.vlgmr.msra.gmra.mrb[32].mxu0 %v2585_v32 }
  0xea   : > { %1865 = vmatprep.mubr.msk.bf16.mxu0 %vm849_vm7, %v2527_v29 }
  0xed   : > { %1505 = vmatmul.mubr.bf16.gmra.mrb[36].mxu1 %v872_v51 }
  0xee   : > { %1870 = vmatprep.mubr.msk.bf16.mxu1 %vm849_vm7, %v2558_v15 }
  0xf1   : > { %1473 = vmatmul.mubr.bf16.gmra.mrb[36].mxu0 %v2605_v23 }
  0xf2   : > { %1866 = vmatprep.mubr.msk.bf16.mxu0 %vm849_vm7, %v2531_v6 }
  0xf5   : > { %1513 = vmatmul.mubr.bf16.gmra.mrb[40].mxu1 %v918_v52 }
  0xf6   : > { %1871 = vmatprep.mubr.msk.bf16.mxu1 %vm849_vm7, %v2562_v44 }
  0xf9   : > { %1481 = vmatmul.mubr.bf16.gmra.mrb[40].mxu0 %v2625_v36 }
  0xfa   : > { %1867 = vmatprep.mubr.msk.bf16.mxu0 %vm849_vm7, %v2539_v60 }
  0xfd   : > { %1521 = vmatmul.mubr.bf16.gmra.mrb[44].mxu1 %v1330_v1 }
 0x101   : > { %1489 = vmatmul.mubr.bf16.gmra.mrb[44].mxu0 %v866_v42 }
 0x178   : > { %v1247_v33 = vpop.f32.mrb[0].mxu1 }
 0x179   : > { %v1249_v25 = vpop.f32.mrb[1].mxu1 }
 0x17a   : > { %v1250_v53 = vpop.f32.mrb[2].mxu1 }
 0x17b   : > { %v1252_v54 = vpop.f32.mrb[3].mxu1 }
 0x17c   : > { %v1075_v55 = vpop.f32.mrb[0].mxu0 }
 0x17d   : > { %v2700_v56 = vadd.f32 %v1247_v33, %v1075_v55  ;;  %v1077_v29 = vpop.f32.mrb[1].mxu0 }
 0x17e   : > { %v1078_v34 = vpop.f32.mrb[2].mxu0 }
 0x17f   : > { %v2702_v59 = vadd.f32 %v1250_v53, %v1078_v34  ;;  %v1080_v58 = vpop.f32.mrb[3].mxu0 }
 0x180   : > { %v1255_v6 = vpop.f32.mrb[4].mxu1 }
 0x181   : > { %v1257_v57 = vpop.f32.mrb[5].mxu1 }
 0x182   : > { %v1258_v39 = vpop.f32.mrb[6].mxu1 }
 0x183   : > { %v1260_v61 = vpop.f32.mrb[7].mxu1 }
 0x184   : > { %v1083_v62 = vpop.f32.mrb[4].mxu0 }
 0x185   : > { %v2704_v60 = vadd.f32 %v1255_v6, %v1083_v62  ;;  %v1085_v8 = vpop.f32.mrb[5].mxu0 }
 0x186   : > { %v1086_v63 = vpop.f32.mrb[6].mxu0 }
 0x187   : > { %v2706_v3 = vadd.f32 %v1258_v39, %v1086_v63  ;;  %v1088_v16 = vpop.f32.mrb[7].mxu0 }
 0x188   : > { %v1263_v5 = vpop.f32.mrb[8].mxu1 }
 0x189   : > { %v1265_v7 = vpop.f32.mrb[9].mxu1 }
 0x18a   : > { %v1266_v9 = vpop.f32.mrb[10].mxu1  ;;  %v2724_v7 = vld [vmem:[%s2808_s4] ss:$0 sm:$0xff] }
 0x18b   : > { %v1268_v10 = vpop.f32.mrb[11].mxu1 }
 0x18c   : > { %v1091_v40 = vpop.f32.mrb[8].mxu0 }
 0x18d   : > { %v2708_v11 = vadd.f32 %v1263_v5, %v1091_v40  ;;  %v1093_v12 = vpop.f32.mrb[9].mxu0 }
 0x18e   : > { %v1094_v13 = vpop.f32.mrb[10].mxu0 }
 0x18f   : > { %v2710_v15 = vadd.f32 %v1266_v9, %v1094_v13  ;;  %v1096_v14 = vpop.f32.mrb[11].mxu0 }
 0x190   : > { %v1271_v17 = vpop.f32.mrb[12].mxu1 }
 0x191   : > { %v1273_v44 = vpop.f32.mrb[13].mxu1 }
 0x192   : > { %v1274_v18 = vpop.f32.mrb[14].mxu1 }
 0x193   : > { %v1276_v19 = vpop.f32.mrb[15].mxu1 }
 0x194   : > { %v1099_v20 = vpop.f32.mrb[12].mxu0 }
 0x195   : > { %v2712_v21 = vadd.f32 %v1271_v17, %v1099_v20  ;;  %v1101_v22 = vpop.f32.mrb[13].mxu0 }
 0x196   : > { %v1102_v24 = vpop.f32.mrb[14].mxu0 }
 0x197   : > { %v2714_v31 = vadd.f32 %v1274_v18, %v1102_v24  ;;  %v1104_v26 = vpop.f32.mrb[15].mxu0 }
 0x198   : > { %v1279_v32 = vpop.f32.mrb[16].mxu1 }
 0x199   : > { %v1281_v27 = vpop.f32.mrb[17].mxu1 }
 0x19a   : > { %v1282_v41 = vpop.f32.mrb[18].mxu1 }
 0x19b   : > { %v1284_v28 = vpop.f32.mrb[19].mxu1 }
 0x19c   : > { %v1107_v23 = vpop.f32.mrb[16].mxu0 }
 0x19d   : > { %v1280_v30 = vadd.f32 %v1279_v32, %v1107_v23  ;;  %v1109_v2 = vpop.f32.mrb[17].mxu0 }
 0x19e   : > { %v1110_v35 = vpop.f32.mrb[18].mxu0 }
 0x19f   : > { %v1283_v36 = vadd.f32 %v1282_v41, %v1110_v35  ;;  %v1112_v37 = vpop.f32.mrb[19].mxu0 }
 0x1a0   : > { %v1287_v49 = vpop.f32.mrb[20].mxu1 }
 0x1a1   : > { %v1289_v38 = vpop.f32.mrb[21].mxu1 }
 0x1a2   : > { %v1290_v42 = vpop.f32.mrb[22].mxu1 }
 0x1a3   : > { %v1292_v43 = vpop.f32.mrb[23].mxu1 }
 0x1a4   : > { %v1115_v45 = vpop.f32.mrb[20].mxu0 }
 0x1a5   : > { %v1288_v4 = vadd.f32 %v1287_v49, %v1115_v45  ;;  %v1117_v46 = vpop.f32.mrb[21].mxu0 }
 0x1a6   : > { %v1118_v47 = vpop.f32.mrb[22].mxu0 }
 0x1a7   : > { %v1291_v50 = vadd.f32 %v1290_v42, %v1118_v47  ;;  %v1120_v51 = vpop.f32.mrb[23].mxu0 }
 0x1a8   : > { %v1295_v48 = vpop.f32.mrb[24].mxu1 }
 0x1a9   : > { %v1297_v52 = vpop.f32.mrb[25].mxu1 }
 0x1aa   : > { %v1298_v0 = vpop.f32.mrb[26].mxu1 }
 0x1ab   : > { %v1300_v1 = vpop.f32.mrb[27].mxu1 }
 0x1ac   : > { %v1123_v33 = vpop.f32.mrb[24].mxu0 }
 0x1ad   : > { %v1296_v25 = vadd.f32 %v1295_v48, %v1123_v33  ;;  %v1125_v53 = vpop.f32.mrb[25].mxu0 }
 0x1ae   : > { %v1126_v54 = vpop.f32.mrb[26].mxu0 }
 0x1af   : > { %v1299_v55 = vadd.f32 %v1298_v0, %v1126_v54  ;;  %v1128_v29 = vpop.f32.mrb[27].mxu0 }
 0x1b0   : > { %v1303_v34 = vpop.f32.mrb[28].mxu1 }
 0x1b1   : > { %v1305_v58 = vpop.f32.mrb[29].mxu1 }
 0x1b2   : > { %v1306_v6 = vpop.f32.mrb[30].mxu1 }
 0x1b3   : > { %v1308_v57 = vpop.f32.mrb[31].mxu1 }
 0x1b4   : > { %v1131_v39 = vpop.f32.mrb[28].mxu0 }
 0x1b5   : > { %v2716_v61 = vadd.f32 %v1303_v34, %v1131_v39  ;;  %v1133_v62 = vpop.f32.mrb[29].mxu0 }
 0x1b6   : > { %v1134_v8 = vpop.f32.mrb[30].mxu0 }
 0x1b7   : > { %v2719_v63 = vadd.f32 %v1306_v6, %v1134_v8  ;;  %v1136_v16 = vpop.f32.mrb[31].mxu0 }
 0x1b8   : > { %v1498_v5 = vpop.f32.mrb[32].mxu1 }
 0x1b9   : > { %v1537_v9 = vadd.f32 %v1498_v5, %v1280_v30  ;;  %v1500_v10 = vpop.f32.mrb[33].mxu1 }
 0x1ba   : > { %v1501_v40 = vpop.f32.mrb[34].mxu1 }
 0x1bb   : > { %v1560_v12 = vadd.f32 %v2724_v7, %v1537_v9  ;;  %v1538_v13 = vadd.f32 %v1501_v40, %v1283_v36  ;;  %v1503_v14 = vpop.f32.mrb[35].mxu1 }
 0x1bc   : > { %v1466_v17 = vpop.f32.mrb[32].mxu0 }
 0x1bd   : > { %1577 = vst.msk [vmem:[%s2729_s23 + $0x40] sm:$0xff] %vm1568_vm8, %v1560_v12  ;;  %v1561_v44 = vadd.f32 %v2724_v7, %v1538_v13  ;;  %v1529_v18 = vadd.f32 %v1466_v17, %v2700_v56  ;;  %v1468_v19 = vpop.f32.mrb[33].mxu0 }
 0x1be   : > { %v1469_v20 = vpop.f32.mrb[34].mxu0 }
 0x1bf   : > { %1578 = vst.msk [vmem:[%s2729_s23 + $0x48] sm:$0xff] %vm1568_vm8, %v1561_v44  ;;  %v1552_v22 = vadd.f32 %v2724_v7, %v1529_v18  ;;  %v1530_v24 = vadd.f32 %v1469_v20, %v2702_v59  ;;  %v1471_v26 = vpop.f32.mrb[35].mxu0 }
 0x1c0   : > { %v1506_v32 = vpop.f32.mrb[36].mxu1 }
 0x1c1   : > { %1569 = vst.msk [vmem:[%s2729_s23] sm:$0xff] %vm1568_vm8, %v1552_v22  ;;  %v1553_v27 = vadd.f32 %v2724_v7, %v1530_v24  ;;  %v1539_v41 = vadd.f32 %v1506_v32, %v1288_v4  ;;  %v1508_v28 = vpop.f32.mrb[37].mxu1 }
 0x1c2   : > { %v1509_v23 = vpop.f32.mrb[38].mxu1 }
 0x1c3   : > { %1570 = vst.msk [vmem:[%s2729_s23 + $0x8] sm:$0xff] %vm1568_vm8, %v1553_v27  ;;  %v1562_v56 = vadd.f32 %v2724_v7, %v1539_v41  ;;  %v1540_v30 = vadd.f32 %v1509_v23, %v1291_v50  ;;  %v1511_v2 = vpop.f32.mrb[39].mxu1 }
 0x1c4   : > { %v1474_v35 = vpop.f32.mrb[36].mxu0 }
 0x1c5   : > { %1579 = vst.msk [vmem:[%s2729_s23 + $0x50] sm:$0xff] %vm1568_vm8, %v1562_v56  ;;  %v1563_v59 = vadd.f32 %v2724_v7, %v1540_v30  ;;  %v1531_v36 = vadd.f32 %v1474_v35, %v2704_v60  ;;  %v1476_v37 = vpop.f32.mrb[37].mxu0 }
 0x1c6   : > { %v1477_v49 = vpop.f32.mrb[38].mxu0 }
 0x1c7   : > { %1580 = vst.msk [vmem:[%s2729_s23 + $0x58] sm:$0xff] %vm1568_vm8, %v1563_v59  ;;  %v1554_v38 = vadd.f32 %v2724_v7, %v1531_v36  ;;  %v1532_v42 = vadd.f32 %v1477_v49, %v2706_v3  ;;  %v1479_v43 = vpop.f32.mrb[39].mxu0 }
 0x1c8   : > { %v1514_v45 = vpop.f32.mrb[40].mxu1 }
 0x1c9   : > { %1571 = vst.msk [vmem:[%s2729_s23 + $0x10] sm:$0xff] %vm1568_vm8, %v1554_v38  ;;  %v1555_v4 = vadd.f32 %v2724_v7, %v1532_v42  ;;  %v1541_v46 = vadd.f32 %v1514_v45, %v1296_v25  ;;  %v1516_v47 = vpop.f32.mrb[41].mxu1 }
 0x1ca   : > { %v1517_v50 = vpop.f32.mrb[42].mxu1 }
 0x1cb   : > { %1572 = vst.msk [vmem:[%s2729_s23 + $0x18] sm:$0xff] %vm1568_vm8, %v1555_v4  ;;  %v1564_v60 = vadd.f32 %v2724_v7, %v1541_v46  ;;  %v1542_v51 = vadd.f32 %v1517_v50, %v1299_v55  ;;  %v1519_v48 = vpop.f32.mrb[43].mxu1 }
 0x1cc   : > { %v1482_v52 = vpop.f32.mrb[40].mxu0 }
 0x1cd   : > { %1581 = vst.msk [vmem:[%s2729_s23 + $0x60] sm:$0xff] %vm1568_vm8, %v1564_v60  ;;  %v1565_v3 = vadd.f32 %v2724_v7, %v1542_v51  ;;  %v1533_v0 = vadd.f32 %v1482_v52, %v2708_v11  ;;  %v1484_v1 = vpop.f32.mrb[41].mxu0 }
 0x1ce   : > { %v1485_v33 = vpop.f32.mrb[42].mxu0 }
 0x1cf   : > { %1582 = vst.msk [vmem:[%s2729_s23 + $0x68] sm:$0xff] %vm1568_vm8, %v1565_v3  ;;  %v1556_v25 = vadd.f32 %v2724_v7, %v1533_v0  ;;  %v1534_v53 = vadd.f32 %v1485_v33, %v2710_v15  ;;  %v1487_v54 = vpop.f32.mrb[43].mxu0 }
 0x1d0   : > { %v1522_v55 = vpop.f32.mrb[44].mxu1 }
 0x1d1   : > { %1573 = vst.msk [vmem:[%s2729_s23 + $0x20] sm:$0xff] %vm1568_vm8, %v1556_v25  ;;  %v1557_v29 = vadd.f32 %v2724_v7, %v1534_v53  ;;  %v1543_v34 = vadd.f32 %v1522_v55, %v2716_v61  ;;  %v1524_v58 = vpop.f32.mrb[45].mxu1 }
 0x1d2   : > { %v1525_v11 = vpop.f32.mrb[46].mxu1 }
 0x1d3   : > { %1574 = vst.msk [vmem:[%s2729_s23 + $0x28] sm:$0xff] %vm1568_vm8, %v1557_v29  ;;  %v1566_v6 = vadd.f32 %v2724_v7, %v1543_v34  ;;  %v1544_v57 = vadd.f32 %v1525_v11, %v2719_v63  ;;  %v1527_v15 = vpop.f32.mrb[47].mxu1 }
 0x1d4   : > { %v1490_v39 = vpop.f32.mrb[44].mxu0 }
 0x1d5   : > { %1583 = vst.msk [vmem:[%s2729_s23 + $0x70] sm:$0xff] %vm1568_vm8, %v1566_v6  ;;  %v1567_v62 = vadd.f32 %v2724_v7, %v1544_v57  ;;  %v1535_v8 = vadd.f32 %v1490_v39, %v2712_v21  ;;  %v1492_v16 = vpop.f32.mrb[45].mxu0 }
 0x1d6   : > { %v1493_v61 = vpop.f32.mrb[46].mxu0 }
 0x1d7   : > { %1584 = vst.msk [vmem:[%s2729_s23 + $0x78] sm:$0xff] %vm1568_vm8, %v1567_v62  ;;  %v1558_v5 = vadd.f32 %v2724_v7, %v1535_v8  ;;  %v1536_v9 = vadd.f32 %v1493_v61, %v2714_v31  ;;  %v1495_v10 = vpop.f32.mrb[47].mxu0 }
 0x1d9   : > { %1575 = vst.msk [vmem:[%s2729_s23 + $0x30] sm:$0xff] %vm1568_vm8, %v1558_v5  ;;  %v1559_v63 = vadd.f32 %v2724_v7, %v1536_v9 }
 0x1db   : > { %1576 = vst.msk [vmem:[%s2729_s23 + $0x38] sm:$0xff] %vm1568_vm8, %v1559_v63 }
 0x1dc PF: > { %s17_s28 = sadd.s32 1, %s2070_s28   ;;  %s2819_s24 = smov %s2062_s26 }
 0x1dd   : > { %p14_p12 = scmp.ge.s32.totalorder %s17_s28, 6   ;;  %s2820_s25 = smov %s2066_s27 }
 0x1de   : > { %s2821_s26 = smov %s2824_s29  ;;  %s2822_s27 = smov %s2828_s30 }
 0x1df   :  { %16 = sbr.rel (!%p14_p12) target bundleno = 3 (0x3), region = 86 }

</bundles_post_ra>
